<compile_context>
chip_gen: v6e
topology: v6e:2x2x1
jax: 0.10.0
libtpu: 0.0.40
codegen_flags: <defaults>
</compile_context>

<pallas_src>
import functools

import jax
import jax.numpy as jnp
from jax.experimental import pallas as pl
from jax.experimental.pallas import tpu as pltpu

PD = 128  # lane-dense feature padding (one full vreg lane width)


# ----------------------------------------------------------------------------
# Fused kernel: the full MLPWithInputSkips forward for one batch tile.
# ----------------------------------------------------------------------------
def _fused_mlp_kernel(idx_ref, x_ref, z_ref, w_ref, b_ref, o_ref, *,
                      n_layers, n_experts, layer_slots, compute_dtype):
    """
    idx_ref : (TB, 1)  int32        per-row expert index
    x_ref   : (TB, PD) f32          zero-padded input
    z_ref   : (TB, PD) f32          zero-padded skip tensor
    w_ref   : (S, E, PD, PD)        packed expert weights (compute_dtype), VMEM-resident
    b_ref   : (L, E, 1, PD) f32     packed expert biases, VMEM-resident
    o_ref   : (TB, PD) f32          zero-padded output (lane-dense store)
    """
    idx = idx_ref[...]                                     # (TB, 1)
    # Hoisted: per-expert row masks, reused by every layer (no per-iter
    # re-broadcast of the (TB, 1) comparison).
    masks = [idx == e for e in range(n_experts)]

    h = x_ref[...].astype(compute_dtype)                   # (TB, PD)
    z = z_ref[...].astype(compute_dtype)                   # (TB, PD)

    for layer in range(n_layers):                          # statically unrolled
        h_slot, z_slot = layer_slots[layer]
        acc = None
        for e in range(n_experts):                         # statically unrolled
            y = jnp.dot(h, w_ref[h_slot, e],
                        preferred_element_type=jnp.float32)
            if z_slot is not None:                         # skip layer: + z-part
                y = y + jnp.dot(z, w_ref[z_slot, e],
                                preferred_element_type=jnp.float32)
            y = y + b_ref[layer, e]                        # (1, PD) broadcast
            y = jnp.where(masks[e], y, 0.0)                # rows routed to e
            acc = y if acc is None else acc + y
        h = jnp.maximum(acc, 0.0).astype(compute_dtype)    # ReLU (every layer)

    o_ref[...] = h.astype(o_ref.dtype)


# ----------------------------------------------------------------------------
# Parameter construction (mimics Experts.reset_parameters) and lane-dense pack
# ----------------------------------------------------------------------------
def init_experts_params(key, n_experts, in_features, out_features):
    kw, kb = jax.random.split(key)
    xav = jnp.sqrt(6.0 / (in_features + out_features))     # xavier_uniform
    w = jax.random.uniform(kw, (n_experts, in_features, out_features),
                           jnp.float32, minval=-xav, maxval=xav)
    bb = 1.0 / jnp.sqrt(jnp.float32(in_features))
    b = jax.random.uniform(kb, (n_experts, out_features),
                           jnp.float32, minval=-bb, maxval=bb)
    return w, b


def init_mlp_params(key, n_experts, n_layers, input_dim, output_dim,
                    skip_dim, hidden_dim, input_skips):
    # NOTE: like the PyTorch module, this dim bookkeeping requires
    # output_dim == hidden_dim when there are layers after layer 1.
    params = []
    for layeri in range(n_layers):
        if layeri == 0:
            dimin, dimout = input_dim, hidden_dim
        elif layeri in input_skips:
            dimin, dimout = hidden_dim + skip_dim, hidden_dim
        else:
            dimin, dimout = hidden_dim, output_dim
        key, sub = jax.random.split(key)
        params.append(init_experts_params(sub, n_experts, dimin, dimout))
    return params


def pack_params(params, input_skips, skip_dim, compute_dtype=jnp.float32):
    """Zero-pad every layer's weights/biases to lane-dense PD-wide shapes and
    stack them.  A skip layer is split into an h-part slot and a z-part slot so
    every weight slot has the uniform shape (E, PD, PD)."""
    skips = set(input_skips)
    E = params[0][0].shape[0]
    w_slots, b_rows, layer_slots = [], [], []
    for layer, (w, b) in enumerate(params):
        _, din, dout = w.shape
        assert dout <= PD

        def _pad_w(wpart, _dout=dout):
            out = jnp.zeros((E, PD, PD), compute_dtype)
            return out.at[:, :wpart.shape[1], :_dout].set(
                wpart.astype(compute_dtype))

        if layer in skips:
            dh = din - skip_dim                            # width of h-part
            h_slot = len(w_slots); w_slots.append(_pad_w(w[:, :dh, :]))
            z_slot = len(w_slots); w_slots.append(_pad_w(w[:, dh:, :]))
            layer_slots.append((h_slot, z_slot))
        else:
            assert din <= PD
            h_slot = len(w_slots); w_slots.append(_pad_w(w))
            layer_slots.append((h_slot, None))

        b_rows.append(jnp.zeros((E, 1, PD), jnp.float32)
                      .at[:, 0, :dout].set(b.astype(jnp.float32)))

    return jnp.stack(w_slots, 0), jnp.stack(b_rows, 0), tuple(layer_slots)


# ----------------------------------------------------------------------------
# Wrapper: padding + one pallas_call for the whole forward pass
# ----------------------------------------------------------------------------
def mlp_with_input_skips_forward(w_all, b_all, x, z, index, *, layer_slots,
                                 output_dim, tb=128,
                                 compute_dtype=jnp.float32):
    B = x.shape[0]
    S, E, _, _ = w_all.shape
    L = b_all.shape[0]
    bp = ((B + tb - 1) // tb) * tb

    # Lane-dense (128-wide) and batch-tile-aligned zero padding.
    xp = jnp.zeros((bp, PD), jnp.float32).at[:B, :x.shape[1]].set(x)
    zp = jnp.zeros((bp, PD), jnp.float32).at[:B, :z.shape[1]].set(z)
    idxp = jnp.zeros((bp, 1), jnp.int32).at[:B, 0].set(index.astype(jnp.int32))

    kernel = functools.partial(
        _fused_mlp_kernel, n_layers=L, n_experts=E,
        layer_slots=layer_slots, compute_dtype=compute_dtype)

    out = pl.pallas_call(
        kernel,
        out_shape=jax.ShapeDtypeStruct((bp, PD), jnp.float32),
        grid_spec=pltpu.PrefetchScalarGridSpec(
            num_scalar_prefetch=0,
            grid=(bp // tb,),                              # batch tiles
            in_specs=[
                pl.BlockSpec((tb, 1), lambda i: (i, 0)),               # index
                pl.BlockSpec((tb, PD), lambda i: (i, 0)),              # x
                pl.BlockSpec((tb, PD), lambda i: (i, 0)),              # z
                pl.BlockSpec((S, E, PD, PD), lambda i: (0, 0, 0, 0)),  # weights (resident)
                pl.BlockSpec((L, E, 1, PD), lambda i: (0, 0, 0, 0)),   # biases  (resident)
            ],
            out_specs=pl.BlockSpec((tb, PD), lambda i: (i, 0)),
        ),
        compiler_params=pltpu.CompilerParams(
            dimension_semantics=("parallel",)),            # 2 TCs on v7x
    )(idxp, xp, zp, w_all, b_all)

    return out[:B, :output_dim]


# ----------------------------------------------------------------------------
# Pure-JAX reference (matches the PyTorch forward semantics exactly)
# ----------------------------------------------------------------------------
def reference_forward(params, input_skips, x, z, index):
    skips = set(input_skips)
    out = x
    for i, (w, b) in enumerate(params):
        if i in skips:
            out = jnp.concatenate([out, z], axis=-1)
        w_s = jnp.take(w, index, axis=0)                   # (B, Din, Dout)
        b_s = jnp.take(b, index, axis=0)                   # (B, Dout)
        out = jnp.einsum('bi,bio->bo', out, w_s) + b_s
        out = jnp.maximum(out, 0.0)
    return out


if __name__ == "__main__":
    n_experts = 4
    n_layers = 4
    input_dim = 16
    skip_dim = 16
    hidden_dim = 32
    output_dim = 32          # must equal hidden_dim (module's own dim quirk)
    input_skips = (2,)
    B = 256
    TB = 128

    key = jax.random.PRNGKey(0)
    kp, kx, kz, ki = jax.random.split(key, 4)

    params = init_mlp_params(kp, n_experts, n_layers, input_dim, output_dim,
                             skip_dim, hidden_dim, input_skips)
    x = jax.random.normal(kx, (B, input_dim), jnp.float32)
    z = jax.random.normal(kz, (B, skip_dim), jnp.float32)
    index = jax.random.randint(ki, (B,), 0, n_experts, jnp.int32)

    y_ref = reference_forward(params, input_skips, x, z, index)

    # --- f32 path: exact match against the reference ------------------------
    w_all, b_all, layer_slots = pack_params(params, input_skips, skip_dim,
                                            compute_dtype=jnp.float32)
    fwd = jax.jit(functools.partial(
        mlp_with_input_skips_forward, layer_slots=layer_slots,
        output_dim=output_dim, tb=TB, compute_dtype=jnp.float32))
    y = fwd(w_all, b_all, x, z, index)
    jax.block_until_ready(y)
    assert y.shape == (B, output_dim)
    assert jnp.allclose(y, y_ref, atol=1e-5, rtol=1e-5), "f32 mismatch vs ref"

    # --- bf16-operand path (v6e/v7x fast path, f32 accumulation) -------------
    w16, b16, ls16 = pack_params(params, input_skips, skip_dim,
                                 compute_dtype=jnp.bfloat16)
    fwd16 = jax.jit(functools.partial(
        mlp_with_input_skips_forward, layer_slots=ls16,
        output_dim=output_dim, tb=TB, compute_dtype=jnp.bfloat16))
    y16 = fwd16(w16, b16, x, z, index)
    jax.block_until_ready(y16)
    assert y16.shape == (B, output_dim)
    assert jnp.all(jnp.isfinite(y16))
    assert jnp.allclose(y16, y_ref, atol=1e-1, rtol=1e-1), "bf16 mismatch vs ref"

    print("KERNEL_OK")
</pallas_src>

<mosaic_0001>
module attributes {stable_mosaic.version = 11 : i64} {
  func.func @_fused_mlp_kernel(%arg0: i32, %arg1: memref<128x1xi32, #tpu.memory_space<vmem>>, %arg2: memref<128x128xf32, #tpu.memory_space<vmem>>, %arg3: memref<128x128xf32, #tpu.memory_space<vmem>>, %arg4: memref<5x4x128x128xf32, #tpu.memory_space<vmem>>, %arg5: memref<4x4x1x128xf32, #tpu.memory_space<vmem>>, %arg6: memref<128x128xf32, #tpu.memory_space<vmem>>) attributes {dimension_semantics = [#tpu.dimension_semantics<parallel>], iteration_bounds = array<i64: 2>, scalar_prefetch = 0 : i64, scratch_operands = 0 : i64, tpu.core_type = #tpu.core_type<tc>, window_params = [{transform_indices = @transform_0, window_bounds = array<i64: 128, 1>}, {transform_indices = @transform_1, window_bounds = array<i64: 128, 128>}, {transform_indices = @transform_2, window_bounds = array<i64: 128, 128>}, {pipeline_mode = #tpu.pipeline_mode<synchronous>, transform_indices = @transform_3, window_bounds = array<i64: 5, 4, 128, 128>}, {pipeline_mode = #tpu.pipeline_mode<synchronous>, transform_indices = @transform_4, window_bounds = array<i64: 4, 4, 1, 128>}, {transform_indices = @transform_5, window_bounds = array<i64: 128, 128>}]} {
    %c0 = arith.constant 0 : index
    %c0_0 = arith.constant 0 : index
    %0 = vector.load %arg1[%c0, %c0_0] : memref<128x1xi32, #tpu.memory_space<vmem>>, vector<128x1xi32>
    %c0_i32 = arith.constant 0 : i32
    %1 = vector.broadcast %c0_i32 : i32 to vector<128x1xi32>
    %2 = arith.cmpi eq, %0, %1 : vector<128x1xi32>
    %c1_i32 = arith.constant 1 : i32
    %3 = vector.broadcast %c1_i32 : i32 to vector<128x1xi32>
    %4 = arith.cmpi eq, %0, %3 : vector<128x1xi32>
    %c2_i32 = arith.constant 2 : i32
    %5 = vector.broadcast %c2_i32 : i32 to vector<128x1xi32>
    %6 = arith.cmpi eq, %0, %5 : vector<128x1xi32>
    %c3_i32 = arith.constant 3 : i32
    %7 = vector.broadcast %c3_i32 : i32 to vector<128x1xi32>
    %8 = arith.cmpi eq, %0, %7 : vector<128x1xi32>
    %c0_1 = arith.constant 0 : index
    %c0_2 = arith.constant 0 : index
    %9 = vector.load %arg2[%c0_1, %c0_2] : memref<128x128xf32, #tpu.memory_space<vmem>>, vector<128x128xf32>
    %c0_3 = arith.constant 0 : index
    %c0_4 = arith.constant 0 : index
    %10 = vector.load %arg3[%c0_3, %c0_4] : memref<128x128xf32, #tpu.memory_space<vmem>>, vector<128x128xf32>
    %c0_5 = arith.constant 0 : index
    %c0_6 = arith.constant 0 : index
    %c0_7 = arith.constant 0 : index
    %c0_8 = arith.constant 0 : index
    %11 = vector.load %arg4[%c0_5, %c0_6, %c0_7, %c0_8] : memref<5x4x128x128xf32, #tpu.memory_space<vmem>>, vector<1x1x128x128xf32>
    %12 = vector.shape_cast %11 : vector<1x1x128x128xf32> to vector<128x128xf32>
    %cst = arith.constant dense<0.000000e+00> : vector<128x128xf32>
    %13 = tpu.matmul %9, %12, %cst {dimension_numbers = #tpu.dot_dimension_numbers<[1], [0], [0], [1], [0, 0, 1, 1], [], []>} : vector<128x128xf32>, vector<128x128xf32>, vector<128x128xf32> -> vector<128x128xf32>
    %c0_9 = arith.constant 0 : index
    %c0_10 = arith.constant 0 : index
    %c0_11 = arith.constant 0 : index
    %c0_12 = arith.constant 0 : index
    %14 = vector.load %arg5[%c0_9, %c0_10, %c0_11, %c0_12] : memref<4x4x1x128xf32, #tpu.memory_space<vmem>>, vector<1x1x1x128xf32>
    %15 = vector.shape_cast %14 : vector<1x1x1x128xf32> to vector<1x128xf32>
    %16 = vector.broadcast %15 : vector<1x128xf32> to vector<128x128xf32>
    %17 = arith.addf %13, %16 : vector<128x128xf32>
    %cst_13 = arith.constant 0.000000e+00 : f32
    %18 = vector.shape_cast %2 : vector<128x1xi1> to vector<128x1xi1>
    %19 = vector.broadcast %18 : vector<128x1xi1> to vector<128x128xi1>
    %20 = vector.broadcast %cst_13 : f32 to vector<128x128xf32>
    %21 = arith.select %19, %17, %20 : vector<128x128xi1>, vector<128x128xf32>
    %c0_14 = arith.constant 0 : index
    %c1 = arith.constant 1 : index
    %c0_15 = arith.constant 0 : index
    %c0_16 = arith.constant 0 : index
    %22 = vector.load %arg4[%c0_14, %c1, %c0_15, %c0_16] : memref<5x4x128x128xf32, #tpu.memory_space<vmem>>, vector<1x1x128x128xf32>
    %23 = vector.shape_cast %22 : vector<1x1x128x128xf32> to vector<128x128xf32>
    %cst_17 = arith.constant dense<0.000000e+00> : vector<128x128xf32>
    %24 = tpu.matmul %9, %23, %cst_17 {dimension_numbers = #tpu.dot_dimension_numbers<[1], [0], [0], [1], [0, 0, 1, 1], [], []>} : vector<128x128xf32>, vector<128x128xf32>, vector<128x128xf32> -> vector<128x128xf32>
    %c0_18 = arith.constant 0 : index
    %c1_19 = arith.constant 1 : index
    %c0_20 = arith.constant 0 : index
    %c0_21 = arith.constant 0 : index
    %25 = vector.load %arg5[%c0_18, %c1_19, %c0_20, %c0_21] : memref<4x4x1x128xf32, #tpu.memory_space<vmem>>, vector<1x1x1x128xf32>
    %26 = vector.shape_cast %25 : vector<1x1x1x128xf32> to vector<1x128xf32>
    %27 = vector.broadcast %26 : vector<1x128xf32> to vector<128x128xf32>
    %28 = arith.addf %24, %27 : vector<128x128xf32>
    %cst_22 = arith.constant 0.000000e+00 : f32
    %29 = vector.shape_cast %4 : vector<128x1xi1> to vector<128x1xi1>
    %30 = vector.broadcast %29 : vector<128x1xi1> to vector<128x128xi1>
    %31 = vector.broadcast %cst_22 : f32 to vector<128x128xf32>
    %32 = arith.select %30, %28, %31 : vector<128x128xi1>, vector<128x128xf32>
    %33 = arith.addf %21, %32 : vector<128x128xf32>
    %c0_23 = arith.constant 0 : index
    %c2 = arith.constant 2 : index
    %c0_24 = arith.constant 0 : index
    %c0_25 = arith.constant 0 : index
    %34 = vector.load %arg4[%c0_23, %c2, %c0_24, %c0_25] : memref<5x4x128x128xf32, #tpu.memory_space<vmem>>, vector<1x1x128x128xf32>
    %35 = vector.shape_cast %34 : vector<1x1x128x128xf32> to vector<128x128xf32>
    %cst_26 = arith.constant dense<0.000000e+00> : vector<128x128xf32>
    %36 = tpu.matmul %9, %35, %cst_26 {dimension_numbers = #tpu.dot_dimension_numbers<[1], [0], [0], [1], [0, 0, 1, 1], [], []>} : vector<128x128xf32>, vector<128x128xf32>, vector<128x128xf32> -> vector<128x128xf32>
    %c0_27 = arith.constant 0 : index
    %c2_28 = arith.constant 2 : index
    %c0_29 = arith.constant 0 : index
    %c0_30 = arith.constant 0 : index
    %37 = vector.load %arg5[%c0_27, %c2_28, %c0_29, %c0_30] : memref<4x4x1x128xf32, #tpu.memory_space<vmem>>, vector<1x1x1x128xf32>
    %38 = vector.shape_cast %37 : vector<1x1x1x128xf32> to vector<1x128xf32>
    %39 = vector.broadcast %38 : vector<1x128xf32> to vector<128x128xf32>
    %40 = arith.addf %36, %39 : vector<128x128xf32>
    %cst_31 = arith.constant 0.000000e+00 : f32
    %41 = vector.shape_cast %6 : vector<128x1xi1> to vector<128x1xi1>
    %42 = vector.broadcast %41 : vector<128x1xi1> to vector<128x128xi1>
    %43 = vector.broadcast %cst_31 : f32 to vector<128x128xf32>
    %44 = arith.select %42, %40, %43 : vector<128x128xi1>, vector<128x128xf32>
    %45 = arith.addf %33, %44 : vector<128x128xf32>
    %c0_32 = arith.constant 0 : index
    %c3 = arith.constant 3 : index
    %c0_33 = arith.constant 0 : index
    %c0_34 = arith.constant 0 : index
    %46 = vector.load %arg4[%c0_32, %c3, %c0_33, %c0_34] : memref<5x4x128x128xf32, #tpu.memory_space<vmem>>, vector<1x1x128x128xf32>
    %47 = vector.shape_cast %46 : vector<1x1x128x128xf32> to vector<128x128xf32>
    %cst_35 = arith.constant dense<0.000000e+00> : vector<128x128xf32>
    %48 = tpu.matmul %9, %47, %cst_35 {dimension_numbers = #tpu.dot_dimension_numbers<[1], [0], [0], [1], [0, 0, 1, 1], [], []>} : vector<128x128xf32>, vector<128x128xf32>, vector<128x128xf32> -> vector<128x128xf32>
    %c0_36 = arith.constant 0 : index
    %c3_37 = arith.constant 3 : index
    %c0_38 = arith.constant 0 : index
    %c0_39 = arith.constant 0 : index
    %49 = vector.load %arg5[%c0_36, %c3_37, %c0_38, %c0_39] : memref<4x4x1x128xf32, #tpu.memory_space<vmem>>, vector<1x1x1x128xf32>
    %50 = vector.shape_cast %49 : vector<1x1x1x128xf32> to vector<1x128xf32>
    %51 = vector.broadcast %50 : vector<1x128xf32> to vector<128x128xf32>
    %52 = arith.addf %48, %51 : vector<128x128xf32>
    %cst_40 = arith.constant 0.000000e+00 : f32
    %53 = vector.shape_cast %8 : vector<128x1xi1> to vector<128x1xi1>
    %54 = vector.broadcast %53 : vector<128x1xi1> to vector<128x128xi1>
    %55 = vector.broadcast %cst_40 : f32 to vector<128x128xf32>
    %56 = arith.select %54, %52, %55 : vector<128x128xi1>, vector<128x128xf32>
    %57 = arith.addf %45, %56 : vector<128x128xf32>
    %cst_41 = arith.constant 0.000000e+00 : f32
    %58 = vector.broadcast %cst_41 : f32 to vector<128x128xf32>
    %59 = arith.maximumf %57, %58 : vector<128x128xf32>
    %c1_42 = arith.constant 1 : index
    %c0_43 = arith.constant 0 : index
    %c0_44 = arith.constant 0 : index
    %c0_45 = arith.constant 0 : index
    %60 = vector.load %arg4[%c1_42, %c0_43, %c0_44, %c0_45] : memref<5x4x128x128xf32, #tpu.memory_space<vmem>>, vector<1x1x128x128xf32>
    %61 = vector.shape_cast %60 : vector<1x1x128x128xf32> to vector<128x128xf32>
    %cst_46 = arith.constant dense<0.000000e+00> : vector<128x128xf32>
    %62 = tpu.matmul %59, %61, %cst_46 {dimension_numbers = #tpu.dot_dimension_numbers<[1], [0], [0], [1], [0, 0, 1, 1], [], []>} : vector<128x128xf32>, vector<128x128xf32>, vector<128x128xf32> -> vector<128x128xf32>
    %c1_47 = arith.constant 1 : index
    %c0_48 = arith.constant 0 : index
    %c0_49 = arith.constant 0 : index
    %c0_50 = arith.constant 0 : index
    %63 = vector.load %arg5[%c1_47, %c0_48, %c0_49, %c0_50] : memref<4x4x1x128xf32, #tpu.memory_space<vmem>>, vector<1x1x1x128xf32>
    %64 = vector.shape_cast %63 : vector<1x1x1x128xf32> to vector<1x128xf32>
    %65 = vector.broadcast %64 : vector<1x128xf32> to vector<128x128xf32>
    %66 = arith.addf %62, %65 : vector<128x128xf32>
    %cst_51 = arith.constant 0.000000e+00 : f32
    %67 = vector.shape_cast %2 : vector<128x1xi1> to vector<128x1xi1>
    %68 = vector.broadcast %67 : vector<128x1xi1> to vector<128x128xi1>
    %69 = vector.broadcast %cst_51 : f32 to vector<128x128xf32>
    %70 = arith.select %68, %66, %69 : vector<128x128xi1>, vector<128x128xf32>
    %c1_52 = arith.constant 1 : index
    %c1_53 = arith.constant 1 : index
    %c0_54 = arith.constant 0 : index
    %c0_55 = arith.constant 0 : index
    %71 = vector.load %arg4[%c1_52, %c1_53, %c0_54, %c0_55] : memref<5x4x128x128xf32, #tpu.memory_space<vmem>>, vector<1x1x128x128xf32>
    %72 = vector.shape_cast %71 : vector<1x1x128x128xf32> to vector<128x128xf32>
    %cst_56 = arith.constant dense<0.000000e+00> : vector<128x128xf32>
    %73 = tpu.matmul %59, %72, %cst_56 {dimension_numbers = #tpu.dot_dimension_numbers<[1], [0], [0], [1], [0, 0, 1, 1], [], []>} : vector<128x128xf32>, vector<128x128xf32>, vector<128x128xf32> -> vector<128x128xf32>
    %c1_57 = arith.constant 1 : index
    %c1_58 = arith.constant 1 : index
    %c0_59 = arith.constant 0 : index
    %c0_60 = arith.constant 0 : index
    %74 = vector.load %arg5[%c1_57, %c1_58, %c0_59, %c0_60] : memref<4x4x1x128xf32, #tpu.memory_space<vmem>>, vector<1x1x1x128xf32>
    %75 = vector.shape_cast %74 : vector<1x1x1x128xf32> to vector<1x128xf32>
    %76 = vector.broadcast %75 : vector<1x128xf32> to vector<128x128xf32>
    %77 = arith.addf %73, %76 : vector<128x128xf32>
    %cst_61 = arith.constant 0.000000e+00 : f32
    %78 = vector.shape_cast %4 : vector<128x1xi1> to vector<128x1xi1>
    %79 = vector.broadcast %78 : vector<128x1xi1> to vector<128x128xi1>
    %80 = vector.broadcast %cst_61 : f32 to vector<128x128xf32>
    %81 = arith.select %79, %77, %80 : vector<128x128xi1>, vector<128x128xf32>
    %82 = arith.addf %70, %81 : vector<128x128xf32>
    %c1_62 = arith.constant 1 : index
    %c2_63 = arith.constant 2 : index
    %c0_64 = arith.constant 0 : index
    %c0_65 = arith.constant 0 : index
    %83 = vector.load %arg4[%c1_62, %c2_63, %c0_64, %c0_65] : memref<5x4x128x128xf32, #tpu.memory_space<vmem>>, vector<1x1x128x128xf32>
    %84 = vector.shape_cast %83 : vector<1x1x128x128xf32> to vector<128x128xf32>
    %cst_66 = arith.constant dense<0.000000e+00> : vector<128x128xf32>
    %85 = tpu.matmul %59, %84, %cst_66 {dimension_numbers = #tpu.dot_dimension_numbers<[1], [0], [0], [1], [0, 0, 1, 1], [], []>} : vector<128x128xf32>, vector<128x128xf32>, vector<128x128xf32> -> vector<128x128xf32>
    %c1_67 = arith.constant 1 : index
    %c2_68 = arith.constant 2 : index
    %c0_69 = arith.constant 0 : index
    %c0_70 = arith.constant 0 : index
    %86 = vector.load %arg5[%c1_67, %c2_68, %c0_69, %c0_70] : memref<4x4x1x128xf32, #tpu.memory_space<vmem>>, vector<1x1x1x128xf32>
    %87 = vector.shape_cast %86 : vector<1x1x1x128xf32> to vector<1x128xf32>
    %88 = vector.broadcast %87 : vector<1x128xf32> to vector<128x128xf32>
    %89 = arith.addf %85, %88 : vector<128x128xf32>
    %cst_71 = arith.constant 0.000000e+00 : f32
    %90 = vector.shape_cast %6 : vector<128x1xi1> to vector<128x1xi1>
    %91 = vector.broadcast %90 : vector<128x1xi1> to vector<128x128xi1>
    %92 = vector.broadcast %cst_71 : f32 to vector<128x128xf32>
    %93 = arith.select %91, %89, %92 : vector<128x128xi1>, vector<128x128xf32>
    %94 = arith.addf %82, %93 : vector<128x128xf32>
    %c1_72 = arith.constant 1 : index
    %c3_73 = arith.constant 3 : index
    %c0_74 = arith.constant 0 : index
    %c0_75 = arith.constant 0 : index
    %95 = vector.load %arg4[%c1_72, %c3_73, %c0_74, %c0_75] : memref<5x4x128x128xf32, #tpu.memory_space<vmem>>, vector<1x1x128x128xf32>
    %96 = vector.shape_cast %95 : vector<1x1x128x128xf32> to vector<128x128xf32>
    %cst_76 = arith.constant dense<0.000000e+00> : vector<128x128xf32>
    %97 = tpu.matmul %59, %96, %cst_76 {dimension_numbers = #tpu.dot_dimension_numbers<[1], [0], [0], [1], [0, 0, 1, 1], [], []>} : vector<128x128xf32>, vector<128x128xf32>, vector<128x128xf32> -> vector<128x128xf32>
    %c1_77 = arith.constant 1 : index
    %c3_78 = arith.constant 3 : index
    %c0_79 = arith.constant 0 : index
    %c0_80 = arith.constant 0 : index
    %98 = vector.load %arg5[%c1_77, %c3_78, %c0_79, %c0_80] : memref<4x4x1x128xf32, #tpu.memory_space<vmem>>, vector<1x1x1x128xf32>
    %99 = vector.shape_cast %98 : vector<1x1x1x128xf32> to vector<1x128xf32>
    %100 = vector.broadcast %99 : vector<1x128xf32> to vector<128x128xf32>
    %101 = arith.addf %97, %100 : vector<128x128xf32>
    %cst_81 = arith.constant 0.000000e+00 : f32
    %102 = vector.shape_cast %8 : vector<128x1xi1> to vector<128x1xi1>
    %103 = vector.broadcast %102 : vector<128x1xi1> to vector<128x128xi1>
    %104 = vector.broadcast %cst_81 : f32 to vector<128x128xf32>
    %105 = arith.select %103, %101, %104 : vector<128x128xi1>, vector<128x128xf32>
    %106 = arith.addf %94, %105 : vector<128x128xf32>
    %cst_82 = arith.constant 0.000000e+00 : f32
    %107 = vector.broadcast %cst_82 : f32 to vector<128x128xf32>
    %108 = arith.maximumf %106, %107 : vector<128x128xf32>
    %c2_83 = arith.constant 2 : index
    %c0_84 = arith.constant 0 : index
    %c0_85 = arith.constant 0 : index
    %c0_86 = arith.constant 0 : index
    %109 = vector.load %arg4[%c2_83, %c0_84, %c0_85, %c0_86] : memref<5x4x128x128xf32, #tpu.memory_space<vmem>>, vector<1x1x128x128xf32>
    %110 = vector.shape_cast %109 : vector<1x1x128x128xf32> to vector<128x128xf32>
    %cst_87 = arith.constant dense<0.000000e+00> : vector<128x128xf32>
    %111 = tpu.matmul %108, %110, %cst_87 {dimension_numbers = #tpu.dot_dimension_numbers<[1], [0], [0], [1], [0, 0, 1, 1], [], []>} : vector<128x128xf32>, vector<128x128xf32>, vector<128x128xf32> -> vector<128x128xf32>
    %c3_88 = arith.constant 3 : index
    %c0_89 = arith.constant 0 : index
    %c0_90 = arith.constant 0 : index
    %c0_91 = arith.constant 0 : index
    %112 = vector.load %arg4[%c3_88, %c0_89, %c0_90, %c0_91] : memref<5x4x128x128xf32, #tpu.memory_space<vmem>>, vector<1x1x128x128xf32>
    %113 = vector.shape_cast %112 : vector<1x1x128x128xf32> to vector<128x128xf32>
    %cst_92 = arith.constant dense<0.000000e+00> : vector<128x128xf32>
    %114 = tpu.matmul %10, %113, %cst_92 {dimension_numbers = #tpu.dot_dimension_numbers<[1], [0], [0], [1], [0, 0, 1, 1], [], []>} : vector<128x128xf32>, vector<128x128xf32>, vector<128x128xf32> -> vector<128x128xf32>
    %115 = arith.addf %111, %114 : vector<128x128xf32>
    %c2_93 = arith.constant 2 : index
    %c0_94 = arith.constant 0 : index
    %c0_95 = arith.constant 0 : index
    %c0_96 = arith.constant 0 : index
    %116 = vector.load %arg5[%c2_93, %c0_94, %c0_95, %c0_96] : memref<4x4x1x128xf32, #tpu.memory_space<vmem>>, vector<1x1x1x128xf32>
    %117 = vector.shape_cast %116 : vector<1x1x1x128xf32> to vector<1x128xf32>
    %118 = vector.broadcast %117 : vector<1x128xf32> to vector<128x128xf32>
    %119 = arith.addf %115, %118 : vector<128x128xf32>
    %cst_97 = arith.constant 0.000000e+00 : f32
    %120 = vector.shape_cast %2 : vector<128x1xi1> to vector<128x1xi1>
    %121 = vector.broadcast %120 : vector<128x1xi1> to vector<128x128xi1>
    %122 = vector.broadcast %cst_97 : f32 to vector<128x128xf32>
    %123 = arith.select %121, %119, %122 : vector<128x128xi1>, vector<128x128xf32>
    %c2_98 = arith.constant 2 : index
    %c1_99 = arith.constant 1 : index
    %c0_100 = arith.constant 0 : index
    %c0_101 = arith.constant 0 : index
    %124 = vector.load %arg4[%c2_98, %c1_99, %c0_100, %c0_101] : memref<5x4x128x128xf32, #tpu.memory_space<vmem>>, vector<1x1x128x128xf32>
    %125 = vector.shape_cast %124 : vector<1x1x128x128xf32> to vector<128x128xf32>
    %cst_102 = arith.constant dense<0.000000e+00> : vector<128x128xf32>
    %126 = tpu.matmul %108, %125, %cst_102 {dimension_numbers = #tpu.dot_dimension_numbers<[1], [0], [0], [1], [0, 0, 1, 1], [], []>} : vector<128x128xf32>, vector<128x128xf32>, vector<128x128xf32> -> vector<128x128xf32>
    %c3_103 = arith.constant 3 : index
    %c1_104 = arith.constant 1 : index
    %c0_105 = arith.constant 0 : index
    %c0_106 = arith.constant 0 : index
    %127 = vector.load %arg4[%c3_103, %c1_104, %c0_105, %c0_106] : memref<5x4x128x128xf32, #tpu.memory_space<vmem>>, vector<1x1x128x128xf32>
    %128 = vector.shape_cast %127 : vector<1x1x128x128xf32> to vector<128x128xf32>
    %cst_107 = arith.constant dense<0.000000e+00> : vector<128x128xf32>
    %129 = tpu.matmul %10, %128, %cst_107 {dimension_numbers = #tpu.dot_dimension_numbers<[1], [0], [0], [1], [0, 0, 1, 1], [], []>} : vector<128x128xf32>, vector<128x128xf32>, vector<128x128xf32> -> vector<128x128xf32>
    %130 = arith.addf %126, %129 : vector<128x128xf32>
    %c2_108 = arith.constant 2 : index
    %c1_109 = arith.constant 1 : index
    %c0_110 = arith.constant 0 : index
    %c0_111 = arith.constant 0 : index
    %131 = vector.load %arg5[%c2_108, %c1_109, %c0_110, %c0_111] : memref<4x4x1x128xf32, #tpu.memory_space<vmem>>, vector<1x1x1x128xf32>
    %132 = vector.shape_cast %131 : vector<1x1x1x128xf32> to vector<1x128xf32>
    %133 = vector.broadcast %132 : vector<1x128xf32> to vector<128x128xf32>
    %134 = arith.addf %130, %133 : vector<128x128xf32>
    %cst_112 = arith.constant 0.000000e+00 : f32
    %135 = vector.shape_cast %4 : vector<128x1xi1> to vector<128x1xi1>
    %136 = vector.broadcast %135 : vector<128x1xi1> to vector<128x128xi1>
    %137 = vector.broadcast %cst_112 : f32 to vector<128x128xf32>
    %138 = arith.select %136, %134, %137 : vector<128x128xi1>, vector<128x128xf32>
    %139 = arith.addf %123, %138 : vector<128x128xf32>
    %c2_113 = arith.constant 2 : index
    %c2_114 = arith.constant 2 : index
    %c0_115 = arith.constant 0 : index
    %c0_116 = arith.constant 0 : index
    %140 = vector.load %arg4[%c2_113, %c2_114, %c0_115, %c0_116] : memref<5x4x128x128xf32, #tpu.memory_space<vmem>>, vector<1x1x128x128xf32>
    %141 = vector.shape_cast %140 : vector<1x1x128x128xf32> to vector<128x128xf32>
    %cst_117 = arith.constant dense<0.000000e+00> : vector<128x128xf32>
    %142 = tpu.matmul %108, %141, %cst_117 {dimension_numbers = #tpu.dot_dimension_numbers<[1], [0], [0], [1], [0, 0, 1, 1], [], []>} : vector<128x128xf32>, vector<128x128xf32>, vector<128x128xf32> -> vector<128x128xf32>
    %c3_118 = arith.constant 3 : index
    %c2_119 = arith.constant 2 : index
    %c0_120 = arith.constant 0 : index
    %c0_121 = arith.constant 0 : index
    %143 = vector.load %arg4[%c3_118, %c2_119, %c0_120, %c0_121] : memref<5x4x128x128xf32, #tpu.memory_space<vmem>>, vector<1x1x128x128xf32>
    %144 = vector.shape_cast %143 : vector<1x1x128x128xf32> to vector<128x128xf32>
    %cst_122 = arith.constant dense<0.000000e+00> : vector<128x128xf32>
    %145 = tpu.matmul %10, %144, %cst_122 {dimension_numbers = #tpu.dot_dimension_numbers<[1], [0], [0], [1], [0, 0, 1, 1], [], []>} : vector<128x128xf32>, vector<128x128xf32>, vector<128x128xf32> -> vector<128x128xf32>
    %146 = arith.addf %142, %145 : vector<128x128xf32>
    %c2_123 = arith.constant 2 : index
    %c2_124 = arith.constant 2 : index
    %c0_125 = arith.constant 0 : index
    %c0_126 = arith.constant 0 : index
    %147 = vector.load %arg5[%c2_123, %c2_124, %c0_125, %c0_126] : memref<4x4x1x128xf32, #tpu.memory_space<vmem>>, vector<1x1x1x128xf32>
    %148 = vector.shape_cast %147 : vector<1x1x1x128xf32> to vector<1x128xf32>
    %149 = vector.broadcast %148 : vector<1x128xf32> to vector<128x128xf32>
    %150 = arith.addf %146, %149 : vector<128x128xf32>
    %cst_127 = arith.constant 0.000000e+00 : f32
    %151 = vector.shape_cast %6 : vector<128x1xi1> to vector<128x1xi1>
    %152 = vector.broadcast %151 : vector<128x1xi1> to vector<128x128xi1>
    %153 = vector.broadcast %cst_127 : f32 to vector<128x128xf32>
    %154 = arith.select %152, %150, %153 : vector<128x128xi1>, vector<128x128xf32>
    %155 = arith.addf %139, %154 : vector<128x128xf32>
    %c2_128 = arith.constant 2 : index
    %c3_129 = arith.constant 3 : index
    %c0_130 = arith.constant 0 : index
    %c0_131 = arith.constant 0 : index
    %156 = vector.load %arg4[%c2_128, %c3_129, %c0_130, %c0_131] : memref<5x4x128x128xf32, #tpu.memory_space<vmem>>, vector<1x1x128x128xf32>
    %157 = vector.shape_cast %156 : vector<1x1x128x128xf32> to vector<128x128xf32>
    %cst_132 = arith.constant dense<0.000000e+00> : vector<128x128xf32>
    %158 = tpu.matmul %108, %157, %cst_132 {dimension_numbers = #tpu.dot_dimension_numbers<[1], [0], [0], [1], [0, 0, 1, 1], [], []>} : vector<128x128xf32>, vector<128x128xf32>, vector<128x128xf32> -> vector<128x128xf32>
    %c3_133 = arith.constant 3 : index
    %c3_134 = arith.constant 3 : index
    %c0_135 = arith.constant 0 : index
    %c0_136 = arith.constant 0 : index
    %159 = vector.load %arg4[%c3_133, %c3_134, %c0_135, %c0_136] : memref<5x4x128x128xf32, #tpu.memory_space<vmem>>, vector<1x1x128x128xf32>
    %160 = vector.shape_cast %159 : vector<1x1x128x128xf32> to vector<128x128xf32>
    %cst_137 = arith.constant dense<0.000000e+00> : vector<128x128xf32>
    %161 = tpu.matmul %10, %160, %cst_137 {dimension_numbers = #tpu.dot_dimension_numbers<[1], [0], [0], [1], [0, 0, 1, 1], [], []>} : vector<128x128xf32>, vector<128x128xf32>, vector<128x128xf32> -> vector<128x128xf32>
    %162 = arith.addf %158, %161 : vector<128x128xf32>
    %c2_138 = arith.constant 2 : index
    %c3_139 = arith.constant 3 : index
    %c0_140 = arith.constant 0 : index
    %c0_141 = arith.constant 0 : index
    %163 = vector.load %arg5[%c2_138, %c3_139, %c0_140, %c0_141] : memref<4x4x1x128xf32, #tpu.memory_space<vmem>>, vector<1x1x1x128xf32>
    %164 = vector.shape_cast %163 : vector<1x1x1x128xf32> to vector<1x128xf32>
    %165 = vector.broadcast %164 : vector<1x128xf32> to vector<128x128xf32>
    %166 = arith.addf %162, %165 : vector<128x128xf32>
    %cst_142 = arith.constant 0.000000e+00 : f32
    %167 = vector.shape_cast %8 : vector<128x1xi1> to vector<128x1xi1>
    %168 = vector.broadcast %167 : vector<128x1xi1> to vector<128x128xi1>
    %169 = vector.broadcast %cst_142 : f32 to vector<128x128xf32>
    %170 = arith.select %168, %166, %169 : vector<128x128xi1>, vector<128x128xf32>
    %171 = arith.addf %155, %170 : vector<128x128xf32>
    %cst_143 = arith.constant 0.000000e+00 : f32
    %172 = vector.broadcast %cst_143 : f32 to vector<128x128xf32>
    %173 = arith.maximumf %171, %172 : vector<128x128xf32>
    %c4 = arith.constant 4 : index
    %c0_144 = arith.constant 0 : index
    %c0_145 = arith.constant 0 : index
    %c0_146 = arith.constant 0 : index
    %174 = vector.load %arg4[%c4, %c0_144, %c0_145, %c0_146] : memref<5x4x128x128xf32, #tpu.memory_space<vmem>>, vector<1x1x128x128xf32>
    %175 = vector.shape_cast %174 : vector<1x1x128x128xf32> to vector<128x128xf32>
    %cst_147 = arith.constant dense<0.000000e+00> : vector<128x128xf32>
    %176 = tpu.matmul %173, %175, %cst_147 {dimension_numbers = #tpu.dot_dimension_numbers<[1], [0], [0], [1], [0, 0, 1, 1], [], []>} : vector<128x128xf32>, vector<128x128xf32>, vector<128x128xf32> -> vector<128x128xf32>
    %c3_148 = arith.constant 3 : index
    %c0_149 = arith.constant 0 : index
    %c0_150 = arith.constant 0 : index
    %c0_151 = arith.constant 0 : index
    %177 = vector.load %arg5[%c3_148, %c0_149, %c0_150, %c0_151] : memref<4x4x1x128xf32, #tpu.memory_space<vmem>>, vector<1x1x1x128xf32>
    %178 = vector.shape_cast %177 : vector<1x1x1x128xf32> to vector<1x128xf32>
    %179 = vector.broadcast %178 : vector<1x128xf32> to vector<128x128xf32>
    %180 = arith.addf %176, %179 : vector<128x128xf32>
    %cst_152 = arith.constant 0.000000e+00 : f32
    %181 = vector.shape_cast %2 : vector<128x1xi1> to vector<128x1xi1>
    %182 = vector.broadcast %181 : vector<128x1xi1> to vector<128x128xi1>
    %183 = vector.broadcast %cst_152 : f32 to vector<128x128xf32>
    %184 = arith.select %182, %180, %183 : vector<128x128xi1>, vector<128x128xf32>
    %c4_153 = arith.constant 4 : index
    %c1_154 = arith.constant 1 : index
    %c0_155 = arith.constant 0 : index
    %c0_156 = arith.constant 0 : index
    %185 = vector.load %arg4[%c4_153, %c1_154, %c0_155, %c0_156] : memref<5x4x128x128xf32, #tpu.memory_space<vmem>>, vector<1x1x128x128xf32>
    %186 = vector.shape_cast %185 : vector<1x1x128x128xf32> to vector<128x128xf32>
    %cst_157 = arith.constant dense<0.000000e+00> : vector<128x128xf32>
    %187 = tpu.matmul %173, %186, %cst_157 {dimension_numbers = #tpu.dot_dimension_numbers<[1], [0], [0], [1], [0, 0, 1, 1], [], []>} : vector<128x128xf32>, vector<128x128xf32>, vector<128x128xf32> -> vector<128x128xf32>
    %c3_158 = arith.constant 3 : index
    %c1_159 = arith.constant 1 : index
    %c0_160 = arith.constant 0 : index
    %c0_161 = arith.constant 0 : index
    %188 = vector.load %arg5[%c3_158, %c1_159, %c0_160, %c0_161] : memref<4x4x1x128xf32, #tpu.memory_space<vmem>>, vector<1x1x1x128xf32>
    %189 = vector.shape_cast %188 : vector<1x1x1x128xf32> to vector<1x128xf32>
    %190 = vector.broadcast %189 : vector<1x128xf32> to vector<128x128xf32>
    %191 = arith.addf %187, %190 : vector<128x128xf32>
    %cst_162 = arith.constant 0.000000e+00 : f32
    %192 = vector.shape_cast %4 : vector<128x1xi1> to vector<128x1xi1>
    %193 = vector.broadcast %192 : vector<128x1xi1> to vector<128x128xi1>
    %194 = vector.broadcast %cst_162 : f32 to vector<128x128xf32>
    %195 = arith.select %193, %191, %194 : vector<128x128xi1>, vector<128x128xf32>
    %196 = arith.addf %184, %195 : vector<128x128xf32>
    %c4_163 = arith.constant 4 : index
    %c2_164 = arith.constant 2 : index
    %c0_165 = arith.constant 0 : index
    %c0_166 = arith.constant 0 : index
    %197 = vector.load %arg4[%c4_163, %c2_164, %c0_165, %c0_166] : memref<5x4x128x128xf32, #tpu.memory_space<vmem>>, vector<1x1x128x128xf32>
    %198 = vector.shape_cast %197 : vector<1x1x128x128xf32> to vector<128x128xf32>
    %cst_167 = arith.constant dense<0.000000e+00> : vector<128x128xf32>
    %199 = tpu.matmul %173, %198, %cst_167 {dimension_numbers = #tpu.dot_dimension_numbers<[1], [0], [0], [1], [0, 0, 1, 1], [], []>} : vector<128x128xf32>, vector<128x128xf32>, vector<128x128xf32> -> vector<128x128xf32>
    %c3_168 = arith.constant 3 : index
    %c2_169 = arith.constant 2 : index
    %c0_170 = arith.constant 0 : index
    %c0_171 = arith.constant 0 : index
    %200 = vector.load %arg5[%c3_168, %c2_169, %c0_170, %c0_171] : memref<4x4x1x128xf32, #tpu.memory_space<vmem>>, vector<1x1x1x128xf32>
    %201 = vector.shape_cast %200 : vector<1x1x1x128xf32> to vector<1x128xf32>
    %202 = vector.broadcast %201 : vector<1x128xf32> to vector<128x128xf32>
    %203 = arith.addf %199, %202 : vector<128x128xf32>
    %cst_172 = arith.constant 0.000000e+00 : f32
    %204 = vector.shape_cast %6 : vector<128x1xi1> to vector<128x1xi1>
    %205 = vector.broadcast %204 : vector<128x1xi1> to vector<128x128xi1>
    %206 = vector.broadcast %cst_172 : f32 to vector<128x128xf32>
    %207 = arith.select %205, %203, %206 : vector<128x128xi1>, vector<128x128xf32>
    %208 = arith.addf %196, %207 : vector<128x128xf32>
    %c4_173 = arith.constant 4 : index
    %c3_174 = arith.constant 3 : index
    %c0_175 = arith.constant 0 : index
    %c0_176 = arith.constant 0 : index
    %209 = vector.load %arg4[%c4_173, %c3_174, %c0_175, %c0_176] : memref<5x4x128x128xf32, #tpu.memory_space<vmem>>, vector<1x1x128x128xf32>
    %210 = vector.shape_cast %209 : vector<1x1x128x128xf32> to vector<128x128xf32>
    %cst_177 = arith.constant dense<0.000000e+00> : vector<128x128xf32>
    %211 = tpu.matmul %173, %210, %cst_177 {dimension_numbers = #tpu.dot_dimension_numbers<[1], [0], [0], [1], [0, 0, 1, 1], [], []>} : vector<128x128xf32>, vector<128x128xf32>, vector<128x128xf32> -> vector<128x128xf32>
    %c3_178 = arith.constant 3 : index
    %c3_179 = arith.constant 3 : index
    %c0_180 = arith.constant 0 : index
    %c0_181 = arith.constant 0 : index
    %212 = vector.load %arg5[%c3_178, %c3_179, %c0_180, %c0_181] : memref<4x4x1x128xf32, #tpu.memory_space<vmem>>, vector<1x1x1x128xf32>
    %213 = vector.shape_cast %212 : vector<1x1x1x128xf32> to vector<1x128xf32>
    %214 = vector.broadcast %213 : vector<1x128xf32> to vector<128x128xf32>
    %215 = arith.addf %211, %214 : vector<128x128xf32>
    %cst_182 = arith.constant 0.000000e+00 : f32
    %216 = vector.shape_cast %8 : vector<128x1xi1> to vector<128x1xi1>
    %217 = vector.broadcast %216 : vector<128x1xi1> to vector<128x128xi1>
    %218 = vector.broadcast %cst_182 : f32 to vector<128x128xf32>
    %219 = arith.select %217, %215, %218 : vector<128x128xi1>, vector<128x128xf32>
    %220 = arith.addf %208, %219 : vector<128x128xf32>
    %cst_183 = arith.constant 0.000000e+00 : f32
    %221 = vector.broadcast %cst_183 : f32 to vector<128x128xf32>
    %222 = arith.maximumf %220, %221 : vector<128x128xf32>
    %c0_184 = arith.constant 0 : index
    %c0_185 = arith.constant 0 : index
    %223 = vector.load %arg6[%c0_184, %c0_185] : memref<128x128xf32, #tpu.memory_space<vmem>>, vector<128x128xf32>
    tpu.vector_store %arg6[%c0_184, %c0_185], %222 {strides = array<i32>} : memref<128x128xf32, #tpu.memory_space<vmem>>, vector<128x128xf32>,
    return
  }
  func.func @transform_0(%arg0: i32) -> (i32, i32) {
    %c0_i32 = arith.constant 0 : i32
    %c0_i32_0 = arith.constant 0 : i32
    return %arg0, %c0_i32 : i32, i32
  }
  func.func @transform_1(%arg0: i32) -> (i32, i32) {
    %c0_i32 = arith.constant 0 : i32
    %c0_i32_0 = arith.constant 0 : i32
    return %arg0, %c0_i32 : i32, i32
  }
  func.func @transform_2(%arg0: i32) -> (i32, i32) {
    %c0_i32 = arith.constant 0 : i32
    %c0_i32_0 = arith.constant 0 : i32
    return %arg0, %c0_i32 : i32, i32
  }
  func.func @transform_3(%arg0: i32) -> (i32, i32, i32, i32) {
    %c0_i32 = arith.constant 0 : i32
    %c0_i32_0 = arith.constant 0 : i32
    %c0_i32_1 = arith.constant 0 : i32
    %c0_i32_2 = arith.constant 0 : i32
    %c0_i32_3 = arith.constant 0 : i32
    return %c0_i32, %c0_i32_0, %c0_i32_1, %c0_i32_2 : i32, i32, i32, i32
  }
  func.func @transform_4(%arg0: i32) -> (i32, i32, i32, i32) {
    %c0_i32 = arith.constant 0 : i32
    %c0_i32_0 = arith.constant 0 : i32
    %c0_i32_1 = arith.constant 0 : i32
    %c0_i32_2 = arith.constant 0 : i32
    %c0_i32_3 = arith.constant 0 : i32
    return %c0_i32, %c0_i32_0, %c0_i32_1, %c0_i32_2 : i32, i32, i32, i32
  }
  func.func @transform_5(%arg0: i32) -> (i32, i32) {
    %c0_i32 = arith.constant 0 : i32
    %c0_i32_0 = arith.constant 0 : i32
    return %arg0, %c0_i32 : i32, i32
  }
}

</mosaic_0001>

<bundles_post_ra>
// kernel: mlp_with_input_skips_forward.1
= control target key start
LH: loop header
LB: loop body
LE: loop exit
PB: predicated region body
PF: predicated region fallthrough
CT: control target
= control target key end

     0   :  { %s6902_s18 = smov 0   ;;  %s10304_s0 = inlined_call_operand.vmem [shape: s32[256,1], index: 0, kind: input, shape index: {}]   ;;  %s10305_s1 = inlined_call_operand.vmem [shape: f32[256,128], index: 1, kind: input, shape index: {}]   ;;  %s10306_s2 = inlined_call_operand.vmem [shape: f32[256,128], index: 2, kind: input, shape index: {}]   ;;  %s10307_s3 = inlined_call_operand.vmem [shape: f32[5,4,128,128], index: 3, kind: input, shape index: {}]   ;;  %s10308_s4 = inlined_call_operand.vmem [shape: f32[4,4,1,128], index: 4, kind: input, shape index: {}]   ;;  %s10309_s5 = inlined_call_operand.vmem [shape: f32[256,128], index: 5, kind: output, shape index: {}]  }
   0x1 LB: > { %s4742_s19 = sadd.s32 4294967295, %s6869_s18   ;;  %p4746_p0 = scmp.ge.s32.totalorder %s6869_s18, 1  ;;  %s6869_s18 = sphi %s6902_s18, %s15_s18  }
   0x2   : > { %p210_p1 = scmp.lt.s32.totalorder %s6869_s18, 3 }
   0x4   : > { %p211_p2 = pnand %p4746_p0, %p210_p1 }
   0x6   : > { %214 = sbr.rel (%p211_p2) target bundleno = 1157 (0x485), region = 40 }
   0xb   : > { %v399_v0 = vld [vmem:[%s10307_s3 + $0x78] sm:$0xff]  ;;  %v398_v2 = vld [vmem:[%s10307_s3 + $0x70] sm:$0xff]  ;;  %s4747_s26 = sshll.u32 %s4742_s19, 4  ;;  %v397_v4 = vld [vmem:[%s10307_s3 + $0x68] sm:$0xff]  ;;  %v6871_v12 = vmov 0  }
   0xc   : > { %v4771_v1 = vld [vmem:[%s10307_s3 + $0xf8] sm:$0xff]  ;;  %5732 = vmatprep.subr.mxu0 %v399_v0  ;;  %v4770_v3 = vld [vmem:[%s10307_s3 + $0xf0] sm:$0xff]  ;;  %p249_p3 = scmp.lt.s32.totalorder %s4747_s26, 31  ;;  %v4769_v5 = vld [vmem:[%s10307_s3 + $0xe8] sm:$0xff]  ;;  %6862 = vset.pattern.permute.xlu1 %v6871_v12 }
   0xd   : > { %5788 = vmatprep.subr.mxu1 %v4771_v1  ;;  %5733 = vmatpush3.msra.mxu0 %v399_v0  ;;  %v396_v6 = vld [vmem:[%s10307_s3 + $0x60] sm:$0xff]  ;;  %v4767_v8 = vld [vmem:[%s10307_s3 + $0xd8] sm:$0xff]  ;;  %v394_v15 = vld [vmem:[%s10307_s3 + $0x50] sm:$0xff] }
   0xe   : > { %5789 = vmatpush3.msra.mxu1 %v4771_v1  ;;  %5734 = vmatprep.subr.mxu0 %v398_v2  ;;  %s10970_s26 = smov (!%p249_p3, %s4747_s26), 31  ;;  %v4768_v7 = vld [vmem:[%s10307_s3 + $0xe0] sm:$0xff]  ;;  %v395_v9 = vld [vmem:[%s10307_s3 + $0x58] sm:$0xff]  ;;  %v4766_v16 = vld [vmem:[%s10307_s3 + $0xd0] sm:$0xff] }
   0xf   : > { %5790 = vmatprep.subr.mxu1 %v4770_v3  ;;  %5735 = vmatpush3.msra.mxu0 %v398_v2  ;;  %s6934_s12 = sshll.u32 %s10970_s26, 3  ;;  %v393_v17 = vld [vmem:[%s10307_s3 + $0x48] sm:$0xff]  ;;  %v392_v21 = vld [vmem:[%s10307_s3 + $0x40] sm:$0xff]  ;;  %v391_v23 = vld [vmem:[%s10307_s3 + $0x38] sm:$0xff] }
  0x10   : > { %5791 = vmatpush3.msra.mxu1 %v4770_v3  ;;  %5736 = vmatprep.subr.mxu0 %v397_v4  ;;  %s6943_s17 = scalar_lea.vmem %s10304_s0, %s6934_s12  ;;  %v4765_v18 = vld [vmem:[%s10307_s3 + $0xc8] sm:$0xff]  ;;  %v4764_v22 = vld [vmem:[%s10307_s3 + $0xc0] sm:$0xff]  ;;  %v4763_v24 = vld [vmem:[%s10307_s3 + $0xb8] sm:$0xff]  ;;  %s7094_s19 = scalar_lea.vmem %s10305_s1, %s6934_s12 }
  0x11   : > { %5792 = vmatprep.subr.mxu1 %v4769_v5  ;;  %5737 = vmatpush3.msra.mxu0 %v397_v4  ;;  %v6949_v10 = vld [vmem:[%s6943_s17 + $0x8] sm:$0xff]  ;;  %v6952_v11 = vld [vmem:[%s6943_s17] sm:$0xff]  ;;  %v6991_v25 = vld [vmem:[%s6943_s17 + $0x10] sm:$0xff]  ;;  %s8413_s13 = scalar_lea.vmem %s10306_s2, %s6934_s12  ;;  %s10162_s16 = scalar_lea.vmem %s10309_s5, %s6934_s12 }
  0x12   : > { %5793 = vmatpush3.msra.mxu1 %v4769_v5  ;;  %5738 = vmatprep.subr.mxu0 %v396_v6  ;;  %vm289_vm0 = vcmp.eq.s32.totalorder %v6949_v10, 0  ;;  %vm288_vm1 = vcmp.eq.s32.totalorder %v6952_v11, 0  ;;  %vm305_vm2 = vcmp.eq.s32.totalorder %v6949_v10, 1  ;;  %vm304_vm3 = vcmp.eq.s32.totalorder %v6952_v11, 1  ;;  %v390_v28 = vld [vmem:[%s10307_s3 + $0x30] sm:$0xff]  ;;  %v7002_v30 = vld [vmem:[%s6943_s17 + $0x18] sm:$0xff] }
  0x13   : > { %5794 = vmatprep.subr.mxu1 %v4768_v7  ;;  %5739 = vmatpush3.msra.mxu0 %v396_v6  ;;  %v553_v13 = vsel %vm289_vm0, 1, %v6871_v12  ;;  %v552_v14 = vsel %vm288_vm1, 1, %v6871_v12  ;;  %v819_v19 = vsel %vm305_vm2, 1, %v6871_v12  ;;  %v818_v20 = vsel %vm304_vm3, 1, %v6871_v12  ;;  %v4762_v29 = vld [vmem:[%s10307_s3 + $0xb0] sm:$0xff]  ;;  %v389_v31 = vld [vmem:[%s10307_s3 + $0x28] sm:$0xff] }
  0x14   : > { %5795 = vmatpush3.msra.mxu1 %v4768_v7  ;;  %6861 = vset.pattern.permute.xlu0 %v6871_v12  ;;  %vm321_vm4 = vcmp.eq.s32.totalorder %v6949_v10, 2  ;;  %vm320_vm5 = vcmp.eq.s32.totalorder %v6952_v11, 2  ;;  %vm306_vm6 = vcmp.eq.s32.totalorder %v6991_v25, 1  ;;  %vm290_vm7 = vcmp.eq.s32.totalorder %v6991_v25, 0  ;;  %v4761_v32 = vld [vmem:[%s10307_s3 + $0xa8] sm:$0xff]  ;;  %v388_v35 = vld [vmem:[%s10307_s3 + $0x20] sm:$0xff] }
  0x15   : > { %5796 = vmatprep.subr.mxu1 %v4767_v8  ;;  %5740 = vmatprep.subr.mxu0 %v395_v9  ;;  %v1101_v26 = vsel %vm321_vm4, 1, %v6871_v12  ;;  %v1100_v27 = vsel %vm320_vm5, 1, %v6871_v12  ;;  %vm291_vm8 = vcmp.eq.s32.totalorder %v7002_v30, 0  ;;  %vm336_vm9 = vcmp.eq.s32.totalorder %v6952_v11, 3  ;;  %v4760_v36 = vld [vmem:[%s10307_s3 + $0xa0] sm:$0xff]  ;;  %v278_v39 = vld [vmem:[%s6943_s17 + $0x30] sm:$0xff] }
  0x16   : > { %5741 = vmatpush3.msra.mxu0 %v395_v9  ;;  %5797 = vmatpush3.msra.mxu1 %v4767_v8  ;;  %v820_v33 = vsel %vm306_vm6, 1, %v6871_v12  ;;  %v554_v34 = vsel %vm290_vm7, 1, %v6871_v12  ;;  %v555_v37 = vsel %vm291_vm8, 1, %v6871_v12  ;;  %v1382_v38 = vsel %vm336_vm9, 1, %v6871_v12  ;;  %v387_v40 = vld [vmem:[%s10307_s3 + $0x18] sm:$0xff]  ;;  %v386_v46 = vld [vmem:[%s10307_s3 + $0x10] sm:$0xff] }
  0x17   : > { %572 = vperm.xlu1 %6862, %v553_v13   ;;  %569 = vperm.xlu0 %6861, %v552_v14   ;;  %vm337_vm10 = vcmp.eq.s32.totalorder %v6949_v10, 3  ;;  %vm307_vm11 = vcmp.eq.s32.totalorder %v7002_v30, 1  ;;  %v4759_v41 = vld [vmem:[%s10307_s3 + $0x98] sm:$0xff]  ;;  %vm323_vm12 = vcmp.eq.s32.totalorder %v7002_v30, 2  ;;  %vm310_vm13 = vcmp.eq.s32.totalorder %v278_v39, 1  ;;  %v4758_v48 = vld [vmem:[%s10307_s3 + $0x90] sm:$0xff] }
  0x18   : > { %5742 = vmatprep.subr.mxu0 %v394_v15  ;;  %5798 = vmatprep.subr.mxu1 %v4766_v16  ;;  %vm294_vm14 = vcmp.eq.s32.totalorder %v278_v39, 0  ;;  %vm326_vm15 = vcmp.eq.s32.totalorder %v278_v39, 2  ;;  %vm322_vm0 = vcmp.eq.s32.totalorder %v6991_v25, 2  ;;  %v7036_v42 = vsel %vm310_vm13, 1, %v6871_v12  ;;  %v279_v44 = vld [vmem:[%s6943_s17 + $0x38] sm:$0xff]  ;;  %v385_v49 = vld [vmem:[%s10307_s3 + $0x8] sm:$0xff] }
  0x19   : > { %5743 = vmatpush3.msra.mxu0 %v394_v15  ;;  %5799 = vmatpush3.msra.mxu1 %v4766_v16  ;;  %v7039_v43 = vsel %vm294_vm14, 1, %v6871_v12  ;;  %v7043_v45 = vsel %vm326_vm15, 1, %v6871_v12  ;;  %v1383_v47 = vsel %vm337_vm10, 1, %v6871_v12  ;;  %vm295_vm1 = vcmp.eq.s32.totalorder %v279_v44, 0  ;;  %v280_v56 = vld [vmem:[%s6943_s17 + $0x40] sm:$0xff]  ;;  %v281_v57 = vld [vmem:[%s6943_s17 + $0x48] sm:$0xff] }
  0x1a   : > { %5744 = vmatprep.subr.mxu0 %v393_v17  ;;  %5800 = vmatprep.subr.mxu1 %v4765_v18  ;;  %vm311_vm2 = vcmp.eq.s32.totalorder %v279_v44, 1  ;;  %vm327_vm3 = vcmp.eq.s32.totalorder %v279_v44, 2  ;;  %v821_v50 = vsel %vm307_vm11, 1, %v6871_v12  ;;  %v7061_v51 = vsel %vm295_vm1, 1, %v6871_v12  ;;  %v4757_v58 = vld [vmem:[%s10307_s3 + $0x88] sm:$0xff]  ;;  %v7088_v60 = vld [vmem:[%s6943_s17 + $0x50] sm:$0xff] }
  0x1b   : > { %5745 = vmatpush3.msra.mxu0 %v393_v17  ;;  %5801 = vmatpush3.msra.mxu1 %v4765_v18  ;;  %v7064_v52 = vsel %vm311_vm2, 1, %v6871_v12  ;;  %v7067_v53 = vsel %vm327_vm3, 1, %v6871_v12  ;;  %v7072_v54 = vsel %vm323_vm12, 1, %v6871_v12  ;;  %v7077_v55 = vsel %vm322_vm0, 1, %v6871_v12  ;;  %v283_v1 = vld [vmem:[%s6943_s17 + $0x58] sm:$0xff]  ;;  %v384_v2 = vld [vmem:[%s10307_s3] sm:$0xff] }
  0x1c   : > { %838 = vperm.xlu1 %6862, %v819_v19   ;;  %835 = vperm.xlu0 %6861, %v818_v20   ;;  %vm342_vm4 = vcmp.eq.s32.totalorder %v278_v39, 3  ;;  %vm343_vm5 = vcmp.eq.s32.totalorder %v279_v44, 3  ;;  %vm312_vm6 = vcmp.eq.s32.totalorder %v280_v56, 1  ;;  %vm296_vm7 = vcmp.eq.s32.totalorder %v280_v56, 0  ;;  %v7113_v3 = vld [vmem:[%s6943_s17 + $0x20] sm:$0xff]  ;;  %v285_v16 = vld [vmem:[%s6943_s17 + $0x68] sm:$0xff] }
  0x1d   : > { %5746 = vmatprep.subr.mxu0 %v392_v21  ;;  %5802 = vmatprep.subr.mxu1 %v4764_v22  ;;  %vm297_vm8 = vcmp.eq.s32.totalorder %v281_v57, 0  ;;  %v7085_v59 = vsel %vm342_vm4, 1, %v6871_v12  ;;  %v7097_v61 = vsel %vm312_vm6, 1, %v6871_v12  ;;  %v7100_v62 = vsel %vm296_vm7, 1, %v6871_v12  ;;  %v4756_v4 = vld [vmem:[%s10307_s3 + $0x80] sm:$0xff]  ;;  %v7154_v17 = vld [vmem:[%s7094_s19 + $0x8] sm:$0xff] }
  0x1e   : > { %5747 = vmatpush3.msra.mxu0 %v392_v21  ;;  %5803 = vmatpush3.msra.mxu1 %v4764_v22  ;;  %v7103_v63 = vsel %vm297_vm8, 1, %v6871_v12  ;;  %v7106_v0 = vsel %vm343_vm5, 1, %v6871_v12  ;;  %vm313_vm9 = vcmp.eq.s32.totalorder %v281_v57, 1  ;;  %vm329_vm10 = vcmp.eq.s32.totalorder %v281_v57, 2  ;;  %v7132_v9 = vld [vmem:[%s6943_s17 + $0x60] sm:$0xff]  ;;  %v4789_v18 = vld [vmem:[%s10307_s3 + $0x178] sm:$0xff] }
  0x1f   : > { %5748 = vmatprep.subr.mxu0 %v391_v23  ;;  %5804 = vmatprep.subr.mxu1 %v4763_v24  ;;  %vm328_vm11 = vcmp.eq.s32.totalorder %v280_v56, 2  ;;  %vm314_vm12 = vcmp.eq.s32.totalorder %v7088_v60, 1  ;;  %v7120_v5 = vsel %vm313_vm9, 1, %v6871_v12  ;;  %v7123_v6 = vsel %vm329_vm10, 1, %v6871_v12  ;;  %v7135_v10 = vld [vmem:[%s7094_s19] sm:$0xff]  ;;  %v4807_v19 = vld [vmem:[%s10307_s3 + $0x1f8] sm:$0xff] }
  0x20   : > { %5749 = vmatpush3.msra.mxu0 %v391_v23  ;;  %5805 = vmatpush3.msra.mxu1 %v4763_v24  ;;  %v7126_v7 = vsel %vm328_vm11, 1, %v6871_v12  ;;  %v7129_v8 = vsel %vm314_vm12, 1, %v6871_v12  ;;  %vm298_vm13 = vcmp.eq.s32.totalorder %v7088_v60, 0  ;;  %vm299_vm14 = vcmp.eq.s32.totalorder %v283_v1, 0  ;;  %v7178_v24 = vld [vmem:[%s6943_s17 + $0x70] sm:$0xff]  ;;  %v7226_v39 = vld [vmem:[%s7094_s19 + $0x18] sm:$0xff] }
  0x21   : > { %1120 = vperm.xlu1 %6862, %v1101_v26   ;;  %1117 = vperm.xlu0 %6861, %v1100_v27   ;;  %vm344_vm15 = vcmp.eq.s32.totalorder %v280_v56, 3  ;;  %vm345_vm0 = vcmp.eq.s32.totalorder %v281_v57, 3  ;;  %vm308_vm1 = vcmp.eq.s32.totalorder %v7113_v3, 1  ;;  %vm292_vm2 = vcmp.eq.s32.totalorder %v7113_v3, 0 }
  0x22   : > { %5750 = vmatprep.subr.mxu0 %v390_v28  ;;  %5806 = vmatprep.subr.mxu1 %v4762_v29  ;;  %v7141_v11 = vsel %vm298_vm13, 1, %v6871_v12  ;;  %v7144_v13 = vsel %vm299_vm14, 1, %v6871_v12  ;;  %v7147_v14 = vsel %vm344_vm15, 1, %v6871_v12  ;;  %v7150_v15 = vsel %vm345_vm0, 1, %v6871_v12 }
  0x23   : > { %5751 = vmatpush3.msra.mxu0 %v390_v28  ;;  %5807 = vmatpush3.msra.mxu1 %v4762_v29  ;;  %vm315_vm3 = vcmp.eq.s32.totalorder %v283_v1, 1  ;;  %vm331_vm4 = vcmp.eq.s32.totalorder %v283_v1, 2  ;;  %vm330_vm5 = vcmp.eq.s32.totalorder %v7088_v60, 2  ;;  %vm316_vm6 = vcmp.eq.s32.totalorder %v7132_v9, 1 }
  0x24   : > { %5752 = vmatprep.subr.mxu0 %v389_v31  ;;  %5808 = vmatprep.subr.mxu1 %v4761_v32  ;;  %v7166_v20 = vsel %vm315_vm3, 1, %v6871_v12  ;;  %v7169_v21 = vsel %vm331_vm4, 1, %v6871_v12  ;;  %v7172_v22 = vsel %vm330_vm5, 1, %v6871_v12  ;;  %v7175_v23 = vsel %vm316_vm6, 1, %v6871_v12 }
  0x25   : > { %5753 = vmatpush3.msra.mxu0 %v389_v31  ;;  %5809 = vmatpush3.msra.mxu1 %v4761_v32  ;;  %vm300_vm7 = vcmp.eq.s32.totalorder %v7132_v9, 0  ;;  %vm301_vm8 = vcmp.eq.s32.totalorder %v285_v16, 0  ;;  %vm346_vm9 = vcmp.eq.s32.totalorder %v7088_v60, 3  ;;  %vm347_vm10 = vcmp.eq.s32.totalorder %v283_v1, 3  ;;  %v287_v31 = vld [vmem:[%s6943_s17 + $0x78] sm:$0xff]  ;;  %v4788_v32 = vld [vmem:[%s10307_s3 + $0x170] sm:$0xff] }
  0x26   : > { %841 = vperm.xlu1 %6862, %v820_v33   ;;  %575 = vperm.xlu0 %6861, %v554_v34   ;;  %v7186_v26 = vsel %vm300_vm7, 1, %v6871_v12  ;;  %v7189_v27 = vsel %vm301_vm8, 1, %v6871_v12  ;;  %v7192_v28 = vsel %vm346_vm9, 1, %v6871_v12  ;;  %v7195_v29 = vsel %vm347_vm10, 1, %v6871_v12  ;;  %v4806_v33 = vld [vmem:[%s10307_s3 + $0x1f0] sm:$0xff]  ;;  %v4804_v60 = vld [vmem:[%s10307_s3 + $0x1e0] sm:$0xff] }
  0x27   : > { %5754 = vmatprep.subr.mxu0 %v388_v35  ;;  %5810 = vmatprep.subr.mxu1 %v4760_v36  ;;  %vm317_vm11 = vcmp.eq.s32.totalorder %v285_v16, 1  ;;  %vm333_vm12 = vcmp.eq.s32.totalorder %v285_v16, 2  ;;  %vm332_vm13 = vcmp.eq.s32.totalorder %v7132_v9, 2  ;;  %vm318_vm14 = vcmp.eq.s32.totalorder %v7178_v24, 1  ;;  %v7207_v34 = vld [vmem:[%s7094_s19 + $0x10] sm:$0xff]  ;;  %v7277_v1 = vld [vmem:[%s6943_s17 + $0x28] sm:$0xff] }
  0x28   : > { %5755 = vmatpush3.msra.mxu0 %v388_v35  ;;  %5811 = vmatpush3.msra.mxu1 %v4760_v36  ;;  %v7210_v35 = vsel %vm317_vm11, 1, %v6871_v12  ;;  %v7213_v36 = vsel %vm333_vm12, 1, %v6871_v12  ;;  %vm302_vm15 = vcmp.eq.s32.totalorder %v7178_v24, 0  ;;  %vm303_vm0 = vcmp.eq.s32.totalorder %v287_v31, 0 }
  0x29   : > { %5756 = vmatprep.subr.mxu0 %v387_v40  ;;  %5812 = vmatprep.subr.mxu1 %v4759_v41  ;;  %vm348_vm3 = vcmp.eq.s32.totalorder %v7132_v9, 3  ;;  %vm349_vm4 = vcmp.eq.s32.totalorder %v285_v16, 3  ;;  %vm319_vm5 = vcmp.eq.s32.totalorder %v287_v31, 1  ;;  %vm335_vm6 = vcmp.eq.s32.totalorder %v287_v31, 2  ;;  %v7286_v9 = vld [vmem:[%s7094_s19 + $0x28] sm:$0xff]  ;;  %v4785_v16 = vld [vmem:[%s10307_s3 + $0x158] sm:$0xff] }
  0x2a   : > { %5757 = vmatpush3.msra.mxu0 %v387_v40  ;;  %5813 = vmatpush3.msra.mxu1 %v4759_v41  ;;  %v7229_v40 = vsel %vm302_vm15, 1, %v6871_v12  ;;  %v7232_v41 = vsel %vm303_vm0, 1, %v6871_v12  ;;  %v7235_v44 = vsel %vm348_vm3, 1, %v6871_v12  ;;  %vm334_vm7 = vcmp.eq.s32.totalorder %v7178_v24, 2 }
  0x2b   : > { %578 = vperm.xlu1 %6862, %v555_v37   ;;  %1399 = vperm.xlu0 %6861, %v1382_v38   ;;  %v7216_v37 = vsel %vm332_vm13, 1, %v6871_v12  ;;  %v7219_v38 = vsel %vm318_vm14, 1, %v6871_v12  ;;  %vm351_vm8 = vcmp.eq.s32.totalorder %v287_v31, 3  ;;  %v822_v56 = vsel %vm308_vm1, 1, %v6871_v12  ;;  %v4802_v31 = vld [vmem:[%s10307_s3 + $0x1d0] sm:$0xff] }
  0x2c   : > { %5758 = vmatprep.subr.mxu0 %v386_v46  ;;  %5814 = vmatprep.subr.mxu1 %v4758_v48  ;;  %v556_v57 = vsel %vm292_vm2, 1, %v6871_v12  ;;  %vm350_vm9 = vcmp.eq.s32.totalorder %v7178_v24, 3  ;;  %vm293_vm1 = vcmp.eq.s32.totalorder %v7277_v1, 0  ;;  %vm338_vm2 = vcmp.eq.s32.totalorder %v6991_v25, 3  ;;  %v4784_v24 = vld [vmem:[%s10307_s3 + $0x150] sm:$0xff] }
  0x2d   : > { %5759 = vmatpush3.msra.mxu0 %v386_v46  ;;  %5815 = vmatpush3.msra.mxu1 %v4758_v48  ;;  %v7238_v46 = vsel %vm349_vm4, 1, %v6871_v12  ;;  %v4805_v48 = vld [vmem:[%s10307_s3 + $0x1e8] sm:$0xff]  ;;  %v557_v25 = vsel %vm293_vm1, 1, %v6871_v12  ;;  %vm339_vm10 = vcmp.eq.s32.totalorder %v7002_v30, 3  ;;  %vm309_vm11 = vcmp.eq.s32.totalorder %v7277_v1, 1 }
  0x2e   : > { %5760 = vmatprep.subr.mxu0 %v385_v49  ;;  %5816 = vmatprep.subr.mxu1 %v4757_v58  ;;  %v1385_v30 = vsel %vm339_vm10, 1, %v6871_v12  ;;  %vm325_vm12 = vcmp.eq.s32.totalorder %v7277_v1, 2  ;;  %vm324_vm13 = vcmp.eq.s32.totalorder %v7113_v3, 2  ;;  %vm340_vm14 = vcmp.eq.s32.totalorder %v7113_v3, 3  ;;  %v4776_v3 = vld [vmem:[%s10307_s3 + $0x110] sm:$0xff] }
  0x2f   : > { %5761 = vmatpush3.msra.mxu0 %v385_v49  ;;  %5817 = vmatpush3.msra.mxu1 %v4757_v58  ;;  %v7250_v49 = vsel %vm319_vm5, 1, %v6871_v12  ;;  %v4786_v58 = vld [vmem:[%s10307_s3 + $0x160] sm:$0xff]  ;;  %vm341_vm15 = vcmp.eq.s32.totalorder %v7277_v1, 3 }
  0x30   : > { %1402 = vperm.xlu1 %6862, %v1383_v47   ;;  %844 = vperm.xlu0 %6861, %v821_v50   ;;  %v4787_v47 = vld [vmem:[%s10307_s3 + $0x168] sm:$0xff]  ;;  %v7253_v50 = vsel %vm335_vm6, 1, %v6871_v12  ;;  %v4774_v1 = vld [vmem:[%s10307_s3 + $0x100] sm:$0xff] }
  0x31   : > { %5762 = vmatprep.subr.mxu0 %v384_v2  ;;  %5818 = vmatprep.subr.mxu1 %v4756_v4 }
  0x32   : > { %5763 = vmatpush3.msra.mxu0 %v384_v2  ;;  %5764 = vmatprep.mubr.f32.mxu0 %v7135_v10  ;;  %v7280_v2 = vsel %vm350_vm9, 1, %v6871_v12 }
  0x33   : > { %5819 = vmatpush3.msra.mxu1 %v4756_v4  ;;  %5820 = vmatprep.mubr.f32.mxu1 %v7135_v10  ;;  %v7283_v4 = vld [vmem:[%s7094_s19 + $0x20] sm:$0xff] }
  0x34   : > { %5765 = vmatmul.mubr.f32.vlgmr.msra.gmra.mxu0 %v7154_v17  ;;  %5821 = vmatmul.mubr.f32.vlgmr.msra.gmra.mxu1 %v7154_v17 }
  0x35   : > { %5844 = vmatprep.subr.mxu0 %v4789_v18  ;;  %5900 = vmatprep.subr.mxu1 %v4807_v19 }
  0x36   : > { %5845 = vmatpush3.msra.mxu0 %v4789_v18  ;;  %5901 = vmatpush3.msra.mxu1 %v4807_v19  ;;  %v4803_v18 = vld [vmem:[%s10307_s3 + $0x1d8] sm:$0xff]  ;;  %v1384_v19 = vsel %vm338_vm2, 1, %v6871_v12 }
  0x37   : > { %1126 = vperm.xlu1 %6862, %v7072_v54   ;;  %1123 = vperm.xlu0 %6861, %v7077_v55   ;;  %v7256_v54 = vsel %vm334_vm7, 1, %v6871_v12  ;;  %v7259_v55 = vsel %vm351_vm8, 1, %v6871_v12 }
  0x38   : > { %5846 = vmatprep.subr.mxu0 %v4788_v32  ;;  %5902 = vmatprep.subr.mxu1 %v4806_v33 }
  0x39   : > { %5767 = vmatprep.mubr.f32.mxu0 %v7207_v34  ;;  %5823 = vmatprep.mubr.f32.mxu1 %v7207_v34 }
  0x3a   : > { %5847 = vmatpush3.msra.mxu0 %v4788_v32  ;;  %5903 = vmatpush3.msra.mxu1 %v4806_v33  ;;  %v7309_v32 = vld [vmem:[%s7094_s19 + $0x30] sm:$0xff]  ;;  %v7312_v33 = vld [vmem:[%s7094_s19 + $0x38] sm:$0xff] }
  0x3b   : > { %5768 = vmatmul.mubr.f32.gmra.mxu0 %v7226_v39  ;;  %5824 = vmatmul.mubr.f32.gmra.mxu1 %v7226_v39 }
  0x3c   : > { %5848 = vmatprep.subr.mxu0 %v4787_v47  ;;  %5904 = vmatprep.subr.mxu1 %v4805_v48 }
  0x3d   : > { %5849 = vmatpush3.msra.mxu0 %v4787_v47  ;;  %5905 = vmatpush3.msra.mxu1 %v4805_v48  ;;  %v4783_v47 = vld [vmem:[%s10307_s3 + $0x148] sm:$0xff] }
  0x3e   : > { %847 = vperm.xlu1 %6862, %v822_v56   ;;  %581 = vperm.xlu0 %6861, %v556_v57   ;;  %v4801_v48 = vld [vmem:[%s10307_s3 + $0x1c8] sm:$0xff]  ;;  %v823_v56 = vsel %vm309_vm11, 1, %v6871_v12  ;;  %v4782_v57 = vld [vmem:[%s10307_s3 + $0x140] sm:$0xff] }
  0x3f   : > { %5850 = vmatprep.subr.mxu0 %v4786_v58  ;;  %5906 = vmatprep.subr.mxu1 %v4804_v60 }
  0x40   : > { %5770 = vmatprep.mubr.f32.mxu0 %v7283_v4  ;;  %5826 = vmatprep.mubr.f32.mxu1 %v7283_v4 }
  0x41   : > { %5851 = vmatpush3.msra.mxu0 %v4786_v58  ;;  %5907 = vmatpush3.msra.mxu1 %v4804_v60  ;;  %v4800_v58 = vld [vmem:[%s10307_s3 + $0x1c0] sm:$0xff] }
  0x42   : > { %5771 = vmatmul.mubr.f32.gmra.mxu0 %v7286_v9  ;;  %5827 = vmatmul.mubr.f32.gmra.mxu1 %v7286_v9  ;;  %v7335_v60 = vld [vmem:[%s7094_s19 + $0x40] sm:$0xff] }
  0x43   : > { %5852 = vmatprep.subr.mxu0 %v4785_v16  ;;  %5908 = vmatprep.subr.mxu1 %v4803_v18 }
  0x44   : > { %5853 = vmatpush3.msra.mxu0 %v4785_v16  ;;  %5909 = vmatpush3.msra.mxu1 %v4803_v18  ;;  %v7338_v16 = vld [vmem:[%s7094_s19 + $0x48] sm:$0xff]  ;;  %v4781_v18 = vld [vmem:[%s10307_s3 + $0x138] sm:$0xff] }
  0x45   : > { %584 = vperm.xlu1 %6862, %v557_v25   ;;  %1405 = vperm.xlu0 %6861, %v1384_v19   ;;  %v4799_v25 = vld [vmem:[%s10307_s3 + $0x1b8] sm:$0xff]  ;;  %v1105_v19 = vsel %vm325_vm12, 1, %v6871_v12 }
  0x46   : > { %5854 = vmatprep.subr.mxu0 %v4784_v24  ;;  %5910 = vmatprep.subr.mxu1 %v4802_v31 }
  0x47   : > { %5773 = vmatprep.mubr.f32.mxu0 %v7309_v32  ;;  %5829 = vmatprep.mubr.f32.mxu1 %v7309_v32 }
  0x48   : > { %5855 = vmatpush3.msra.mxu0 %v4784_v24  ;;  %5911 = vmatpush3.msra.mxu1 %v4802_v31  ;;  %v1104_v24 = vsel %vm324_vm13, 1, %v6871_v12  ;;  %v4780_v31 = vld [vmem:[%s10307_s3 + $0x130] sm:$0xff] }
  0x49   : > { %5774 = vmatmul.mubr.f32.gmra.mxu0 %v7312_v33  ;;  %5830 = vmatmul.mubr.f32.gmra.mxu1 %v7312_v33 }
  0x4a   : > { %5856 = vmatprep.subr.mxu0 %v4783_v47  ;;  %5912 = vmatprep.subr.mxu1 %v4801_v48 }
  0x4b   : > { %5857 = vmatpush3.msra.mxu0 %v4783_v47  ;;  %5913 = vmatpush3.msra.mxu1 %v4801_v48  ;;  %v4798_v47 = vld [vmem:[%s10307_s3 + $0x1b0] sm:$0xff] }
  0x4c   : > { %1408 = vperm.xlu1 %6862, %v1385_v30   ;;  %850 = vperm.xlu0 %6861, %v823_v56   ;;  %v7361_v48 = vld [vmem:[%s7094_s19 + $0x50] sm:$0xff]  ;;  %v7364_v30 = vld [vmem:[%s7094_s19 + $0x58] sm:$0xff]  ;;  %v4779_v56 = vld [vmem:[%s10307_s3 + $0x128] sm:$0xff] }
  0x4d   : > { %5858 = vmatprep.subr.mxu0 %v4782_v57  ;;  %5914 = vmatprep.subr.mxu1 %v4800_v58 }
  0x4e   : > { %5776 = vmatprep.mubr.f32.mxu0 %v7335_v60  ;;  %5832 = vmatprep.mubr.f32.mxu1 %v7335_v60 }
  0x4f   : > { %5859 = vmatpush3.msra.mxu0 %v4782_v57  ;;  %5915 = vmatpush3.msra.mxu1 %v4800_v58  ;;  %v4797_v57 = vld [vmem:[%s10307_s3 + $0x1a8] sm:$0xff]  ;;  %v4778_v58 = vld [vmem:[%s10307_s3 + $0x120] sm:$0xff] }
  0x50   : > { %5777 = vmatmul.mubr.f32.gmra.mxu0 %v7338_v16  ;;  %5833 = vmatmul.mubr.f32.gmra.mxu1 %v7338_v16 }
  0x51   : > { %5860 = vmatprep.subr.mxu0 %v4781_v18  ;;  %5916 = vmatprep.subr.mxu1 %v4799_v25 }
  0x52   : > { %5861 = vmatpush3.msra.mxu0 %v4781_v18  ;;  %5917 = vmatpush3.msra.mxu1 %v4799_v25  ;;  %v4796_v18 = vld [vmem:[%s10307_s3 + $0x1a0] sm:$0xff] }
  0x53   : > { %1132 = vperm.xlu1 %6862, %v1105_v19   ;;  %1129 = vperm.xlu0 %6861, %v1104_v24   ;;  %v7383_v25 = vld [vmem:[%s7094_s19 + $0x60] sm:$0xff]  ;;  %v7388_v19 = vld [vmem:[%s7094_s19 + $0x68] sm:$0xff]  ;;  %v4777_v24 = vld [vmem:[%s10307_s3 + $0x118] sm:$0xff] }
  0x54   : > { %5862 = vmatprep.subr.mxu0 %v4780_v31  ;;  %5918 = vmatprep.subr.mxu1 %v4798_v47 }
  0x55   : > { %5779 = vmatprep.mubr.f32.mxu0 %v7361_v48  ;;  %5835 = vmatprep.mubr.f32.mxu1 %v7361_v48 }
  0x56   : > { %5863 = vmatpush3.msra.mxu0 %v4780_v31  ;;  %5919 = vmatpush3.msra.mxu1 %v4798_v47  ;;  %v4794_v31 = vld [vmem:[%s10307_s3 + $0x190] sm:$0xff] }
  0x57   : > { %5780 = vmatmul.mubr.f32.gmra.mxu0 %v7364_v30  ;;  %5836 = vmatmul.mubr.f32.gmra.mxu1 %v7364_v30  ;;  %v7409_v47 = vld [vmem:[%s7094_s19 + $0x70] sm:$0xff] }
  0x58   : > { %5864 = vmatprep.subr.mxu0 %v4779_v56  ;;  %5920 = vmatprep.subr.mxu1 %v4797_v57 }
  0x59   : > { %5865 = vmatpush3.msra.mxu0 %v4779_v56  ;;  %5921 = vmatpush3.msra.mxu1 %v4797_v57  ;;  %v7413_v56 = vld [vmem:[%s7094_s19 + $0x78] sm:$0xff]  ;;  %v4775_v57 = vld [vmem:[%s10307_s3 + $0x108] sm:$0xff] }
  0x5a   : > { %853 = vperm.xlu1 %6862, %v7036_v42   ;;  %587 = vperm.xlu0 %6861, %v7039_v43   ;;  %v4795_v42 = vld [vmem:[%s10307_s3 + $0x198] sm:$0xff]  ;;  %v1386_v43 = vsel %vm340_vm14, 1, %v6871_v12 }
  0x5b   : > { %5866 = vmatprep.subr.mxu0 %v4778_v58  ;;  %5922 = vmatprep.subr.mxu1 %v4796_v18 }
  0x5c   : > { %5782 = vmatprep.mubr.f32.mxu0 %v7383_v25  ;;  %5838 = vmatprep.mubr.f32.mxu1 %v7383_v25 }
  0x5d   : > { %5867 = vmatpush3.msra.mxu0 %v4778_v58  ;;  %5923 = vmatpush3.msra.mxu1 %v4796_v18  ;;  %v4793_v58 = vld [vmem:[%s10307_s3 + $0x188] sm:$0xff]  ;;  %v4792_v18 = vld [vmem:[%s10307_s3 + $0x180] sm:$0xff] }
  0x5e   : > { %5783 = vmatmul.mubr.f32.gmra.mxu0 %v7388_v19  ;;  %5839 = vmatmul.mubr.f32.gmra.mxu1 %v7388_v19 }
  0x5f   : > { %5868 = vmatprep.subr.mxu0 %v4777_v24  ;;  %5924 = vmatprep.subr.mxu1 %v4795_v42 }
  0x60   : > { %5869 = vmatpush3.msra.mxu0 %v4777_v24  ;;  %5925 = vmatpush3.msra.mxu1 %v4795_v42 }
  0x61   : > { %590 = vperm.xlu1 %6862, %v7061_v51   ;;  %1411 = vperm.xlu0 %6861, %v1386_v43   ;;  %v1387_v51 = vsel %vm341_vm15, 1, %v6871_v12 }
  0x62   : > { %5870 = vmatprep.subr.mxu0 %v4776_v3  ;;  %5926 = vmatprep.subr.mxu1 %v4794_v31 }
  0x63   : > { %5785 = vmatprep.mubr.f32.mxu0 %v7409_v47  ;;  %5841 = vmatprep.mubr.f32.mxu1 %v7409_v47 }
  0x64   : > { %5871 = vmatpush3.msra.mxu0 %v4776_v3  ;;  %5927 = vmatpush3.msra.mxu1 %v4794_v31 }
  0x65   : > { %5786 = vmatmul.mubr.f32.gmra.mxu0 %v7413_v56  ;;  %5842 = vmatmul.mubr.f32.gmra.mxu1 %v7413_v56 }
  0x66   : > { %5872 = vmatprep.subr.mxu0 %v4775_v57  ;;  %5928 = vmatprep.subr.mxu1 %v4793_v58 }
  0x67   : > { %5873 = vmatpush3.msra.mxu0 %v4775_v57  ;;  %5929 = vmatpush3.msra.mxu1 %v4793_v58 }
  0x68   : > { %1414 = vperm.xlu1 %6862, %v1387_v51   ;;  %856 = vperm.xlu0 %6861, %v7064_v52   ;;  %v4843_v52 = vld [vmem:[%s10307_s3 + $0x2f8] sm:$0xff] }
  0x69   : > { %5874 = vmatprep.subr.mxu0 %v4774_v1  ;;  %5930 = vmatprep.subr.mxu1 %v4792_v18 }
  0x6a   : > { %5875 = vmatpush3.msra.mxu0 %v4774_v1  ;;  %5876 = vmatprep.mubr.f32.mxu0 %v7135_v10 }
  0x6b   : > { %5931 = vmatpush3.msra.mxu1 %v4792_v18  ;;  %5932 = vmatprep.mubr.f32.mxu1 %v7135_v10  ;;  %v4839_v10 = vld [vmem:[%s10307_s3 + $0x2d8] sm:$0xff] }
  0x6c   : > { %5877 = vmatmul.mubr.f32.vlgmr.msra.gmra.mxu0 %v7154_v17  ;;  %5933 = vmatmul.mubr.f32.vlgmr.msra.gmra.mxu1 %v7154_v17  ;;  %v4819_v17 = vld [vmem:[%s10307_s3 + $0x248] sm:$0xff] }
  0x6d   : > { %1138 = vperm.xlu1 %6862, %v7067_v53   ;;  %1135 = vperm.xlu0 %6861, %v7043_v45   ;;  %v4825_v45 = vld [vmem:[%s10307_s3 + $0x278] sm:$0xff]  ;;  %v4824_v53 = vld [vmem:[%s10307_s3 + $0x270] sm:$0xff] }
  0x6e   : > { %5879 = vmatprep.mubr.f32.mxu0 %v7207_v34  ;;  %5935 = vmatprep.mubr.f32.mxu1 %v7207_v34  ;;  %v4816_v34 = vld [vmem:[%s10307_s3 + $0x230] sm:$0xff] }
  0x6f   : > { %5956 = vmatprep.subr.mxu0 %v4825_v45  ;;  %6012 = vmatprep.subr.mxu1 %v4843_v52 }
  0x70   : > { %5880 = vmatmul.mubr.f32.gmra.mxu0 %v7226_v39  ;;  %5936 = vmatmul.mubr.f32.gmra.mxu1 %v7226_v39  ;;  %v4814_v39 = vld [vmem:[%s10307_s3 + $0x220] sm:$0xff] }
  0x71   : > { %859 = vperm.xlu1 %6862, %v7097_v61   ;;  %593 = vperm.xlu0 %6861, %v7100_v62  }
  0x72   : > { %5882 = vmatprep.mubr.f32.mxu0 %v7283_v4  ;;  %5938 = vmatprep.mubr.f32.mxu1 %v7283_v4 }
  0x73   : > { %5957 = vmatpush3.msra.mxu0 %v4825_v45  ;;  %6013 = vmatpush3.msra.mxu1 %v4843_v52 }
  0x74   : > { %5883 = vmatmul.mubr.f32.gmra.mxu0 %v7286_v9  ;;  %5939 = vmatmul.mubr.f32.gmra.mxu1 %v7286_v9  ;;  %v4810_v9 = vld [vmem:[%s10307_s3 + $0x200] sm:$0xff] }
  0x75   : > { %596 = vperm.xlu1 %6862, %v7103_v63   ;;  %1417 = vperm.xlu0 %6861, %v7085_v59   ;;  %v4842_v59 = vld [vmem:[%s10307_s3 + $0x2f0] sm:$0xff]  ;;  %v4823_v63 = vld [vmem:[%s10307_s3 + $0x268] sm:$0xff] }
  0x76   : > { %5885 = vmatprep.mubr.f32.mxu0 %v7309_v32  ;;  %5941 = vmatprep.mubr.f32.mxu1 %v7309_v32  ;;  %v4828_v32 = vld [vmem:[%s10307_s3 + $0x280] sm:$0xff] }
  0x77   : > { %5958 = vmatprep.subr.mxu0 %v4824_v53  ;;  %6014 = vmatprep.subr.mxu1 %v4842_v59 }
  0x78   : > { %5886 = vmatmul.mubr.f32.gmra.mxu0 %v7312_v33  ;;  %5942 = vmatmul.mubr.f32.gmra.mxu1 %v7312_v33  ;;  %v7627_v33 = vld [vmem:[%s10307_s3 + $0x378] sm:$0xff] }
  0x79   : > { %1420 = vperm.xlu1 %6862, %v7106_v0   ;;  %862 = vperm.xlu0 %6861, %v7120_v5   ;;  %v4841_v0 = vld [vmem:[%s10307_s3 + $0x2e8] sm:$0xff]  ;;  %v4822_v5 = vld [vmem:[%s10307_s3 + $0x260] sm:$0xff]  ;;  %10508 = vst [vmem:[#allocation15_spill] sm:$0xff] %v7627_v33 }
  0x7a   : > { %5888 = vmatprep.mubr.f32.mxu0 %v7335_v60  ;;  %5944 = vmatprep.mubr.f32.mxu1 %v7335_v60  ;;  %v7632_v60 = vld [vmem:[%s10307_s3 + $0x3f8] sm:$0xff] }
  0x7b   : > { %5959 = vmatpush3.msra.mxu0 %v4824_v53  ;;  %6015 = vmatpush3.msra.mxu1 %v4842_v59  ;;  %10509 = vst [vmem:[#allocation16_spill] sm:$0xff] %v7632_v60 }
  0x7c   : > { %5889 = vmatmul.mubr.f32.gmra.mxu0 %v7338_v16  ;;  %5945 = vmatmul.mubr.f32.gmra.mxu1 %v7338_v16 }
  0x7d   : > { %1144 = vperm.xlu1 %6862, %v7123_v6   ;;  %1141 = vperm.xlu0 %6861, %v7126_v7   ;;  %v4840_v6 = vld [vmem:[%s10307_s3 + $0x2e0] sm:$0xff] }
  0x7e   : > { %5891 = vmatprep.mubr.f32.mxu0 %v7361_v48  ;;  %5947 = vmatprep.mubr.f32.mxu1 %v7361_v48 }
  0x7f   : > { %5960 = vmatprep.subr.mxu0 %v4823_v63  ;;  %6016 = vmatprep.subr.mxu1 %v4841_v0 }
  0x80   : > { %5892 = vmatmul.mubr.f32.gmra.mxu0 %v7364_v30  ;;  %5948 = vmatmul.mubr.f32.gmra.mxu1 %v7364_v30 }
  0x81   : > { %865 = vperm.xlu1 %6862, %v7129_v8   ;;  %599 = vperm.xlu0 %6861, %v7141_v11   ;;  %v4821_v8 = vld [vmem:[%s10307_s3 + $0x258] sm:$0xff] }
  0x82   : > { %5894 = vmatprep.mubr.f32.mxu0 %v7383_v25  ;;  %5950 = vmatprep.mubr.f32.mxu1 %v7383_v25 }
  0x83   : > { %5961 = vmatpush3.msra.mxu0 %v4823_v63  ;;  %6017 = vmatpush3.msra.mxu1 %v4841_v0 }
  0x84   : > { %5895 = vmatmul.mubr.f32.gmra.mxu0 %v7388_v19  ;;  %5951 = vmatmul.mubr.f32.gmra.mxu1 %v7388_v19 }
  0x85   : > { %602 = vperm.xlu1 %6862, %v7144_v13   ;;  %1423 = vperm.xlu0 %6861, %v7147_v14   ;;  %v4820_v13 = vld [vmem:[%s10307_s3 + $0x250] sm:$0xff] }
  0x86   : > { %5897 = vmatprep.mubr.f32.mxu0 %v7409_v47  ;;  %5953 = vmatprep.mubr.f32.mxu1 %v7409_v47  ;;  %v4838_v14 = vld [vmem:[%s10307_s3 + $0x2d0] sm:$0xff] }
  0x87   : > { %5962 = vmatprep.subr.mxu0 %v4822_v5  ;;  %6018 = vmatprep.subr.mxu1 %v4840_v6 }
  0x88   : > { %5898 = vmatmul.mubr.f32.gmra.mxu0 %v7413_v56  ;;  %5954 = vmatmul.mubr.f32.gmra.mxu1 %v7413_v56 }
  0x89   : > { %1426 = vperm.xlu1 %6862, %v7150_v15   ;;  %868 = vperm.xlu0 %6861, %v7166_v20   ;;  %v4837_v20 = vld [vmem:[%s10307_s3 + $0x2c8] sm:$0xff] }
  0x8a   : > { %5963 = vmatpush3.msra.mxu0 %v4822_v5  ;;  %6019 = vmatpush3.msra.mxu1 %v4840_v6 }
  0x8b   : > { %5964 = vmatprep.subr.mxu0 %v4821_v8  ;;  %6020 = vmatprep.subr.mxu1 %v4839_v10 }
  0x8c   : > { %5965 = vmatpush3.msra.mxu0 %v4821_v8  ;;  %6021 = vmatpush3.msra.mxu1 %v4839_v10 }
  0x8d   : > { %1150 = vperm.xlu1 %6862, %v7169_v21   ;;  %1147 = vperm.xlu0 %6861, %v7172_v22   ;;  %v4818_v22 = vld [vmem:[%s10307_s3 + $0x240] sm:$0xff] }
  0x8e   : > { %5966 = vmatprep.subr.mxu0 %v4820_v13  ;;  %6022 = vmatprep.subr.mxu1 %v4838_v14 }
  0x8f   : > { %5967 = vmatpush3.msra.mxu0 %v4820_v13  ;;  %6023 = vmatpush3.msra.mxu1 %v4838_v14 }
  0x90   : > { %5968 = vmatprep.subr.mxu0 %v4819_v17  ;;  %6024 = vmatprep.subr.mxu1 %v4837_v20 }
  0x91   : > { %871 = vperm.xlu1 %6862, %v7175_v23   ;;  %605 = vperm.xlu0 %6861, %v7186_v26   ;;  %v4836_v23 = vld [vmem:[%s10307_s3 + $0x2c0] sm:$0xff] }
  0x92   : > { %v7488_v12 = vpop.permute.xlu0 %569  ;;  %v7504_v61 = vpop.permute.xlu1 %572  ;;  %5969 = vmatpush3.msra.mxu0 %v4819_v17  ;;  %6025 = vmatpush3.msra.mxu1 %v4837_v20 }
  0x93   : > { %10495 = vst [vmem:[#allocation2_spill] sm:$0xff] %v7488_v12  ;;  %10496 = vst [vmem:[#allocation3_spill] sm:$0xff] %v7504_v61  ;;  %5970 = vmatprep.subr.mxu0 %v4818_v22  ;;  %6026 = vmatprep.subr.mxu1 %v4836_v23  ;;  %vm10324_vm0 = vcmp.eq.s32.totalorder %v7504_v61, 1  ;;  %vm10360_vm3 = vcmp.eq.s32.totalorder %v7488_v12, 1 }
  0x94   : > { %5971 = vmatpush3.msra.mxu0 %v4818_v22  ;;  %6027 = vmatpush3.msra.mxu1 %v4836_v23 }
  0x95   : > { %608 = vperm.xlu1 %6862, %v7189_v27   ;;  %1429 = vperm.xlu0 %6861, %v7192_v28   ;;  %v4817_v27 = vld [vmem:[%s10307_s3 + $0x238] sm:$0xff] }
  0x96   : > { %v4835_v28 = vld [vmem:[%s10307_s3 + $0x2b8] sm:$0xff]  ;;  %5972 = vmatprep.subr.mxu0 %v4817_v27 }
  0x97   : > { %v7506_v62 = vpop.permute.xlu0 %835  ;;  %v7522_v7 = vpop.permute.xlu1 %838  ;;  %6028 = vmatprep.subr.mxu1 %v4835_v28  ;;  %5973 = vmatpush3.msra.mxu0 %v4817_v27 }
  0x98   : > { %10497 = vst [vmem:[#allocation4_spill] sm:$0xff] %v7506_v62  ;;  %10498 = vst [vmem:[#allocation5_spill] sm:$0xff] %v7522_v7  ;;  %6029 = vmatpush3.msra.mxu1 %v4835_v28  ;;  %5974 = vmatprep.subr.mxu0 %v4816_v34  ;;  %vm10323_vm4 = vcmp.eq.s32.totalorder %v7522_v7, 1  ;;  %vm10329_vm5 = vcmp.eq.s32.totalorder %v7506_v62, 1 }
  0x99   : > { %1432 = vperm.xlu1 %6862, %v7195_v29   ;;  %874 = vperm.xlu0 %6861, %v7210_v35   ;;  %v4834_v35 = vld [vmem:[%s10307_s3 + $0x2b0] sm:$0xff] }
  0x9a   : > { %6030 = vmatprep.subr.mxu1 %v4834_v35  ;;  %5975 = vmatpush3.msra.mxu0 %v4816_v34 }
  0x9b   : > { %6031 = vmatpush3.msra.mxu1 %v4834_v35 }
  0x9c   : > { %v7532_v11 = vpop.permute.xlu0 %1117  ;;  %v7542_v15 = vpop.permute.xlu1 %1120 }
  0x9d   : > { %1156 = vperm.xlu1 %6862, %v7213_v36   ;;  %1153 = vperm.xlu0 %6861, %v7216_v37   ;;  %10499 = vst [vmem:[#allocation6_spill] sm:$0xff] %v7532_v11  ;;  %10500 = vst [vmem:[#allocation7_spill] sm:$0xff] %v7542_v15  ;;  %v4815_v36 = vld [vmem:[%s10307_s3 + $0x228] sm:$0xff] }
  0x9e   : > { %v4833_v37 = vld [vmem:[%s10307_s3 + $0x2a8] sm:$0xff]  ;;  %5976 = vmatprep.subr.mxu0 %v4815_v36 }
  0x9f   : > { %6032 = vmatprep.subr.mxu1 %v4833_v37  ;;  %5977 = vmatpush3.msra.mxu0 %v4815_v36 }
  0xa0   : > { %6033 = vmatpush3.msra.mxu1 %v4833_v37  ;;  %5978 = vmatprep.subr.mxu0 %v4814_v39 }
  0xa1   : > { %877 = vperm.xlu1 %6862, %v7219_v38   ;;  %611 = vperm.xlu0 %6861, %v7229_v40   ;;  %v7550_v21 = vpop.permute.xlu0 %575  ;;  %v7560_v26 = vpop.permute.xlu1 %841  ;;  %v4832_v40 = vld [vmem:[%s10307_s3 + $0x2a0] sm:$0xff] }
  0xa2   : > { %10501 = vst [vmem:[#allocation8_spill] sm:$0xff] %v7550_v21  ;;  %10502 = vst [vmem:[#allocation9_spill] sm:$0xff] %v7560_v26  ;;  %6034 = vmatprep.subr.mxu1 %v4832_v40  ;;  %5979 = vmatpush3.msra.mxu0 %v4814_v39  ;;  %vm10357_vm6 = vcmp.eq.s32.totalorder %v7560_v26, 1  ;;  %vm10338_vm7 = vcmp.eq.s32.totalorder %v7550_v21, 1 }
  0xa3   : > { %6035 = vmatpush3.msra.mxu1 %v4832_v40 }
  0xa5   : > { %614 = vperm.xlu1 %6862, %v7232_v41   ;;  %1435 = vperm.xlu0 %6861, %v7235_v44   ;;  %v4813_v44 = vld [vmem:[%s10307_s3 + $0x218] sm:$0xff] }
  0xa6   : > { %v7570_v29 = vpop.permute.xlu0 %1399  ;;  %v7586_v38 = vpop.permute.xlu1 %578  ;;  %5980 = vmatprep.subr.mxu0 %v4813_v44 }
  0xa7   : > { %10503 = vst [vmem:[#allocation10_spill] sm:$0xff] %v7570_v29  ;;  %10504 = vst [vmem:[#allocation11_spill] sm:$0xff] %v7586_v38  ;;  %5981 = vmatpush3.msra.mxu0 %v4813_v44  ;;  %vm10359_vm8 = vcmp.eq.s32.totalorder %v7586_v38, 1 }
  0xa9   : > { %1438 = vperm.xlu1 %6862, %v7238_v46   ;;  %880 = vperm.xlu0 %6861, %v7250_v49   ;;  %v4831_v46 = vld [vmem:[%s10307_s3 + $0x298] sm:$0xff]  ;;  %v4812_v49 = vld [vmem:[%s10307_s3 + $0x210] sm:$0xff] }
  0xaa   : > { %6036 = vmatprep.subr.mxu1 %v4831_v46  ;;  %5982 = vmatprep.subr.mxu0 %v4812_v49 }
  0xab   : > { %v7594_v41 = vpop.permute.xlu0 %844  ;;  %6037 = vmatpush3.msra.mxu1 %v4831_v46  ;;  %5983 = vmatpush3.msra.mxu0 %v4812_v49 }
  0xac   : > { %10505 = vst [vmem:[#allocation12_spill] sm:$0xff] %v7594_v41  ;;  %vm10358_vm9 = vcmp.eq.s32.totalorder %v7594_v41, 1 }
  0xad   : > { %1162 = vperm.xlu1 %6862, %v7253_v50   ;;  %1159 = vperm.xlu0 %6861, %v7256_v54   ;;  %v4830_v50 = vld [vmem:[%s10307_s3 + $0x290] sm:$0xff]  ;;  %v7608_v54 = vpop.permute.xlu1 %1402 }
  0xae   : > { %10506 = vst [vmem:[#allocation13_spill] sm:$0xff] %v7608_v54  ;;  %6038 = vmatprep.subr.mxu1 %v4830_v50 }
  0xaf   : > { %6039 = vmatpush3.msra.mxu1 %v4830_v50 }
  0xb1   : > { %1444 = vperm.xlu1 %6862, %v7259_v55   ;;  %1441 = vperm.xlu0 %6861, %v7280_v2   ;;  %v4811_v55 = vld [vmem:[%s10307_s3 + $0x208] sm:$0xff] }
  0xb2   : > { %v4829_v2 = vld [vmem:[%s10307_s3 + $0x288] sm:$0xff]  ;;  %v7616_v4 = vpop.permute.xlu0 %1123  ;;  %5984 = vmatprep.subr.mxu0 %v4811_v55  ;;  %v7634_v16 = vpop.permute.xlu1 %1126 }
  0xb3   : > { %10507 = vst [vmem:[#allocation14_spill] sm:$0xff] %v7616_v4  ;;  %6040 = vmatprep.subr.mxu1 %v4829_v2  ;;  %5985 = vmatpush3.msra.mxu0 %v4811_v55  ;;  %10510 = vst [vmem:[#allocation17_spill] sm:$0xff] %v7634_v16  ;;  %vm10363_vm15 = vcmp.eq.s32.totalorder %v7634_v16, 1 }
  0xb4   : > { %6041 = vmatpush3.msra.mxu1 %v4829_v2  ;;  %5986 = vmatprep.subr.mxu0 %v4810_v9 }
  0xb5   : > { %6042 = vmatprep.subr.mxu1 %v4828_v32  ;;  %5987 = vmatpush3.msra.mxu0 %v4810_v9 }
  0xb6   : > { %6043 = vmatpush3.msra.mxu1 %v4828_v32  ;;  %6068 = vmatprep.subr.mxu0 %v7627_v33 }
  0xb7   : > { %6124 = vmatprep.subr.mxu1 %v7632_v60 }
  0xb9   : > { %v7636_v48 = vpop.permute.xlu0 %581  ;;  %v7640_v30 = vpop.permute.xlu1 %847 }
  0xba   : > { %10511 = vst [vmem:[#allocation18_spill] sm:$0xff] %v7636_v48  ;;  %10512 = vst [vmem:[#allocation19_spill] sm:$0xff] %v7640_v30  ;;  %vm10342_vm1 = vcmp.eq.s32.totalorder %v7640_v30, 1  ;;  %vm10341_vm2 = vcmp.eq.s32.totalorder %v7636_v48, 1 }
  0xc0   : > { %v7642_v25 = vpop.permute.xlu0 %1405  ;;  %v7644_v19 = vpop.permute.xlu1 %584 }
  0xc1   : > { %10513 = vst [vmem:[#allocation20_spill] sm:$0xff] %v7642_v25  ;;  %10514 = vst [vmem:[#allocation21_spill] sm:$0xff] %v7644_v19  ;;  %vm10356_vm10 = vcmp.eq.s32.totalorder %v7644_v19, 1 }
  0xc7   : > { %v7646_v24 = vpop.permute.xlu0 %850  ;;  %v7648_v42 = vpop.permute.xlu1 %1408 }
  0xc8   : > { %10515 = vst [vmem:[#allocation22_spill] sm:$0xff] %v7646_v24  ;;  %10516 = vst [vmem:[#allocation23_spill] sm:$0xff] %v7648_v42  ;;  %vm10353_vm11 = vcmp.eq.s32.totalorder %v7646_v24, 1 }
  0xce   : > { %v7650_v43 = vpop.permute.xlu0 %1129  ;;  %v7652_v3 = vpop.permute.xlu1 %1132 }
  0xcf   : > { %10517 = vst [vmem:[#allocation24_spill] sm:$0xff] %v7650_v43  ;;  %10518 = vst [vmem:[#allocation25_spill] sm:$0xff] %v7652_v3 }
  0xd5   : > { %v7654_v31 = vpop.permute.xlu0 %587  ;;  %v7656_v47 = vpop.permute.xlu1 %853 }
  0xd6   : > { %10519 = vst [vmem:[#allocation26_spill] sm:$0xff] %v7654_v31  ;;  %10520 = vst [vmem:[#allocation27_spill] sm:$0xff] %v7656_v47  ;;  %vm10355_vm12 = vcmp.eq.s32.totalorder %v7656_v47, 1  ;;  %vm10354_vm13 = vcmp.eq.s32.totalorder %v7654_v31, 1 }
  0xdc   : > { %v7658_v56 = vpop.permute.xlu0 %1411  ;;  %v7660_v57 = vpop.permute.xlu1 %590 }
  0xdd   : > { %10521 = vst [vmem:[#allocation28_spill] sm:$0xff] %v7658_v56  ;;  %10522 = vst [vmem:[#allocation29_spill] sm:$0xff] %v7660_v57  ;;  %vm10350_vm14 = vcmp.eq.s32.totalorder %v7660_v57, 1 }
  0xe3   : > { %v7662_v58 = vpop.permute.xlu0 %856  ;;  %v7664_v51 = vpop.permute.xlu1 %1414 }
  0xe4   : > { %10523 = vst [vmem:[#allocation30_spill] sm:$0xff] %v7662_v58  ;;  %10524 = vst [vmem:[#allocation31_spill] sm:$0xff] %v7664_v51 }
  0xe8   : > { %v7666_v1 = vpop.permute.xlu0 %1135  ;;  %v7668_v18 = vpop.permute.xlu1 %1138 }
  0xe9   : > { %10525 = vst [vmem:[#allocation32_spill] sm:$0xff] %v7666_v1  ;;  %10526 = vst [vmem:[#allocation33_spill] sm:$0xff] %v7668_v18 }
  0xec   : > { %v7670_v45 = vpop.permute.xlu0 %593  ;;  %v7672_v52 = vpop.permute.xlu1 %859 }
  0xed   : > { %10527 = vst [vmem:[#allocation34_spill] sm:$0xff] %v7670_v45  ;;  %10528 = vst [vmem:[#allocation35_spill] sm:$0xff] %v7672_v52 }
  0xf0   : > { %v7674_v63 = vpop.permute.xlu0 %1417  ;;  %v7680_v6 = vpop.permute.xlu1 %596 }
  0xf1   : > { %10529 = vst [vmem:[#allocation36_spill] sm:$0xff] %v7674_v63  ;;  %10530 = vst [vmem:[#allocation37_spill] sm:$0xff] %v7680_v6 }
  0xf4   : > { %v5766_v53 = vpop.f32.mrf.mxu0  ;;  %v5822_v59 = vpop.f32.mrf.mxu1 }
  0xf5   : > { %v7686_v13 = vpop.permute.xlu0 %862  ;;  %v7692_v20 = vpop.permute.xlu1 %1420 }
  0xf6   : > { %v7676_v0 = vpop.f32.mrf.mxu0  ;;  %v7678_v5 = vpop.f32.mrf.mxu1  ;;  %10531 = vst [vmem:[#allocation38_spill] sm:$0xff] %v7686_v13  ;;  %10532 = vst [vmem:[#allocation39_spill] sm:$0xff] %v7692_v20 }
  0xf8   : > { %v10566_v16 = vld [vmem:[#allocation36_spill] sm:$0xff] }
  0xf9   : > { %v7698_v27 = vpop.permute.xlu0 %1141  ;;  %v7704_v35 = vpop.permute.xlu1 %1144 }
  0xfa   : > { %10533 = vst [vmem:[#allocation40_spill] sm:$0xff] %v7698_v27  ;;  %10534 = vst [vmem:[#allocation41_spill] sm:$0xff] %v7704_v35 }
  0xfb   : > { %v7682_v8 = vpop.f32.mrf.mxu0  ;;  %v7684_v10 = vpop.f32.mrf.mxu1 }
  0xfd   : > { %v7688_v14 = vpop.f32.mrf.mxu0  ;;  %v7690_v17 = vpop.f32.mrf.mxu1 }
  0xfe   : > { %v7710_v39 = vpop.permute.xlu0 %599  ;;  %v7712_v40 = vpop.permute.xlu1 %865 }
  0xff   : > { %10535 = vst [vmem:[#allocation42_spill] sm:$0xff] %v7710_v39  ;;  %10536 = vst [vmem:[#allocation43_spill] sm:$0xff] %v7712_v40 }
 0x102   : > { %v7694_v22 = vpop.f32.mrf.mxu0  ;;  %v7696_v23 = vpop.f32.mrf.mxu1 }
 0x103   : > { %v7718_v49 = vpop.permute.xlu0 %1423  ;;  %v7724_v2 = vpop.permute.xlu1 %602 }
 0x104   : > { %v7700_v28 = vpop.f32.mrf.mxu0  ;;  %v7702_v34 = vpop.f32.mrf.mxu1  ;;  %10537 = vst [vmem:[#allocation44_spill] sm:$0xff] %v7718_v49  ;;  %10538 = vst [vmem:[#allocation45_spill] sm:$0xff] %v7724_v2 }
 0x107   : > { %v7730_v60 = vpop.permute.xlu0 %868  ;;  %v7736_v35 = vpop.permute.xlu1 %1426 }
 0x108   : > { %10540 = vst [vmem:[#allocation47_spill] sm:$0xff] %v7730_v60  ;;  %10543 = vst [vmem:[#allocation50_spill] sm:$0xff] %v7736_v35 }
 0x109   : > { %v7706_v36 = vpop.f32.mrf.mxu0  ;;  %v7708_v37 = vpop.f32.mrf.mxu1 }
 0x10b   : > { %v7714_v44 = vpop.f32.mrf.mxu0  ;;  %v7716_v46 = vpop.f32.mrf.mxu1 }
 0x10c   : > { %v7742_v39 = vpop.permute.xlu0 %1147  ;;  %v7758_v35 = vpop.permute.xlu1 %1150 }
 0x10d   : > { %10546 = vst [vmem:[#allocation53_spill] sm:$0xff] %v7742_v39  ;;  %10549 = vst [vmem:[#allocation56_spill] sm:$0xff] %v7758_v35 }
 0x110   : > { %v7720_v50 = vpop.f32.mrf.mxu0  ;;  %v7722_v55 = vpop.f32.mrf.mxu1 }
 0x111   : > { %v7773_v35 = vpop.permute.xlu0 %605 }
 0x112   : > { %v7726_v9 = vpop.f32.mrf.mxu0  ;;  %v7728_v32 = vpop.f32.mrf.mxu1  ;;  %10552 = vst [vmem:[#allocation59_spill] sm:$0xff] %v7773_v35 }
 0x113   : > { %10539 = vst [vmem:[#allocation46_spill] sm:$0xff] %v7728_v32  ;;  %v7751_v32 = vld [vmem:[%s10308_s4] ss:$0 sm:$0xff] }
 0x114   : > { %v474_v35 = vadd.f32 %v7751_v32, %v7676_v0  ;;  %v499_v0 = vadd.f32 %v7694_v22, %v7751_v32  ;;  %v509_v22 = vadd.f32 %v7706_v36, %v7751_v32  ;;  %v7840_v36 = vld [vmem:[%s10308_s4 + $0x2] ss:$0 sm:$0xff] }
 0x115   : > { %v7821_v61 = vpop.permute.xlu0 %1429 }
 0x116   : > { %10556 = vst [vmem:[#allocation63_spill] sm:$0xff] %v7821_v61  ;;  %v637_v62 = vsel %vm10356_vm10, %v499_v0, 0.0  ;;  %vm10561_vm10 = vcmp.eq.s32.totalorder %v7532_v11, 1 }
 0x117   : > { %v7732_v33 = vpop.f32.mrf.mxu0  ;;  %v7734_v40 = vpop.f32.mrf.mxu1 }
 0x118   : > { %10541 = vst [vmem:[#allocation48_spill] sm:$0xff] %v7732_v33  ;;  %10542 = vst [vmem:[#allocation49_spill] sm:$0xff] %v7734_v40  ;;  %v7756_v40 = vld [vmem:[%s10308_s4 + $0x1] ss:$0 sm:$0xff]  ;;  %v7796_v33 = vpop.permute.xlu1 %871 }
 0x119   : > { %v7738_v20 = vpop.f32.mrf.mxu0  ;;  %v7740_v49 = vpop.f32.mrf.mxu1  ;;  %v740_v39 = vadd.f32 %v7756_v40, %v7678_v5  ;;  %10555 = vst [vmem:[#allocation62_spill] sm:$0xff] %v7796_v33  ;;  %v765_v5 = vadd.f32 %v7696_v23, %v7756_v40  ;;  %v775_v23 = vadd.f32 %v7708_v37, %v7756_v40  ;;  %v7845_v37 = vld [vmem:[%s10308_s4 + $0x3] ss:$0 sm:$0xff] }
 0x11a   : > { %10544 = vst [vmem:[#allocation51_spill] sm:$0xff] %v7738_v20  ;;  %10545 = vst [vmem:[#allocation52_spill] sm:$0xff] %v7740_v49 }
 0x11b   : > { %v903_v12 = vsel %vm10353_vm11, %v765_v5, 0.0  ;;  %vm10391_vm11 = vcmp.eq.s32.totalorder %v7650_v43, 1 }
 0x11e   : > { %v7744_v27 = vpop.f32.mrf.mxu0  ;;  %v7746_v63 = vpop.f32.mrf.mxu1 }
 0x11f   : > { %10547 = vst [vmem:[#allocation54_spill] sm:$0xff] %v7744_v27  ;;  %10548 = vst [vmem:[#allocation55_spill] sm:$0xff] %v7746_v63  ;;  %v479_v63 = vadd.f32 %v5766_v53, %v7751_v32  ;;  %v745_v27 = vadd.f32 %v5822_v59, %v7756_v40 }
 0x120   : > { %v7761_v49 = vpop.f32.mrf.mxu0  ;;  %v7763_v20 = vpop.f32.mrf.mxu1 }
 0x121   : > { %10550 = vst [vmem:[#allocation57_spill] sm:$0xff] %v7761_v49  ;;  %10551 = vst [vmem:[#allocation58_spill] sm:$0xff] %v7763_v20  ;;  %v633_v20 = vsel %vm10324_vm0, %v479_v63, 0.0  ;;  %v899_v49 = vsel %vm10323_vm4, %v745_v27, 0.0  ;;  %v484_v63 = vadd.f32 %v7751_v32, %v7688_v14  ;;  %v750_v27 = vadd.f32 %v7756_v40, %v7690_v17 }
 0x122   : > { %vm10349_vm4 = vcmp.eq.s32.totalorder %v7662_v58, 1  ;;  %v915_v17 = vadd.f32 %v899_v49, %v633_v20  ;;  %vm10378_vm0 = vcmp.eq.s32.totalorder %v7570_v29, 1  ;;  %v504_v20 = vadd.f32 %v7751_v32, %v7714_v44  ;;  %v10573_v29 = vld [vmem:[#allocation43_spill] sm:$0xff] }
 0x123   : > { %v770_v49 = vadd.f32 %v7756_v40, %v7716_v46  ;;  %v634_v44 = vsel %vm10338_vm7, %v484_v63, 0.0  ;;  %v900_v46 = vsel %vm10357_vm6, %v750_v27, 0.0  ;;  %vm10375_vm7 = vcmp.eq.s32.totalorder %v7648_v42, 1  ;;  %v7865_v63 = vpop.permute.xlu1 %608 }
 0x124   : > { %10557 = vst [vmem:[#allocation64_spill] sm:$0xff] %v7865_v63  ;;  %v639_v27 = vsel %vm10350_vm14, %v509_v22, 0.0  ;;  %v905_v0 = vsel %vm10349_vm4, %v775_v23, 0.0  ;;  %v638_v30 = vsel %vm10354_vm13, %v504_v20, 0.0  ;;  %vm625_vm4 = vcmp.eq.s32.totalorder %v7680_v6, 1 }
 0x125   : > { %v7783_v53 = vpop.f32.mrf.mxu0  ;;  %v7785_v59 = vpop.f32.mrf.mxu1  ;;  %v904_v57 = vsel %vm10355_vm12, %v770_v49, 0.0  ;;  %v916_v23 = vadd.f32 %v900_v46, %v634_v44  ;;  %vm10559_vm14 = vcmp.eq.s32.totalorder %v7542_v15, 1  ;;  %vm10393_vm13 = vcmp.eq.s32.totalorder %v7686_v13, 1  ;;  %v10575_v15 = vld [vmem:[#allocation16_spill] sm:$0xff] }
 0x126   : > { %10553 = vst [vmem:[#allocation60_spill] sm:$0xff] %v7783_v53  ;;  %10554 = vst [vmem:[#allocation61_spill] sm:$0xff] %v7785_v59  ;;  %v489_v53 = vadd.f32 %v7682_v8, %v7751_v32  ;;  %v755_v59 = vadd.f32 %v7684_v10, %v7756_v40  ;;  %v494_v8 = vadd.f32 %v7751_v32, %v7700_v28  ;;  %v632_v28 = vsel %vm10360_vm3, %v474_v35, 0.0 }
 0x127   : > { %v760_v10 = vadd.f32 %v7756_v40, %v7702_v34  ;;  %v7816_v14 = vpop.f32.mrf.mxu0  ;;  %v7818_v7 = vpop.f32.mrf.mxu1  ;;  %v898_v34 = vsel %vm10329_vm5, %v740_v39, 0.0  ;;  %vm10366_vm5 = vcmp.eq.s32.totalorder %v7616_v4, 1  ;;  %v7892_v49 = vadd.f32 %v905_v0, %v639_v27 }
 0x128   : > { %v635_v35 = vsel %vm10359_vm8, %v489_v53, 0.0  ;;  %v901_v39 = vsel %vm10358_vm9, %v755_v59, 0.0  ;;  %v636_v53 = vsel %vm10341_vm2, %v494_v8, 0.0  ;;  %vm10372_vm2 = vcmp.eq.s32.totalorder %v7642_v25, 1 }
 0x129   : > { %v902_v59 = vsel %vm10342_vm1, %v760_v10, 0.0  ;;  %vm10371_vm1 = vcmp.eq.s32.totalorder %v7652_v3, 1  ;;  %v914_v8 = vadd.f32 %v898_v34, %v632_v28  ;;  %v917_v10 = vadd.f32 %v901_v39, %v635_v35  ;;  %v10572_v3 = vld [vmem:[#allocation41_spill] sm:$0xff] }
 0x12a   : > { %v7888_v34 = vadd.f32 %v903_v12, %v637_v62  ;;  %v7890_v20 = vadd.f32 %v902_v59, %v636_v53  ;;  %vm10392_vm12 = vcmp.eq.s32.totalorder %v7670_v45, 1  ;;  %v7895_v46 = vadd.f32 %v904_v57, %v638_v30 }
 0x12b   : > { %vm10416_vm6 = vcmp.eq.s32.totalorder %v7658_v56, 1  ;;  %vm890_vm9 = vcmp.eq.s32.totalorder %v7672_v52, 1  ;;  %v519_v62 = vadd.f32 %v7720_v50, %v7751_v32  ;;  %vm893_vm8 = vcmp.eq.s32.totalorder %v7730_v60, 1  ;;  %v10581_v60 = vld [vmem:[#allocation52_spill] sm:$0xff] }
 0x12c   : > { %v5878_v41 = vpop.f32.mrf.mxu0  ;;  %v5934_v21 = vpop.f32.mrf.mxu1  ;;  %vm10407_vm3 = vcmp.eq.s32.totalorder %v7668_v18, 1 }
 0x12d   : > { %v1027_v5 = vadd.f32 %v5878_v41, %v7840_v36  ;;  %v1309_v48 = vadd.f32 %v5934_v21, %v7845_v37  ;;  %v7880_v41 = vpop.permute.xlu0 %874 }
 0x12e   : > { %v1021_v22 = vpop.f32.mrf.mxu0  ;;  %v1303_v24 = vpop.f32.mrf.mxu1  ;;  %10558 = vst [vmem:[#allocation65_spill] sm:$0xff] %v7880_v41 }
 0x12f   : > { %v1181_v21 = vsel %vm10559_vm14, %v1027_v5, 0.0  ;;  %v1022_v58 = vadd.f32 %v7840_v36, %v1021_v22  ;;  %v1304_v28 = vadd.f32 %v7845_v37, %v1303_v24  ;;  %vm10560_vm14 = vcmp.eq.s32.totalorder %v7608_v54, 1  ;;  %v10574_v54 = vld [vmem:[#allocation15_spill] sm:$0xff] }
 0x130   : > { %v1197_v35 = vadd.f32 %v1181_v21, %v915_v17  ;;  %v5881_v39 = vpop.f32.mrf.mxu0  ;;  %v5937_v44 = vpop.f32.mrf.mxu1  ;;  %v1463_v24 = vsel %vm10560_vm14, %v1309_v48, 0.0  ;;  %vm10406_vm14 = vcmp.eq.s32.totalorder %v7666_v1, 1  ;;  %v514_v22 = vadd.f32 %v7751_v32, %v7726_v9 }
 0x131   : > { %v1180_v5 = vsel %vm10561_vm10, %v1022_v58, 0.0  ;;  %v1037_v12 = vadd.f32 %v5881_v39, %v7840_v36  ;;  %v1319_v30 = vadd.f32 %v5937_v44, %v7845_v37  ;;  %v7909_v48 = vpop.permute.xlu1 %1432  ;;  %v1462_v58 = vsel %vm10378_vm0, %v1304_v28, 0.0  ;;  %v7924_v44 = vpop.permute.xlu0 %1153 }
 0x132   : > { %v1479_v17 = vadd.f32 %v1463_v24, %v1197_v35  ;;  %v1196_v53 = vadd.f32 %v1180_v5, %v914_v8  ;;  %v1031_v57 = vpop.f32.mrf.mxu0  ;;  %v1313_v59 = vpop.f32.mrf.mxu1  ;;  %10562 = vst [vmem:[#allocation66_spill] sm:$0xff] %v7909_v48  ;;  %vm10418_vm10 = vcmp.eq.s32.totalorder %v7664_v51, 1  ;;  %v785_v8 = vadd.f32 %v7722_v55, %v7756_v40  ;;  %10563 = vst [vmem:[#allocation67_spill] sm:$0xff] %v7924_v44  ;;  %v10564_v24 = vld [vmem:[#allocation46_spill] sm:$0xff] }
 0x133   : > { %v1183_v27 = vsel %vm10363_vm15, %v1037_v12, 0.0  ;;  %v1032_v50 = vadd.f32 %v7840_v36, %v1031_v57  ;;  %v1314_v0 = vadd.f32 %v7845_v37, %v1313_v59  ;;  %v780_v5 = vadd.f32 %v7756_v40, %v10564_v24  ;;  %v10565_v12 = vld [vmem:[#allocation48_spill] sm:$0xff] }
 0x134   : > { %v1478_v21 = vadd.f32 %v1462_v58, %v1196_v53  ;;  %v1199_v28 = vadd.f32 %v1183_v27, %v917_v10  ;;  %v5884_v35 = vpop.f32.mrf.mxu0  ;;  %v5940_v39 = vpop.f32.mrf.mxu1  ;;  %v529_v57 = vadd.f32 %v10565_v12, %v7751_v32  ;;  %vm10412_vm15 = vcmp.eq.s32.totalorder %v10566_v16, 1 }
 0x135   : > { %v1182_v59 = vsel %vm10366_vm5, %v1032_v50, 0.0  ;;  %v1047_v55 = vadd.f32 %v5884_v35, %v7840_v36  ;;  %v7934_v9 = vmax.f32 %v1479_v17, 0.0  ;;  %v1465_v53 = vsel %vm10375_vm7, %v1319_v30, 0.0  ;;  %v10567_v17 = vld [vmem:[#allocation40_spill] sm:$0xff]  ;;  %v7985_v13 = vpop.permute.xlu0 %611 }
 0x136   : > { %v7936_v10 = vmax.f32 %v1478_v21, 0.0  ;;  %v1198_v58 = vadd.f32 %v1182_v59, %v916_v23  ;;  %v1041_v27 = vpop.f32.mrf.mxu0  ;;  %v1323_v24 = vpop.f32.mrf.mxu1  ;;  %v1464_v12 = vsel %vm10372_vm2, %v1314_v0, 0.0  ;;  %vm10417_vm5 = vcmp.eq.s32.totalorder %v10567_v17, 1  ;;  %v10568_v23 = vld [vmem:[#allocation49_spill] sm:$0xff]  ;;  %10576 = vst [vmem:[#allocation48_spill] sm:$0xff] %v7985_v13 }
 0x137   : > { %v1185_v50 = vsel %vm10371_vm1, %v1047_v55, 0.0  ;;  %v1042_v35 = vadd.f32 %v7840_v36, %v1041_v27  ;;  %v1324_v4 = vadd.f32 %v7845_v37, %v1323_v24  ;;  %v7949_v21 = vsel %vm625_vm4, %v519_v62, 0.0  ;;  %v4860_v55 = vld [vmem:[%s10307_s3 + $0x370] sm:$0xff]  ;;  %v10569_v27 = vld [vmem:[#allocation42_spill] sm:$0xff]  ;;  %v7962_v24 = vpop.permute.xlu1 %1156 }
 0x138   : > { %v795_v30 = vadd.f32 %v10568_v23, %v7756_v40  ;;  %v1481_v59 = vadd.f32 %v1465_v53, %v1199_v28  ;;  %v1480_v42 = vadd.f32 %v1464_v12, %v1198_v58  ;;  %v5887_v25 = vpop.f32.mrf.mxu0  ;;  %v5943_v0 = vpop.f32.mrf.mxu1  ;;  %5988 = vmatprep.mubr.f32.mxu0 %v7936_v10  ;;  %6044 = vmatprep.mubr.f32.mxu1 %v7936_v10  ;;  %v4878_v62 = vld [vmem:[%s10307_s3 + $0x3f0] sm:$0xff]  ;;  %vm10425_vm1 = vcmp.eq.s32.totalorder %v10569_v27, 1  ;;  %v10571_v23 = vld [vmem:[#allocation39_spill] sm:$0xff] }
 0x139   : > { %10570 = vst [vmem:[#allocation46_spill] sm:$0xff] %v7962_v24  ;;  %v7966_v28 = vsel %vm10393_vm13, %v785_v8, 0.0  ;;  %v1329_v53 = vadd.f32 %v5940_v39, %v7845_v37  ;;  %v1184_v58 = vsel %vm10391_vm11, %v1042_v35, 0.0  ;;  %v1057_v12 = vadd.f32 %v5887_v25, %v7840_v36  ;;  %5989 = vmatmul.mubr.f32.vlgmr.msra.gmra.mxu0 %v7934_v9  ;;  %6045 = vmatmul.mubr.f32.vlgmr.msra.gmra.mxu1 %v7934_v9  ;;  %v8048_v16 = vpop.permute.xlu0 %1435 }
 0x13a   : > { %vm10420_vm2 = vcmp.eq.s32.totalorder %v10571_v23, 1  ;;  %vm10419_vm7 = vcmp.eq.s32.totalorder %v10572_v3, 1  ;;  %vm10421_vm0 = vcmp.eq.s32.totalorder %v10573_v29, 1  ;;  %v640_v8 = vsel %vm10392_vm12, %v514_v22, 0.0  ;;  %v1051_v25 = vpop.f32.mrf.mxu0  ;;  %v1333_v43 = vpop.f32.mrf.mxu1  ;;  %6069 = vmatpush3.msra.mxu0 %v10574_v54  ;;  %6125 = vmatpush3.msra.mxu1 %v10575_v15  ;;  %10586 = vst [vmem:[#allocation15_spill] sm:$0xff] %v8048_v16 }
 0x13b   : > { %v7979_v11 = vmax.f32 %v1480_v42, 0.0  ;;  %v1201_v39 = vadd.f32 %v1185_v50, %v7888_v34  ;;  %v1200_v35 = vadd.f32 %v1184_v58, %v7890_v20  ;;  %v906_v6 = vsel %vm890_vm9, %v780_v5, 0.0  ;;  %6070 = vmatprep.subr.mxu0 %v4860_v55  ;;  %6126 = vmatprep.subr.mxu1 %v4878_v62  ;;  %v10577_v20 = vld [vmem:[#allocation44_spill] sm:$0xff]  ;;  %v10578_v50 = vld [vmem:[#allocation53_spill] sm:$0xff] }
 0x13c   : > { %v1466_v22 = vsel %vm10416_vm6, %v1324_v4, 0.0  ;;  %v1052_v42 = vadd.f32 %v7840_v36, %v1051_v25  ;;  %v1334_v34 = vadd.f32 %v7845_v37, %v1333_v43  ;;  %vm10424_vm11 = vcmp.eq.s32.totalorder %v10577_v20, 1  ;;  %v5890_v4 = vpop.f32.mrf.mxu0  ;;  %v8001_v56 = vpop.f32.mrf.mxu1  ;;  %v4859_v43 = vld [vmem:[%s10307_s3 + $0x368] sm:$0xff]  ;;  %6071 = vmatpush3.msra.mxu0 %v4860_v55  ;;  %6127 = vmatpush3.msra.mxu1 %v4878_v62  ;;  %v4876_v55 = vld [vmem:[%s10307_s3 + $0x3e0] sm:$0xff] }
 0x13d   : > { %vm10427_vm12 = vcmp.eq.s32.totalorder %v10578_v50, 1  ;;  %vm10579_vm13 = vcmp.eq.s32.totalorder %v7724_v2, 1  ;;  %v909_v54 = vsel %vm893_vm8, %v795_v30, 0.0  ;;  %v7999_v5 = vmax.f32 %v1481_v59, 0.0  ;;  %5991 = vmatprep.mubr.f32.mxu0 %v7979_v11  ;;  %6047 = vmatprep.mubr.f32.mxu1 %v7979_v11  ;;  %v10580_v25 = vld [vmem:[#allocation51_spill] sm:$0xff]  ;;  %v10591_v50 = vld [vmem:[#allocation54_spill] sm:$0xff] }
 0x13e   : > { %v643_v15 = vsel %vm10579_vm13, %v529_v57, 0.0  ;;  %v1482_v58 = vadd.f32 %v1466_v22, %v1200_v35  ;;  %v4877_v57 = vld [vmem:[%s10307_s3 + $0x3e8] sm:$0xff]  ;;  %v524_v30 = vadd.f32 %v7751_v32, %v10580_v25  ;;  %v1467_v59 = vsel %vm10418_vm10, %v1329_v53, 0.0  ;;  %v1061_v53 = vpop.f32.mrf.mxu0  ;;  %v1343_v25 = vpop.f32.mrf.mxu1  ;;  %6072 = vmatprep.subr.mxu0 %v4859_v43 }
 0x13f   : > { %v1187_v35 = vsel %vm10407_vm3, %v1057_v12, 0.0  ;;  %v1186_v22 = vsel %vm10406_vm14, %v1052_v42, 0.0  ;;  %v790_v2 = vadd.f32 %v7756_v40, %v10581_v60  ;;  %v1483_v52 = vadd.f32 %v1467_v59, %v1201_v39  ;;  %5992 = vmatmul.mubr.f32.gmra.mxu0 %v7999_v5  ;;  %6048 = vmatmul.mubr.f32.gmra.mxu1 %v7999_v5  ;;  %v4858_v12 = vld [vmem:[%s10307_s3 + $0x360] sm:$0xff]  ;;  %v8032_v60 = vpop.permute.xlu1 %877  ;;  %v10584_v59 = vld [vmem:[#allocation56_spill] sm:$0xff] }
 0x140   : > { %v8021_v45 = vmax.f32 %v1482_v58, 0.0  ;;  %v1202_v47 = vadd.f32 %v1186_v22, %v7895_v46  ;;  %10582 = vst [vmem:[#allocation49_spill] sm:$0xff] %v8032_v60  ;;  %v1339_v62 = vadd.f32 %v5943_v0, %v7845_v37  ;;  %v1468_v46 = vsel %vm10412_vm15, %v1334_v34, 0.0  ;;  %6128 = vmatprep.subr.mxu1 %v4877_v57  ;;  %v10583_v58 = vld [vmem:[#allocation50_spill] sm:$0xff]  ;;  %6073 = vmatpush3.msra.mxu0 %v4859_v43  ;;  %v5893_v0 = vpop.f32.mrf.mxu0  ;;  %v8043_v34 = vpop.f32.mrf.mxu1 }
 0x141   : > { %v1067_v39 = vadd.f32 %v5890_v4, %v7840_v36  ;;  %v1062_v42 = vadd.f32 %v7840_v36, %v1061_v53  ;;  %vm10470_vm13 = vcmp.eq.s32.totalorder %v10583_v58, 1  ;;  %vm10429_vm14 = vcmp.eq.s32.totalorder %v10584_v59, 1  ;;  %6129 = vmatpush3.msra.mxu1 %v4877_v57  ;;  %v10585_v4 = vld [vmem:[#allocation59_spill] sm:$0xff]  ;;  %6074 = vmatprep.subr.mxu0 %v4858_v12 }
 0x142   : > { %vm894_vm3 = vcmp.eq.s32.totalorder %v7796_v33, 1  ;;  %v922_v22 = vadd.f32 %v906_v6, %v640_v8  ;;  %v1203_v1 = vadd.f32 %v1187_v35, %v7892_v49  ;;  %v1484_v18 = vadd.f32 %v1468_v46, %v1202_v47  ;;  %6130 = vmatprep.subr.mxu1 %v4876_v55  ;;  %5994 = vmatprep.mubr.f32.mxu0 %v8021_v45  ;;  %v10587_v35 = vld [vmem:[#allocation57_spill] sm:$0xff]  ;;  %v10588_v46 = vld [vmem:[#allocation58_spill] sm:$0xff] }
 0x143   : > { %vm628_vm15 = vcmp.eq.s32.totalorder %v10585_v4, 1  ;;  %v923_v53 = vadd.f32 %v7966_v28, %v7949_v21  ;;  %v1188_v51 = vsel %vm10417_vm5, %v1062_v42, 0.0  ;;  %v1344_v6 = vadd.f32 %v7845_v37, %v1343_v25  ;;  %6050 = vmatprep.mubr.f32.mxu1 %v8021_v45  ;;  %v4857_v21 = vld [vmem:[%s10307_s3 + $0x358] sm:$0xff]  ;;  %6075 = vmatpush3.msra.mxu0 %v4858_v12  ;;  %v4856_v12 = vld [vmem:[%s10307_s3 + $0x350] sm:$0xff] }
 0x144   : > { %vm10466_vm6 = vcmp.eq.s32.totalorder %v7821_v61, 1  ;;  %v8054_v47 = vadd.f32 %v909_v54, %v643_v15  ;;  %v642_v49 = vsel %vm10425_vm1, %v524_v30, 0.0  ;;  %v8058_v8 = vmax.f32 %v1483_v52, 0.0  ;;  %v4875_v28 = vld [vmem:[%s10307_s3 + $0x3d8] sm:$0xff]  ;;  %v1071_v15 = vpop.f32.mrf.mxu0  ;;  %v1353_v54 = vpop.f32.mrf.mxu1  ;;  %6131 = vmatpush3.msra.mxu1 %v4876_v55  ;;  %v4874_v55 = vld [vmem:[%s10307_s3 + $0x3d0] sm:$0xff]  ;;  %6076 = vmatprep.subr.mxu0 %v4857_v21 }
 0x145   : > { %v1204_v43 = vadd.f32 %v1188_v51, %v922_v22  ;;  %v908_v57 = vsel %vm10421_vm0, %v790_v2, 0.0  ;;  %v1469_v51 = vsel %vm10420_vm2, %v1339_v62, 0.0  ;;  %v1189_v52 = vsel %vm10419_vm7, %v1067_v39, 0.0  ;;  %6132 = vmatprep.subr.mxu1 %v4875_v28  ;;  %6077 = vmatpush3.msra.mxu0 %v4857_v21 }
 0x146   : > { %v1072_v30 = vadd.f32 %v7840_v36, %v1071_v15  ;;  %vm629_vm5 = vcmp.eq.s32.totalorder %v7865_v63, 1  ;;  %vm895_vm10 = vcmp.eq.s32.totalorder %v7880_v41, 1  ;;  %v534_v25 = vadd.f32 %v7751_v32, %v10587_v35  ;;  %5995 = vmatmul.mubr.f32.gmra.mxu0 %v8058_v8  ;;  %6051 = vmatmul.mubr.f32.gmra.mxu1 %v8058_v8  ;;  %v5896_v62 = vpop.f32.mrf.mxu0  ;;  %v8091_v39 = vpop.f32.mrf.mxu1 }
 0x147   : > { %v800_v2 = vadd.f32 %v7756_v40, %v10588_v46  ;;  %v1485_v42 = vadd.f32 %v1469_v51, %v1203_v1  ;;  %v8081_v22 = vmax.f32 %v1484_v18, 0.0  ;;  %v8093_v15 = vpop.permute.xlu1 %614  ;;  %v1349_v1 = vadd.f32 %v8001_v56, %v7845_v37  ;;  %6133 = vmatpush3.msra.mxu1 %v4875_v28  ;;  %6078 = vmatprep.subr.mxu0 %v4856_v12 }
 0x148   : > { %10589 = vst [vmem:[#allocation16_spill] sm:$0xff] %v8093_v15  ;;  %v1470_v18 = vsel %vm10424_vm11, %v1344_v6, 0.0  ;;  %v1077_v51 = vadd.f32 %v5893_v0, %v7840_v36  ;;  %v1190_v35 = vsel %vm10427_vm12, %v1072_v30, 0.0  ;;  %vm10467_vm7 = vcmp.eq.s32.totalorder %v7909_v48, 1  ;;  %v1081_v56 = vpop.f32.mrf.mxu0  ;;  %v8107_v0 = vpop.permute.xlu0 %880  ;;  %6134 = vmatprep.subr.mxu1 %v4874_v55  ;;  %6079 = vmatpush3.msra.mxu0 %v4856_v12  ;;  %v4872_v12 = vld [vmem:[%s10307_s3 + $0x3c0] sm:$0xff] }
 0x149   : > { %vm10463_vm2 = vcmp.eq.s32.totalorder %v7962_v24, 1  ;;  %vm10432_vm0 = vcmp.eq.s32.totalorder %v7924_v44, 1  ;;  %v924_v46 = vadd.f32 %v908_v57, %v642_v49  ;;  %v1205_v17 = vadd.f32 %v1189_v52, %v923_v53  ;;  %10590 = vst [vmem:[#allocation51_spill] sm:$0xff] %v8107_v0  ;;  %v10592_v53 = vld [vmem:[#allocation55_spill] sm:$0xff]  ;;  %5997 = vmatprep.mubr.f32.mxu0 %v8081_v22  ;;  %6053 = vmatprep.mubr.f32.mxu1 %v8081_v22  ;;  %v1363_v52 = vpop.f32.mrf.mxu1 }
 0x14a   : > { %v1486_v3 = vadd.f32 %v1470_v18, %v1204_v43  ;;  %vm10433_vm11 = vcmp.eq.s32.totalorder %v8032_v60, 1  ;;  %vm10436_vm1 = vcmp.eq.s32.totalorder %v7985_v13, 1  ;;  %v1354_v6 = vadd.f32 %v7845_v37, %v1353_v54  ;;  %v4855_v54 = vld [vmem:[%s10307_s3 + $0x348] sm:$0xff]  ;;  %6135 = vmatpush3.msra.mxu1 %v4874_v55 }
 0x14b   : > { %v1082_v30 = vadd.f32 %v7840_v36, %v1081_v56  ;;  %v539_v49 = vadd.f32 %v10591_v50, %v7751_v32  ;;  %v805_v43 = vadd.f32 %v10592_v53, %v7756_v40  ;;  %v8115_v21 = vmax.f32 %v1485_v42, 0.0  ;;  %v4873_v57 = vld [vmem:[%s10307_s3 + $0x3c8] sm:$0xff]  ;;  %v8125_v50 = vpop.f32.mrf.mxu0  ;;  %6080 = vmatprep.subr.mxu0 %v4855_v54  ;;  %v8161_v58 = vpop.f32.mrf.mxu1 }
 0x14c   : > { %v1206_v28 = vadd.f32 %v1190_v35, %v924_v46  ;;  %v644_v42 = vsel %vm628_vm15, %v534_v25, 0.0  ;;  %v910_v18 = vsel %vm894_vm3, %v800_v2, 0.0  ;;  %v1471_v35 = vsel %vm10470_vm13, %v1349_v1, 0.0  ;;  %v4854_v2 = vld [vmem:[%s10307_s3 + $0x340] sm:$0xff]  ;;  %6136 = vmatprep.subr.mxu1 %v4873_v57  ;;  %6081 = vmatpush3.msra.mxu0 %v4855_v54  ;;  %v10596_v54 = vld [vmem:[#allocation61_spill] sm:$0xff]  ;;  %v10600_v13 = vld [vmem:[#allocation3_spill] sm:$0xff] }
 0x14d   : > { %v1191_v46 = vsel %vm10429_vm14, %v1077_v51, 0.0  ;;  %vm631_vm12 = vcmp.eq.s32.totalorder %v8093_v15, 1  ;;  %v544_v56 = vadd.f32 %v7751_v32, %v7816_v14  ;;  %v810_v53 = vadd.f32 %v7756_v40, %v7818_v7  ;;  %5998 = vmatmul.mubr.f32.gmra.mxu0 %v8115_v21  ;;  %6054 = vmatmul.mubr.f32.gmra.mxu1 %v8115_v21  ;;  %v1091_v55 = vpop.f32.mrf.mxu0  ;;  %v8150_v14 = vpop.permute.xlu1 %1438 }
 0x14e   : > { %v1487_v25 = vadd.f32 %v1471_v35, %v1205_v17  ;;  %v8140_v20 = vmax.f32 %v1486_v3, 0.0  ;;  %10593 = vst [vmem:[#allocation52_spill] sm:$0xff] %v8150_v14  ;;  %v1359_v7 = vadd.f32 %v8043_v34, %v7845_v37  ;;  %v1472_v3 = vsel %vm10466_vm6, %v1354_v6, 0.0  ;;  %6137 = vmatpush3.msra.mxu1 %v4873_v57  ;;  %v8167_v6 = vpop.permute.xlu0 %1159  ;;  %6082 = vmatprep.subr.mxu0 %v4854_v2 }
 0x14f   : > { %v1087_v17 = vadd.f32 %v5896_v62, %v7840_v36  ;;  %v1192_v1 = vsel %vm10432_vm0, %v1082_v30, 0.0  ;;  %vm10435_vm14 = vcmp.eq.s32.totalorder %v8048_v16, 1  ;;  %v926_v51 = vadd.f32 %v910_v18, %v644_v42  ;;  %10594 = vst [vmem:[#allocation57_spill] sm:$0xff] %v8167_v6  ;;  %6138 = vmatprep.subr.mxu1 %v4872_v12  ;;  %6083 = vmatpush3.msra.mxu0 %v4854_v2  ;;  %v4870_v2 = vld [vmem:[%s10307_s3 + $0x3b0] sm:$0xff] }
 0x150   : > { %v1207_v35 = vadd.f32 %v1191_v46, %v8054_v47  ;;  %v1488_v59 = vadd.f32 %v1472_v3, %v1206_v28  ;;  %v645_v34 = vsel %vm629_vm5, %v539_v49, 0.0  ;;  %v911_v62 = vsel %vm895_vm10, %v805_v43, 0.0  ;;  %v10595_v47 = vld [vmem:[#allocation60_spill] sm:$0xff]  ;;  %6000 = vmatprep.mubr.f32.mxu0 %v8140_v20  ;;  %6056 = vmatprep.mubr.f32.mxu1 %v8140_v20  ;;  %v4853_v43 = vld [vmem:[%s10307_s3 + $0x338] sm:$0xff] }
 0x151   : > { %v1364_v30 = vadd.f32 %v7845_v37, %v1363_v52  ;;  %v1092_v42 = vadd.f32 %v7840_v36, %v1091_v55  ;;  %v549_v28 = vadd.f32 %v10595_v47, %v7751_v32  ;;  %v815_v57 = vadd.f32 %v10596_v54, %v7756_v40  ;;  %v4871_v52 = vld [vmem:[%s10307_s3 + $0x3b8] sm:$0xff]  ;;  %6139 = vmatpush3.msra.mxu1 %v4872_v12  ;;  %v8204_v12 = vpop.permute.xlu1 %1162  ;;  %v4869_v54 = vld [vmem:[%s10307_s3 + $0x3a8] sm:$0xff] }
 0x152   : > { %v8175_v18 = vmax.f32 %v1487_v25, 0.0  ;;  %v1208_v49 = vadd.f32 %v1192_v1, %v926_v51  ;;  %v646_v32 = vsel %vm10436_vm1, %v544_v56, 0.0  ;;  %v912_v40 = vsel %vm10433_vm11, %v810_v53, 0.0  ;;  %v1373_v56 = vpop.f32.mrf.mxu1  ;;  %v4852_v53 = vld [vmem:[%s10307_s3 + $0x330] sm:$0xff]  ;;  %10597 = vst [vmem:[#allocation58_spill] sm:$0xff] %v8204_v12  ;;  %6084 = vmatprep.subr.mxu0 %v4853_v43  ;;  %6140 = vmatprep.subr.mxu1 %v4871_v52  ;;  %v8219_v47 = vpop.permute.xlu0 %1441 }
 0x153   : > { %v1473_v46 = vsel %vm10467_vm7, %v1359_v7, 0.0  ;;  %v1193_v25 = vsel %vm10463_vm2, %v1087_v17, 0.0  ;;  %v927_v55 = vadd.f32 %v911_v62, %v645_v34  ;;  %vm10434_vm0 = vcmp.eq.s32.totalorder %v8167_v6, 1  ;;  %6085 = vmatpush3.msra.mxu0 %v4853_v43  ;;  %6141 = vmatpush3.msra.mxu1 %v4871_v52  ;;  %10598 = vst [vmem:[#allocation54_spill] sm:$0xff] %v8219_v47 }
 0x154   : > { %v1489_v3 = vadd.f32 %v1473_v46, %v1207_v35  ;;  %v8194_v1 = vmax.f32 %v1488_v59, 0.0  ;;  %6001 = vmatmul.mubr.f32.gmra.mxu0 %v8175_v18  ;;  %6057 = vmatmul.mubr.f32.gmra.mxu1 %v8175_v18  ;;  %v1369_v7 = vadd.f32 %v8091_v39, %v7845_v37  ;;  %v1474_v59 = vsel %vm10435_vm14, %v1364_v30, 0.0  ;;  %v4868_v46 = vld [vmem:[%s10307_s3 + $0x3a0] sm:$0xff] }
 0x155   : > { %v1097_v17 = vadd.f32 %v8125_v50, %v7840_v36  ;;  %v1194_v51 = vsel %vm10434_vm0, %v1092_v42, 0.0  ;;  %vm897_vm11 = vcmp.eq.s32.totalorder %v8107_v0, 1  ;;  %v928_v35 = vadd.f32 %v912_v40, %v646_v32  ;;  %6086 = vmatprep.subr.mxu0 %v4852_v53  ;;  %6142 = vmatprep.subr.mxu1 %v4870_v2  ;;  %v4850_v40 = vld [vmem:[%s10307_s3 + $0x320] sm:$0xff]  ;;  %v10611_v0 = vld [vmem:[#allocation8_spill] sm:$0xff] }
 0x156   : > { %v1209_v34 = vadd.f32 %v1193_v25, %v927_v55  ;;  %v1490_v62 = vadd.f32 %v1474_v59, %v1208_v49  ;;  %v647_v39 = vsel %vm631_vm12, %v549_v28, 0.0  ;;  %v913_v30 = vsel %vm897_vm11, %v815_v57, 0.0  ;;  %6003 = vmatprep.mubr.f32.mxu0 %v8194_v1  ;;  %6059 = vmatprep.mubr.f32.mxu1 %v8194_v1  ;;  %v4851_v28 = vld [vmem:[%s10307_s3 + $0x328] sm:$0xff]  ;;  %v8249_v25 = vpop.permute.xlu1 %1444 }
 0x157   : > { %v1374_v36 = vadd.f32 %v7845_v37, %v1373_v56  ;;  %vm10460_vm0 = vcmp.eq.s32.totalorder %v8150_v14, 1  ;;  %vm10437_vm14 = vcmp.eq.s32.totalorder %v8204_v12, 1  ;;  %v8224_v50 = vmax.f32 %v1489_v3, 0.0  ;;  %6087 = vmatpush3.msra.mxu0 %v4852_v53  ;;  %6143 = vmatpush3.msra.mxu1 %v4870_v2  ;;  %10599 = vst [vmem:[#allocation55_spill] sm:$0xff] %v8249_v25 }
 0x158   : > { %v1210_v42 = vadd.f32 %v1194_v51, %v928_v35  ;;  %v1475_v57 = vsel %vm10460_vm0, %v1369_v7, 0.0  ;;  %v1195_v49 = vsel %vm10437_vm14, %v1097_v17, 0.0  ;;  %v929_v43 = vadd.f32 %v913_v30, %v647_v39  ;;  %6088 = vmatprep.subr.mxu0 %v4851_v28  ;;  %6144 = vmatprep.subr.mxu1 %v4869_v54  ;;  %v4848_v51 = vld [vmem:[%s10307_s3 + $0x310] sm:$0xff]  ;;  %v4865_v39 = vld [vmem:[%s10307_s3 + $0x388] sm:$0xff]  ;;  %v4846_v30 = vld [vmem:[%s10307_s3 + $0x300] sm:$0xff] }
 0x159   : > { %vm10456_vm1 = vcmp.eq.s32.totalorder %v8219_v47, 1  ;;  %v1491_v52 = vadd.f32 %v1475_v57, %v1209_v34  ;;  %v8239_v32 = vmax.f32 %v1490_v62, 0.0  ;;  %6004 = vmatmul.mubr.f32.gmra.mxu0 %v8224_v50  ;;  %6060 = vmatmul.mubr.f32.gmra.mxu1 %v8224_v50  ;;  %v1379_v55 = vadd.f32 %v8161_v58, %v7845_v37  ;;  %v4849_v37 = vld [vmem:[%s10307_s3 + $0x318] sm:$0xff]  ;;  %v4866_v35 = vld [vmem:[%s10307_s3 + $0x390] sm:$0xff]  ;;  %v4847_v62 = vld [vmem:[%s10307_s3 + $0x308] sm:$0xff] }
 0x15a   : > { %v1476_v3 = vsel %vm10456_vm1, %v1374_v36, 0.0  ;;  %v1211_v56 = vadd.f32 %v1195_v49, %v929_v43  ;;  %6089 = vmatpush3.msra.mxu0 %v4851_v28  ;;  %6145 = vmatpush3.msra.mxu1 %v4869_v54  ;;  %vm10457_vm14 = vcmp.eq.s32.totalorder %v8249_v25, 1  ;;  %v4867_v58 = vld [vmem:[%s10307_s3 + $0x398] sm:$0xff]  ;;  %v4864_v36 = vld [vmem:[%s10307_s3 + $0x380] sm:$0xff]  ;;  %v4891_v28 = vld [vmem:[%s10307_s3 + $0x448] sm:$0xff]  ;;  %vm10601_vm1 = vcmp.eq.s32.totalorder %v10600_v13, 1 }
 0x15b   : > { %v1492_v53 = vadd.f32 %v1476_v3, %v1210_v42  ;;  %6090 = vmatprep.subr.mxu0 %v4850_v40  ;;  %6146 = vmatprep.subr.mxu1 %v4868_v46  ;;  %v8256_v2 = vmax.f32 %v1491_v52, 0.0  ;;  %v1477_v7 = vsel %vm10457_vm14, %v1379_v55, 0.0  ;;  %v4907_v42 = vld [vmem:[%s10307_s3 + $0x648] sm:$0xff]  ;;  %v4906_v54 = vld [vmem:[%s10307_s3 + $0x640] sm:$0xff]  ;;  %v4905_v49 = vld [vmem:[%s10307_s3 + $0x638] sm:$0xff]  ;;  %vm10608_vm6 = vcmp.eq.s32.totalorder %v7586_v38, 1 }
 0x15c   : > { %6006 = vmatprep.mubr.f32.mxu0 %v8239_v32  ;;  %6062 = vmatprep.mubr.f32.mxu1 %v8239_v32  ;;  %v1493_v59 = vadd.f32 %v1477_v7, %v1211_v56  ;;  %v4890_v57 = vld [vmem:[%s10307_s3 + $0x440] sm:$0xff]  ;;  %v4889_v43 = vld [vmem:[%s10307_s3 + $0x438] sm:$0xff]  ;;  %v4904_v52 = vld [vmem:[%s10307_s3 + $0x630] sm:$0xff]  ;;  %vm10612_vm13 = vcmp.eq.s32.totalorder %v10611_v0, 1 }
 0x15d   : > { %6091 = vmatpush3.msra.mxu0 %v4850_v40  ;;  %6147 = vmatpush3.msra.mxu1 %v4868_v46  ;;  %v1508_v17 = vmax.f32 %v1492_v53, 0.0  ;;  %v4903_v40 = vld [vmem:[%s10307_s3 + $0x628] sm:$0xff]  ;;  %v4902_v55 = vld [vmem:[%s10307_s3 + $0x620] sm:$0xff]  ;;  %v4901_v56 = vld [vmem:[%s10307_s3 + $0x618] sm:$0xff] }
 0x15e   : > { %6007 = vmatmul.mubr.f32.gmra.mxu0 %v8256_v2  ;;  %6063 = vmatmul.mubr.f32.gmra.mxu1 %v8256_v2  ;;  %v1509_v34 = vmax.f32 %v1493_v59, 0.0  ;;  %v4887_v46 = vld [vmem:[%s10307_s3 + $0x428] sm:$0xff]  ;;  %v4886_v3 = vld [vmem:[%s10307_s3 + $0x420] sm:$0xff]  ;;  %v4885_v53 = vld [vmem:[%s10307_s3 + $0x418] sm:$0xff] }
 0x15f   : > { %6092 = vmatprep.subr.mxu0 %v4849_v37  ;;  %6148 = vmatprep.subr.mxu1 %v4867_v58  ;;  %v4883_v7 = vld [vmem:[%s10307_s3 + $0x408] sm:$0xff]  ;;  %v4898_v59 = vld [vmem:[%s10307_s3 + $0x600] sm:$0xff] }
 0x160   : > { %6093 = vmatpush3.msra.mxu0 %v4849_v37  ;;  %6149 = vmatpush3.msra.mxu1 %v4867_v58  ;;  %v4884_v37 = vld [vmem:[%s10307_s3 + $0x410] sm:$0xff]  ;;  %v4899_v58 = vld [vmem:[%s10307_s3 + $0x608] sm:$0xff] }
 0x161   : > { %6094 = vmatprep.subr.mxu0 %v4848_v51  ;;  %6150 = vmatprep.subr.mxu1 %v4866_v35 }
 0x162   : > { %6009 = vmatprep.mubr.f32.mxu0 %v1508_v17  ;;  %6065 = vmatprep.mubr.f32.mxu1 %v1508_v17 }
 0x163   : > { %6095 = vmatpush3.msra.mxu0 %v4848_v51  ;;  %6151 = vmatpush3.msra.mxu1 %v4866_v35  ;;  %v4882_v51 = vld [vmem:[%s10307_s3 + $0x400] sm:$0xff]  ;;  %v8422_v35 = vld [vmem:[%s8413_s13 + $0x8] sm:$0xff] }
 0x164   : > { %6010 = vmatmul.mubr.f32.gmra.mxu0 %v1509_v34  ;;  %6066 = vmatmul.mubr.f32.gmra.mxu1 %v1509_v34 }
 0x165   : > { %6096 = vmatprep.subr.mxu0 %v4847_v62  ;;  %6152 = vmatprep.subr.mxu1 %v4865_v39 }
 0x166   : > { %6097 = vmatpush3.msra.mxu0 %v4847_v62  ;;  %6100 = vmatprep.mubr.f32.mxu0 %v7936_v10  ;;  %v8432_v62 = vld [vmem:[%s10307_s3 + $0x4f8] sm:$0xff] }
 0x167   : > { %6153 = vmatpush3.msra.mxu1 %v4865_v39  ;;  %6156 = vmatprep.mubr.f32.mxu1 %v7936_v10  ;;  %v4896_v10 = vld [vmem:[%s10307_s3 + $0x470] sm:$0xff] }
 0x168   : > { %6098 = vmatprep.subr.mxu0 %v4846_v30  ;;  %6154 = vmatprep.subr.mxu1 %v4864_v36  ;;  %v4946_v39 = vld [vmem:[%s10307_s3 + $0x6f0] sm:$0xff] }
 0x169   : > { %6099 = vmatpush3.msra.mxu0 %v4846_v30  ;;  %6155 = vmatpush3.msra.mxu1 %v4864_v36  ;;  %v8438_v30 = vld [vmem:[%s8413_s13 + $0x10] sm:$0xff]  ;;  %v8442_v36 = vld [vmem:[%s8413_s13 + $0x18] sm:$0xff] }
 0x16a   : > { %6101 = vmatmul.mubr.f32.vlgmr.msra.gmra.mxu0 %v7934_v9  ;;  %6157 = vmatmul.mubr.f32.vlgmr.msra.gmra.mxu1 %v7934_v9  ;;  %v4912_v9 = vld [vmem:[%s10307_s3 + $0x670] sm:$0xff] }
 0x16b   : > { %6103 = vmatprep.mubr.f32.mxu0 %v7979_v11  ;;  %6159 = vmatprep.mubr.f32.mxu1 %v7979_v11  ;;  %v4913_v11 = vld [vmem:[%s10307_s3 + $0x678] sm:$0xff] }
 0x16c   : > { %6180 = vmatprep.subr.mxu0 %v4913_v11 }
 0x16d   : > { %6181 = vmatpush3.msra.mxu0 %v4913_v11  ;;  %v4945_v11 = vld [vmem:[%s10307_s3 + $0x6e8] sm:$0xff] }
 0x16e   : > { %6104 = vmatmul.mubr.f32.gmra.mxu0 %v7999_v5  ;;  %6160 = vmatmul.mubr.f32.gmra.mxu1 %v7999_v5  ;;  %v4895_v5 = vld [vmem:[%s10307_s3 + $0x468] sm:$0xff] }
 0x16f   : > { %6106 = vmatprep.mubr.f32.mxu0 %v8021_v45  ;;  %6162 = vmatprep.mubr.f32.mxu1 %v8021_v45  ;;  %v4897_v45 = vld [vmem:[%s10307_s3 + $0x478] sm:$0xff] }
 0x170   : > { %6236 = vmatprep.subr.mxu1 %v4897_v45  ;;  %6182 = vmatprep.subr.mxu0 %v4912_v9 }
 0x171   : > { %6237 = vmatpush3.msra.mxu1 %v4897_v45  ;;  %6183 = vmatpush3.msra.mxu0 %v4912_v9  ;;  %v4944_v45 = vld [vmem:[%s10307_s3 + $0x6e0] sm:$0xff] }
 0x172   : > { %6107 = vmatmul.mubr.f32.gmra.mxu0 %v8058_v8  ;;  %6163 = vmatmul.mubr.f32.gmra.mxu1 %v8058_v8  ;;  %v4910_v8 = vld [vmem:[%s10307_s3 + $0x660] sm:$0xff] }
 0x173   : > { %6109 = vmatprep.mubr.f32.mxu0 %v8081_v22  ;;  %6165 = vmatprep.mubr.f32.mxu1 %v8081_v22  ;;  %v4894_v22 = vld [vmem:[%s10307_s3 + $0x460] sm:$0xff] }
 0x174   : > { %6238 = vmatprep.subr.mxu1 %v4896_v10  ;;  %v8453_v9 = vld [vmem:[%s8413_s13 + $0x20] sm:$0xff] }
 0x175   : > { %6239 = vmatpush3.msra.mxu1 %v4896_v10  ;;  %v8457_v10 = vld [vmem:[%s8413_s13 + $0x28] sm:$0xff] }
 0x176   : > { %6110 = vmatmul.mubr.f32.gmra.mxu0 %v8115_v21  ;;  %6166 = vmatmul.mubr.f32.gmra.mxu1 %v8115_v21  ;;  %v4909_v21 = vld [vmem:[%s10307_s3 + $0x658] sm:$0xff] }
 0x177   : > { %6112 = vmatprep.mubr.f32.mxu0 %v8140_v20  ;;  %6168 = vmatprep.mubr.f32.mxu1 %v8140_v20  ;;  %v4911_v20 = vld [vmem:[%s10307_s3 + $0x668] sm:$0xff] }
 0x178   : > { %6184 = vmatprep.subr.mxu0 %v4911_v20  ;;  %6240 = vmatprep.subr.mxu1 %v4895_v5 }
 0x179   : > { %6185 = vmatpush3.msra.mxu0 %v4911_v20  ;;  %6241 = vmatpush3.msra.mxu1 %v4895_v5  ;;  %v4943_v20 = vld [vmem:[%s10307_s3 + $0x6d8] sm:$0xff]  ;;  %v4942_v5 = vld [vmem:[%s10307_s3 + $0x6d0] sm:$0xff] }
 0x17a   : > { %6113 = vmatmul.mubr.f32.gmra.mxu0 %v8175_v18  ;;  %6169 = vmatmul.mubr.f32.gmra.mxu1 %v8175_v18  ;;  %v4893_v18 = vld [vmem:[%s10307_s3 + $0x458] sm:$0xff] }
 0x17b   : > { %6115 = vmatprep.mubr.f32.mxu0 %v8194_v1  ;;  %6171 = vmatprep.mubr.f32.mxu1 %v8194_v1  ;;  %v4908_v1 = vld [vmem:[%s10307_s3 + $0x650] sm:$0xff] }
 0x17c   : > { %6186 = vmatprep.subr.mxu0 %v4910_v8  ;;  %6242 = vmatprep.subr.mxu1 %v4894_v22 }
 0x17d   : > { %6187 = vmatpush3.msra.mxu0 %v4910_v8  ;;  %6243 = vmatpush3.msra.mxu1 %v4894_v22  ;;  %v8467_v8 = vld [vmem:[%s8413_s13 + $0x30] sm:$0xff]  ;;  %v8471_v22 = vld [vmem:[%s8413_s13 + $0x38] sm:$0xff] }
 0x17e   : > { %6116 = vmatmul.mubr.f32.gmra.mxu0 %v8224_v50  ;;  %6172 = vmatmul.mubr.f32.gmra.mxu1 %v8224_v50  ;;  %v4892_v50 = vld [vmem:[%s10307_s3 + $0x450] sm:$0xff] }
 0x17f   : > { %6118 = vmatprep.mubr.f32.mxu0 %v8239_v32  ;;  %6174 = vmatprep.mubr.f32.mxu1 %v8239_v32  ;;  %v4888_v32 = vld [vmem:[%s10307_s3 + $0x430] sm:$0xff] }
 0x180   : > { %6188 = vmatprep.subr.mxu0 %v4909_v21  ;;  %6244 = vmatprep.subr.mxu1 %v4893_v18 }
 0x181   : > { %6189 = vmatpush3.msra.mxu0 %v4909_v21  ;;  %6245 = vmatpush3.msra.mxu1 %v4893_v18  ;;  %v4941_v21 = vld [vmem:[%s10307_s3 + $0x6c8] sm:$0xff]  ;;  %v4940_v18 = vld [vmem:[%s10307_s3 + $0x6c0] sm:$0xff] }
 0x182   : > { %6119 = vmatmul.mubr.f32.gmra.mxu0 %v8256_v2  ;;  %6175 = vmatmul.mubr.f32.gmra.mxu1 %v8256_v2  ;;  %v4900_v2 = vld [vmem:[%s10307_s3 + $0x610] sm:$0xff] }
 0x183   : > { %6121 = vmatprep.mubr.f32.mxu0 %v1508_v17  ;;  %6177 = vmatprep.mubr.f32.mxu1 %v1508_v17  ;;  %v8416_v17 = vld [vmem:[%s8413_s13] sm:$0xff] }
 0x184   : > { %6190 = vmatprep.subr.mxu0 %v4908_v1  ;;  %6246 = vmatprep.subr.mxu1 %v4892_v50 }
 0x185   : > { %6191 = vmatpush3.msra.mxu0 %v4908_v1  ;;  %6247 = vmatpush3.msra.mxu1 %v4892_v50  ;;  %v8481_v1 = vld [vmem:[%s8413_s13 + $0x40] sm:$0xff]  ;;  %v8485_v50 = vld [vmem:[%s8413_s13 + $0x48] sm:$0xff] }
 0x186   : > { %6122 = vmatmul.mubr.f32.gmra.mxu0 %v1509_v34  ;;  %6178 = vmatmul.mubr.f32.gmra.mxu1 %v1509_v34  ;;  %v4947_v34 = vld [vmem:[%s10307_s3 + $0x6f8] sm:$0xff] }
 0x187   : > { %6192 = vmatprep.subr.mxu0 %v4907_v42  ;;  %6248 = vmatprep.subr.mxu1 %v4891_v28 }
 0x188   : > { %6193 = vmatpush3.msra.mxu0 %v4907_v42  ;;  %6249 = vmatpush3.msra.mxu1 %v4891_v28  ;;  %v4939_v42 = vld [vmem:[%s10307_s3 + $0x6b8] sm:$0xff]  ;;  %v4938_v28 = vld [vmem:[%s10307_s3 + $0x6b0] sm:$0xff] }
 0x189   : > { %6194 = vmatprep.subr.mxu0 %v4906_v54  ;;  %6250 = vmatprep.subr.mxu1 %v4890_v57 }
 0x18a   : > { %6195 = vmatpush3.msra.mxu0 %v4906_v54  ;;  %6251 = vmatpush3.msra.mxu1 %v4890_v57  ;;  %v8495_v54 = vld [vmem:[%s8413_s13 + $0x50] sm:$0xff]  ;;  %v8499_v57 = vld [vmem:[%s8413_s13 + $0x58] sm:$0xff] }
 0x18b   : > { %6196 = vmatprep.subr.mxu0 %v4905_v49  ;;  %6252 = vmatprep.subr.mxu1 %v4889_v43 }
 0x18c   : > { %6197 = vmatpush3.msra.mxu0 %v4905_v49  ;;  %6253 = vmatpush3.msra.mxu1 %v4889_v43  ;;  %v4937_v49 = vld [vmem:[%s10307_s3 + $0x6a8] sm:$0xff]  ;;  %v4936_v43 = vld [vmem:[%s10307_s3 + $0x6a0] sm:$0xff] }
 0x18d   : > { %6198 = vmatprep.subr.mxu0 %v4904_v52  ;;  %6254 = vmatprep.subr.mxu1 %v4888_v32 }
 0x18e   : > { %6199 = vmatpush3.msra.mxu0 %v4904_v52  ;;  %6255 = vmatpush3.msra.mxu1 %v4888_v32  ;;  %v8509_v52 = vld [vmem:[%s8413_s13 + $0x60] sm:$0xff]  ;;  %v8513_v32 = vld [vmem:[%s8413_s13 + $0x68] sm:$0xff] }
 0x18f   : > { %6200 = vmatprep.subr.mxu0 %v4903_v40  ;;  %6256 = vmatprep.subr.mxu1 %v4887_v46 }
 0x190   : > { %6201 = vmatpush3.msra.mxu0 %v4903_v40  ;;  %6257 = vmatpush3.msra.mxu1 %v4887_v46  ;;  %v4935_v40 = vld [vmem:[%s10307_s3 + $0x698] sm:$0xff]  ;;  %v4934_v46 = vld [vmem:[%s10307_s3 + $0x690] sm:$0xff] }
 0x191   : > { %6202 = vmatprep.subr.mxu0 %v4902_v55  ;;  %6258 = vmatprep.subr.mxu1 %v4886_v3 }
 0x192   : > { %6203 = vmatpush3.msra.mxu0 %v4902_v55  ;;  %6259 = vmatpush3.msra.mxu1 %v4886_v3  ;;  %v8523_v55 = vld [vmem:[%s8413_s13 + $0x70] sm:$0xff]  ;;  %v8527_v3 = vld [vmem:[%s8413_s13 + $0x78] sm:$0xff] }
 0x193   : > { %6204 = vmatprep.subr.mxu0 %v4901_v56  ;;  %6260 = vmatprep.subr.mxu1 %v4885_v53 }
 0x194   : > { %6205 = vmatpush3.msra.mxu0 %v4901_v56  ;;  %6261 = vmatpush3.msra.mxu1 %v4885_v53  ;;  %v4933_v56 = vld [vmem:[%s10307_s3 + $0x688] sm:$0xff]  ;;  %v4932_v53 = vld [vmem:[%s10307_s3 + $0x680] sm:$0xff] }
 0x195   : > { %6206 = vmatprep.subr.mxu0 %v4900_v2  ;;  %6262 = vmatprep.subr.mxu1 %v4884_v37 }
 0x196   : > { %6207 = vmatpush3.msra.mxu0 %v4900_v2  ;;  %6263 = vmatpush3.msra.mxu1 %v4884_v37  ;;  %v4981_v2 = vld [vmem:[%s10307_s3 + $0x778] sm:$0xff]  ;;  %v4980_v37 = vld [vmem:[%s10307_s3 + $0x770] sm:$0xff] }
 0x197   : > { %6208 = vmatprep.subr.mxu0 %v4899_v58  ;;  %6264 = vmatprep.subr.mxu1 %v4883_v7 }
 0x198   : > { %6209 = vmatpush3.msra.mxu0 %v4899_v58  ;;  %6265 = vmatpush3.msra.mxu1 %v4883_v7  ;;  %v4979_v58 = vld [vmem:[%s10307_s3 + $0x768] sm:$0xff]  ;;  %v4978_v7 = vld [vmem:[%s10307_s3 + $0x760] sm:$0xff] }
 0x199   : > { %6210 = vmatprep.subr.mxu0 %v4898_v59  ;;  %6212 = vmatprep.mubr.f32.mxu0 %v8416_v17 }
 0x19a   : > { %6211 = vmatpush3.msra.mxu0 %v4898_v59  ;;  %6266 = vmatprep.subr.mxu1 %v4882_v51  ;;  %v4977_v59 = vld [vmem:[%s10307_s3 + $0x758] sm:$0xff] }
 0x19b   : > { %6213 = vmatmul.mubr.f32.vlgmr.msra.gmra.mxu0 %v8422_v35  ;;  %6267 = vmatpush3.msra.mxu1 %v4882_v51  ;;  %v4976_v51 = vld [vmem:[%s10307_s3 + $0x750] sm:$0xff] }
 0x19c   : > { %6292 = vmatprep.subr.mxu0 %v4947_v34  ;;  %6348 = vmatprep.subr.mxu1 %v8432_v62 }
 0x19d   : > { %6293 = vmatpush3.msra.mxu0 %v4947_v34  ;;  %6215 = vmatprep.mubr.f32.mxu0 %v8438_v30  ;;  %v4975_v34 = vld [vmem:[%s10307_s3 + $0x748] sm:$0xff] }
 0x19e   : > { %6294 = vmatprep.subr.mxu0 %v4946_v39 }
 0x19f   : > { %6295 = vmatpush3.msra.mxu0 %v4946_v39  ;;  %v4974_v39 = vld [vmem:[%s10307_s3 + $0x740] sm:$0xff] }
 0x1a0   : > { %6216 = vmatmul.mubr.f32.gmra.mxu0 %v8442_v36  ;;  %6296 = vmatprep.subr.mxu0 %v4945_v11 }
 0x1a1   : > { %6297 = vmatpush3.msra.mxu0 %v4945_v11  ;;  %6218 = vmatprep.mubr.f32.mxu0 %v8453_v9  ;;  %v4973_v11 = vld [vmem:[%s10307_s3 + $0x738] sm:$0xff] }
 0x1a2   : > { %6298 = vmatprep.subr.mxu0 %v4944_v45 }
 0x1a3   : > { %6299 = vmatpush3.msra.mxu0 %v4944_v45  ;;  %v4972_v45 = vld [vmem:[%s10307_s3 + $0x730] sm:$0xff] }
 0x1a4   : > { %6219 = vmatmul.mubr.f32.gmra.mxu0 %v8457_v10  ;;  %6300 = vmatprep.subr.mxu0 %v4943_v20 }
 0x1a5   : > { %6301 = vmatpush3.msra.mxu0 %v4943_v20  ;;  %6221 = vmatprep.mubr.f32.mxu0 %v8467_v8  ;;  %v4971_v20 = vld [vmem:[%s10307_s3 + $0x728] sm:$0xff] }
 0x1a6   : > { %6302 = vmatprep.subr.mxu0 %v4942_v5 }
 0x1a7   : > { %6303 = vmatpush3.msra.mxu0 %v4942_v5  ;;  %v4970_v5 = vld [vmem:[%s10307_s3 + $0x720] sm:$0xff] }
 0x1a8   : > { %6222 = vmatmul.mubr.f32.gmra.mxu0 %v8471_v22  ;;  %6304 = vmatprep.subr.mxu0 %v4941_v21 }
 0x1a9   : > { %6305 = vmatpush3.msra.mxu0 %v4941_v21  ;;  %6224 = vmatprep.mubr.f32.mxu0 %v8481_v1  ;;  %v4969_v21 = vld [vmem:[%s10307_s3 + $0x718] sm:$0xff] }
 0x1aa   : > { %6306 = vmatprep.subr.mxu0 %v4940_v18 }
 0x1ab   : > { %6307 = vmatpush3.msra.mxu0 %v4940_v18  ;;  %v4968_v18 = vld [vmem:[%s10307_s3 + $0x710] sm:$0xff] }
 0x1ac   : > { %6225 = vmatmul.mubr.f32.gmra.mxu0 %v8485_v50  ;;  %6308 = vmatprep.subr.mxu0 %v4939_v42 }
 0x1ad   : > { %6309 = vmatpush3.msra.mxu0 %v4939_v42  ;;  %6227 = vmatprep.mubr.f32.mxu0 %v8495_v54  ;;  %v4967_v42 = vld [vmem:[%s10307_s3 + $0x708] sm:$0xff] }
 0x1ae   : > { %6310 = vmatprep.subr.mxu0 %v4938_v28 }
 0x1af   : > { %6311 = vmatpush3.msra.mxu0 %v4938_v28  ;;  %v4966_v28 = vld [vmem:[%s10307_s3 + $0x700] sm:$0xff] }
 0x1b0   : > { %6228 = vmatmul.mubr.f32.gmra.mxu0 %v8499_v57  ;;  %6312 = vmatprep.subr.mxu0 %v4937_v49 }
 0x1b1   : > { %6313 = vmatpush3.msra.mxu0 %v4937_v49  ;;  %6230 = vmatprep.mubr.f32.mxu0 %v8509_v52  ;;  %v5015_v49 = vld [vmem:[%s10307_s3 + $0x7f8] sm:$0xff] }
 0x1b2   : > { %6314 = vmatprep.subr.mxu0 %v4936_v43 }
 0x1b3   : > { %6315 = vmatpush3.msra.mxu0 %v4936_v43  ;;  %v5014_v43 = vld [vmem:[%s10307_s3 + $0x7f0] sm:$0xff] }
 0x1b4   : > { %6231 = vmatmul.mubr.f32.gmra.mxu0 %v8513_v32  ;;  %6316 = vmatprep.subr.mxu0 %v4935_v40 }
 0x1b5   : > { %6317 = vmatpush3.msra.mxu0 %v4935_v40  ;;  %6233 = vmatprep.mubr.f32.mxu0 %v8523_v55  ;;  %v5013_v40 = vld [vmem:[%s10307_s3 + $0x7e8] sm:$0xff] }
 0x1b6   : > { %6318 = vmatprep.subr.mxu0 %v4934_v46 }
 0x1b7   : > { %6319 = vmatpush3.msra.mxu0 %v4934_v46  ;;  %v5012_v46 = vld [vmem:[%s10307_s3 + $0x7e0] sm:$0xff] }
 0x1b8   : > { %6234 = vmatmul.mubr.f32.gmra.mxu0 %v8527_v3  ;;  %6320 = vmatprep.subr.mxu0 %v4933_v56 }
 0x1b9   : > { %6321 = vmatpush3.msra.mxu0 %v4933_v56  ;;  %6324 = vmatprep.mubr.f32.mxu0 %v8416_v17 }
 0x1ba   : > { %6322 = vmatprep.subr.mxu0 %v4932_v53 }
 0x1bb   : > { %6323 = vmatpush3.msra.mxu0 %v4932_v53 }
 0x1bc   : > { %6325 = vmatmul.mubr.f32.vlgmr.msra.gmra.mxu0 %v8422_v35  ;;  %6404 = vmatprep.subr.mxu0 %v4981_v2 }
 0x1bd   : > { %6405 = vmatpush3.msra.mxu0 %v4981_v2  ;;  %6327 = vmatprep.mubr.f32.mxu0 %v8438_v30  ;;  %v5011_v2 = vld [vmem:[%s10307_s3 + $0x7d8] sm:$0xff] }
 0x1be   : > { %6406 = vmatprep.subr.mxu0 %v4980_v37 }
 0x1bf   : > { %6407 = vmatpush3.msra.mxu0 %v4980_v37 }
 0x1c0   : > { %6328 = vmatmul.mubr.f32.gmra.mxu0 %v8442_v36  ;;  %6408 = vmatprep.subr.mxu0 %v4979_v58 }
 0x1c1   : > { %6409 = vmatpush3.msra.mxu0 %v4979_v58  ;;  %6330 = vmatprep.mubr.f32.mxu0 %v8453_v9 }
 0x1c2   : > { %6410 = vmatprep.subr.mxu0 %v4978_v7 }
 0x1c3   : > { %6411 = vmatpush3.msra.mxu0 %v4978_v7  ;;  %v5010_v7 = vld [vmem:[%s10307_s3 + $0x7d0] sm:$0xff] }
 0x1c4   : > { %6331 = vmatmul.mubr.f32.gmra.mxu0 %v8457_v10  ;;  %6412 = vmatprep.subr.mxu0 %v4977_v59 }
 0x1c5   : > { %6413 = vmatpush3.msra.mxu0 %v4977_v59  ;;  %6333 = vmatprep.mubr.f32.mxu0 %v8467_v8 }
 0x1c6   : > { %6414 = vmatprep.subr.mxu0 %v4976_v51 }
 0x1c7   : > { %6415 = vmatpush3.msra.mxu0 %v4976_v51 }
 0x1c8   : > { %6334 = vmatmul.mubr.f32.gmra.mxu0 %v8471_v22  ;;  %6416 = vmatprep.subr.mxu0 %v4975_v34 }
 0x1c9   : > { %6417 = vmatpush3.msra.mxu0 %v4975_v34  ;;  %6336 = vmatprep.mubr.f32.mxu0 %v8481_v1  ;;  %v5009_v34 = vld [vmem:[%s10307_s3 + $0x7c8] sm:$0xff] }
 0x1ca   : > { %6418 = vmatprep.subr.mxu0 %v4974_v39 }
 0x1cb   : > { %6419 = vmatpush3.msra.mxu0 %v4974_v39 }
 0x1cc   : > { %6337 = vmatmul.mubr.f32.gmra.mxu0 %v8485_v50  ;;  %6420 = vmatprep.subr.mxu0 %v4973_v11 }
 0x1cd   : > { %6421 = vmatpush3.msra.mxu0 %v4973_v11  ;;  %6339 = vmatprep.mubr.f32.mxu0 %v8495_v54 }
 0x1ce   : > { %6422 = vmatprep.subr.mxu0 %v4972_v45 }
 0x1cf   : > { %6423 = vmatpush3.msra.mxu0 %v4972_v45  ;;  %v5008_v45 = vld [vmem:[%s10307_s3 + $0x7c0] sm:$0xff] }
 0x1d0   : > { %6340 = vmatmul.mubr.f32.gmra.mxu0 %v8499_v57  ;;  %6424 = vmatprep.subr.mxu0 %v4971_v20 }
 0x1d1   : > { %6425 = vmatpush3.msra.mxu0 %v4971_v20  ;;  %6342 = vmatprep.mubr.f32.mxu0 %v8509_v52  ;;  %v5007_v20 = vld [vmem:[%s10307_s3 + $0x7b8] sm:$0xff] }
 0x1d2   : > { %6426 = vmatprep.subr.mxu0 %v4970_v5 }
 0x1d3   : > { %6427 = vmatpush3.msra.mxu0 %v4970_v5 }
 0x1d4   : > { %6343 = vmatmul.mubr.f32.gmra.mxu0 %v8513_v32  ;;  %6428 = vmatprep.subr.mxu0 %v4969_v21 }
 0x1d5   : > { %6429 = vmatpush3.msra.mxu0 %v4969_v21  ;;  %6345 = vmatprep.mubr.f32.mxu0 %v8523_v55 }
 0x1d6   : > { %6430 = vmatprep.subr.mxu0 %v4968_v18 }
 0x1d7   : > { %6431 = vmatpush3.msra.mxu0 %v4968_v18  ;;  %v5006_v18 = vld [vmem:[%s10307_s3 + $0x7b0] sm:$0xff] }
 0x1d8   : > { %6346 = vmatmul.mubr.f32.gmra.mxu0 %v8527_v3  ;;  %6432 = vmatprep.subr.mxu0 %v4967_v42 }
 0x1d9   : > { %6433 = vmatpush3.msra.mxu0 %v4967_v42  ;;  %6436 = vmatprep.mubr.f32.mxu0 %v8416_v17 }
 0x1da   : > { %6434 = vmatprep.subr.mxu0 %v4966_v28 }
 0x1db   : > { %6435 = vmatpush3.msra.mxu0 %v4966_v28 }
 0x1dc   : > { %6437 = vmatmul.mubr.f32.vlgmr.msra.gmra.mxu0 %v8422_v35  ;;  %6516 = vmatprep.subr.mxu0 %v5015_v49 }
 0x1dd   : > { %6517 = vmatpush3.msra.mxu0 %v5015_v49  ;;  %6439 = vmatprep.mubr.f32.mxu0 %v8438_v30  ;;  %v5005_v49 = vld [vmem:[%s10307_s3 + $0x7a8] sm:$0xff] }
 0x1de   : > { %6518 = vmatprep.subr.mxu0 %v5014_v43 }
 0x1df   : > { %6519 = vmatpush3.msra.mxu0 %v5014_v43  ;;  %v5004_v43 = vld [vmem:[%s10307_s3 + $0x7a0] sm:$0xff] }
 0x1e0   : > { %6440 = vmatmul.mubr.f32.gmra.mxu0 %v8442_v36  ;;  %6520 = vmatprep.subr.mxu0 %v5013_v40 }
 0x1e1   : > { %6521 = vmatpush3.msra.mxu0 %v5013_v40  ;;  %6442 = vmatprep.mubr.f32.mxu0 %v8453_v9 }
 0x1e2   : > { %6522 = vmatprep.subr.mxu0 %v5012_v46 }
 0x1e3   : > { %6523 = vmatpush3.msra.mxu0 %v5012_v46 }
 0x1e4   : > { %6443 = vmatmul.mubr.f32.gmra.mxu0 %v8457_v10  ;;  %6524 = vmatprep.subr.mxu0 %v5011_v2 }
 0x1e5   : > { %6525 = vmatpush3.msra.mxu0 %v5011_v2  ;;  %6445 = vmatprep.mubr.f32.mxu0 %v8467_v8  ;;  %v5003_v2 = vld [vmem:[%s10307_s3 + $0x798] sm:$0xff] }
 0x1e6   : > { %6526 = vmatprep.subr.mxu0 %v5010_v7 }
 0x1e7   : > { %6527 = vmatpush3.msra.mxu0 %v5010_v7 }
 0x1e8   : > { %6446 = vmatmul.mubr.f32.gmra.mxu0 %v8471_v22  ;;  %6528 = vmatprep.subr.mxu0 %v5009_v34 }
 0x1e9   : > { %6529 = vmatpush3.msra.mxu0 %v5009_v34  ;;  %6448 = vmatprep.mubr.f32.mxu0 %v8481_v1 }
 0x1ea   : > { %6530 = vmatprep.subr.mxu0 %v5008_v45 }
 0x1eb   : > { %6531 = vmatpush3.msra.mxu0 %v5008_v45  ;;  %v5002_v45 = vld [vmem:[%s10307_s3 + $0x790] sm:$0xff] }
 0x1ec   : > { %6449 = vmatmul.mubr.f32.gmra.mxu0 %v8485_v50  ;;  %6532 = vmatprep.subr.mxu0 %v5007_v20 }
 0x1ed   : > { %6533 = vmatpush3.msra.mxu0 %v5007_v20  ;;  %6451 = vmatprep.mubr.f32.mxu0 %v8495_v54  ;;  %v5001_v20 = vld [vmem:[%s10307_s3 + $0x788] sm:$0xff] }
 0x1ee   : > { %6534 = vmatprep.subr.mxu0 %v5006_v18 }
 0x1ef   : > { %6535 = vmatpush3.msra.mxu0 %v5006_v18 }
 0x1f0   : > { %6452 = vmatmul.mubr.f32.gmra.mxu0 %v8499_v57  ;;  %6536 = vmatprep.subr.mxu0 %v5005_v49 }
 0x1f1   : > { %6537 = vmatpush3.msra.mxu0 %v5005_v49  ;;  %6454 = vmatprep.mubr.f32.mxu0 %v8509_v52 }
 0x1f2   : > { %6538 = vmatprep.subr.mxu0 %v5004_v43 }
 0x1f3   : > { %6539 = vmatpush3.msra.mxu0 %v5004_v43  ;;  %v5000_v43 = vld [vmem:[%s10307_s3 + $0x780] sm:$0xff] }
 0x1f4   : > { %6455 = vmatmul.mubr.f32.gmra.mxu0 %v8513_v32  ;;  %6540 = vmatprep.subr.mxu0 %v5003_v2 }
 0x1f5   : > { %6541 = vmatpush3.msra.mxu0 %v5003_v2  ;;  %6457 = vmatprep.mubr.f32.mxu0 %v8523_v55  ;;  %v8697_v2 = vld [vmem:[%s10308_s4 + $0x4] ss:$0 sm:$0xff] }
 0x1f6   : > { %6542 = vmatprep.subr.mxu0 %v5002_v45 }
 0x1f7   : > { %6543 = vmatpush3.msra.mxu0 %v5002_v45  ;;  %v8702_v45 = vld [vmem:[%s10308_s4 + $0x5] ss:$0 sm:$0xff] }
 0x1f8   : > { %6458 = vmatmul.mubr.f32.gmra.mxu0 %v8527_v3  ;;  %6544 = vmatprep.subr.mxu0 %v5001_v20 }
 0x1f9   : > { %v8615_v56 = vpop.f32.mrf.mxu0  ;;  %v8617_v53 = vpop.f32.mrf.mxu1  ;;  %6545 = vmatpush3.msra.mxu0 %v5001_v20  ;;  %6548 = vmatprep.mubr.f32.mxu0 %v8416_v17 }
 0x1fa   : > { %6546 = vmatprep.subr.mxu0 %v5000_v43 }
 0x1fb   : > { %v8624_v37 = vpop.f32.mrf.mxu0  ;;  %v8626_v58 = vpop.f32.mrf.mxu1  ;;  %6547 = vmatpush3.msra.mxu0 %v5000_v43  ;;  %v1793_v43 = vadd.f32 %v8617_v53, %v8702_v45 }
 0x1fc   : > { %6549 = vmatmul.mubr.f32.vlgmr.msra.gmra.mxu0 %v8422_v35  ;;  %v1607_v35 = vadd.f32 %v8615_v56, %v8697_v2  ;;  %v1602_v16 = vadd.f32 %v8697_v2, %v8624_v37  ;;  %v1788_v44 = vadd.f32 %v8702_v45, %v8626_v58 }
 0x1fd   : > { %6551 = vmatprep.mubr.f32.mxu0 %v8438_v30 }
 0x1fe   : > { %v1681_v58 = vsel %vm10601_vm1, %v1607_v35, 0.0  ;;  %vm10613_vm1 = vcmp.eq.s32.totalorder %v7560_v26, 1 }
 0x1ff   : > { %v8632_v59 = vpop.f32.mrf.mxu0  ;;  %v8634_v51 = vpop.f32.mrf.mxu1 }
 0x200   : > { %6552 = vmatmul.mubr.f32.gmra.mxu0 %v8442_v36  ;;  %v1617_v30 = vadd.f32 %v8632_v59, %v8697_v2  ;;  %v1803_v14 = vadd.f32 %v8634_v51, %v8702_v45  ;;  %v10602_v36 = vld [vmem:[#allocation5_spill] sm:$0xff]  ;;  %v10604_v59 = vld [vmem:[#allocation2_spill] sm:$0xff]  ;;  %v10606_v51 = vld [vmem:[#allocation4_spill] sm:$0xff] }
 0x201   : > { %v8640_v39 = vpop.f32.mrf.mxu0  ;;  %v8642_v11 = vpop.f32.mrf.mxu1  ;;  %6554 = vmatprep.mubr.f32.mxu0 %v8453_v9  ;;  %vm10603_vm14 = vcmp.eq.s32.totalorder %v10602_v36, 1  ;;  %vm10605_vm0 = vcmp.eq.s32.totalorder %v10604_v59, 1  ;;  %vm10607_vm2 = vcmp.eq.s32.totalorder %v10606_v51, 1  ;;  %v10609_v9 = vld [vmem:[#allocation12_spill] sm:$0xff] }
 0x202   : > { %v1612_v56 = vadd.f32 %v8697_v2, %v8640_v39  ;;  %v1798_v53 = vadd.f32 %v8702_v45, %v8642_v11  ;;  %v1867_v24 = vsel %vm10603_vm14, %v1793_v43, 0.0  ;;  %v1680_v61 = vsel %vm10605_vm0, %v1602_v16, 0.0 }
 0x203   : > { %v1866_v48 = vsel %vm10607_vm2, %v1788_v44, 0.0  ;;  %v1683_v39 = vsel %vm10608_vm6, %v1617_v30, 0.0  ;;  %vm10610_vm7 = vcmp.eq.s32.totalorder %v10609_v9, 1  ;;  %vm10614_vm0 = vcmp.eq.s32.totalorder %v7644_v19, 1 }
 0x204   : > { %6555 = vmatmul.mubr.f32.gmra.mxu0 %v8457_v10  ;;  %v1869_v11 = vsel %vm10610_vm7, %v1803_v14, 0.0  ;;  %v1682_v35 = vsel %vm10612_vm13, %v1612_v56, 0.0  ;;  %v1868_v43 = vsel %vm10613_vm1, %v1798_v53, 0.0  ;;  %v8768_v51 = vadd.f32 %v1866_v48, %v1680_v61  ;;  %v10619_v48 = vld [vmem:[#allocation19_spill] sm:$0xff] }
 0x205   : > { %6557 = vmatprep.mubr.f32.mxu0 %v8467_v8  ;;  %vm10620_vm2 = vcmp.eq.s32.totalorder %v10619_v48, 1  ;;  %vm10625_vm1 = vcmp.eq.s32.totalorder %v7654_v31, 1 }
 0x206   : > { %v8652_v5 = vpop.f32.mrf.mxu0  ;;  %v8654_v21 = vpop.f32.mrf.mxu1 }
 0x207   : > { %v1627_v16 = vadd.f32 %v8652_v5, %v8697_v2  ;;  %v1813_v44 = vadd.f32 %v8654_v21, %v8702_v45 }
 0x208   : > { %v8660_v42 = vpop.f32.mrf.mxu0  ;;  %v8662_v28 = vpop.f32.mrf.mxu1  ;;  %6558 = vmatmul.mubr.f32.gmra.mxu0 %v8471_v22  ;;  %v10617_v22 = vld [vmem:[#allocation18_spill] sm:$0xff] }
 0x209   : > { %v1622_v10 = vadd.f32 %v8697_v2, %v8660_v42  ;;  %v1808_v14 = vadd.f32 %v8702_v45, %v8662_v28  ;;  %v1883_v28 = vadd.f32 %v1867_v24, %v1681_v58  ;;  %6560 = vmatprep.mubr.f32.mxu0 %v8481_v1  ;;  %vm10618_vm7 = vcmp.eq.s32.totalorder %v10617_v22, 1 }
 0x20b   : > { %v1684_v61 = vsel %vm10618_vm7, %v1622_v10, 0.0  ;;  %v1870_v24 = vsel %vm10620_vm2, %v1808_v14, 0.0  ;;  %v10629_v14 = vld [vmem:[#allocation38_spill] sm:$0xff] }
 0x20c   : > { %6561 = vmatmul.mubr.f32.gmra.mxu0 %v8485_v50  ;;  %v8824_v50 = vld [vmem:[%s10308_s4 + $0x7] ss:$0 sm:$0xff] }
 0x20d   : > { %v8672_v40 = vpop.f32.mrf.mxu0  ;;  %v8674_v46 = vpop.f32.mrf.mxu1  ;;  %6563 = vmatprep.mubr.f32.mxu0 %v8495_v54 }
 0x20e   : > { %v1637_v30 = vadd.f32 %v8672_v40, %v8697_v2  ;;  %v1823_v56 = vadd.f32 %v8674_v46, %v8702_v45  ;;  %v8770_v40 = vadd.f32 %v1869_v11, %v1683_v39  ;;  %v8772_v46 = vadd.f32 %v1868_v43, %v1682_v35  ;;  %v10623_v39 = vld [vmem:[#allocation30_spill] sm:$0xff]  ;;  %v10626_v35 = vld [vmem:[#allocation27_spill] sm:$0xff] }
 0x20f   : > { %v1631_v7 = vpop.f32.mrf.mxu0  ;;  %v1817_v34 = vpop.f32.mrf.mxu1  ;;  %vm10624_vm13 = vcmp.eq.s32.totalorder %v10623_v39, 1 }
 0x210   : > { %v1632_v8 = vadd.f32 %v8697_v2, %v1631_v7  ;;  %v1818_v53 = vadd.f32 %v8702_v45, %v1817_v34  ;;  %v1873_v11 = vsel %vm10624_vm13, %v1823_v56, 0.0  ;;  %6564 = vmatmul.mubr.f32.gmra.mxu0 %v8499_v57  ;;  %vm10638_vm13 = vcmp.eq.s32.totalorder %v10573_v29, 1  ;;  %v10639_v57 = vld [vmem:[#allocation7_spill] sm:$0xff] }
 0x211   : > { %6566 = vmatprep.mubr.f32.mxu0 %v8509_v52 }
 0x212   : > { %v1686_v1 = vsel %vm10625_vm1, %v1632_v8, 0.0  ;;  %vm10640_vm1 = vcmp.eq.s32.totalorder %v10639_v57, 1 }
 0x214   : > { %v6002_v18 = vpop.f32.mrf.mxu0  ;;  %v6058_v49 = vpop.f32.mrf.mxu1  ;;  %6567 = vmatmul.mubr.f32.gmra.mxu0 %v8513_v32 }
 0x215   : > { %v1647_v5 = vadd.f32 %v6002_v18, %v8697_v2  ;;  %v1833_v21 = vadd.f32 %v6058_v49, %v8702_v45  ;;  %v10615_v18 = vld [vmem:[#allocation22_spill] sm:$0xff]  ;;  %v10621_v49 = vld [vmem:[#allocation29_spill] sm:$0xff]  ;;  %6569 = vmatprep.mubr.f32.mxu0 %v8523_v55  ;;  %v10649_v55 = vld [vmem:[#allocation23_spill] sm:$0xff] }
 0x216   : > { %v1641_v47 = vpop.f32.mrf.mxu0  ;;  %v1827_v25 = vpop.f32.mrf.mxu1  ;;  %vm10616_vm6 = vcmp.eq.s32.totalorder %v10615_v18, 1  ;;  %vm10622_vm14 = vcmp.eq.s32.totalorder %v10621_v49, 1 }
 0x217   : > { %v1642_v26 = vadd.f32 %v8697_v2, %v1641_v47  ;;  %v1828_v42 = vadd.f32 %v8702_v45, %v1827_v25  ;;  %v1685_v47 = vsel %vm10614_vm0, %v1627_v16, 0.0  ;;  %v1871_v25 = vsel %vm10616_vm6, %v1813_v44, 0.0 }
 0x218   : > { %v1687_v58 = vsel %vm10622_vm14, %v1637_v30, 0.0  ;;  %vm10627_vm0 = vcmp.eq.s32.totalorder %v10626_v35, 1  ;;  %v1689_v48 = vsel %vm625_vm4, %v1647_v5, 0.0  ;;  %vm10630_vm6 = vcmp.eq.s32.totalorder %v10629_v14, 1  ;;  %v10631_v30 = vld [vmem:[#allocation34_spill] sm:$0xff]  ;;  %6570 = vmatmul.mubr.f32.gmra.mxu0 %v8527_v3 }
 0x219   : > { %v8704_v6 = vpop.f32.mrf.mxu0  ;;  %v8706_v12 = vpop.f32.mrf.mxu1  ;;  %v1872_v43 = vsel %vm10627_vm0, %v1818_v53, 0.0  ;;  %v1875_v22 = vsel %vm10630_vm6, %v1833_v21, 0.0  ;;  %vm10632_vm7 = vcmp.eq.s32.totalorder %v10631_v30, 1  ;;  %v1874_v13 = vsel %vm890_vm9, %v1828_v42, 0.0 }
 0x21a   : > { %v1688_v0 = vsel %vm10632_vm7, %v1642_v26, 0.0  ;;  %v1657_v8 = vadd.f32 %v8704_v6, %v8697_v2  ;;  %v1843_v53 = vadd.f32 %v8706_v12, %v8702_v45  ;;  %v8819_v26 = vld [vmem:[%s10308_s4 + $0x6] ss:$0 sm:$0xff]  ;;  %v8827_v6 = vadd.f32 %v1871_v25, %v1685_v47 }
 0x21b   : > { %v8709_v17 = vpop.f32.mrf.mxu0  ;;  %v8711_v20 = vpop.f32.mrf.mxu1  ;;  %v8829_v12 = vadd.f32 %v1870_v24, %v1684_v61  ;;  %v8834_v42 = vadd.f32 %v1872_v43, %v1686_v1  ;;  %v8839_v31 = vadd.f32 %v1875_v22, %v1689_v48  ;;  %v8841_v54 = vadd.f32 %v1874_v13, %v1688_v0 }
 0x21c   : > { %v1652_v5 = vadd.f32 %v8697_v2, %v8709_v17  ;;  %v1838_v21 = vadd.f32 %v8702_v45, %v8711_v20  ;;  %v8831_v17 = vadd.f32 %v1873_v11, %v1687_v58  ;;  %vm10637_vm14 = vcmp.eq.s32.totalorder %v10569_v27, 1 }
 0x21e   : > { %v6008_v37 = vpop.f32.mrf.mxu0  ;;  %v6064_v60 = vpop.f32.mrf.mxu1  ;;  %v1876_v22 = vsel %vm10638_vm13, %v1838_v21, 0.0  ;;  %v10643_v21 = vld [vmem:[#allocation6_spill] sm:$0xff] }
 0x21f   : > { %v1667_v20 = vadd.f32 %v6008_v37, %v8697_v2  ;;  %v1853_v56 = vadd.f32 %v6064_v60, %v8702_v45  ;;  %v10634_v37 = vld [vmem:[#allocation45_spill] sm:$0xff]  ;;  %vm10644_vm6 = vcmp.eq.s32.totalorder %v10643_v21, 1 }
 0x220   : > { %v1661_v36 = vpop.f32.mrf.mxu0  ;;  %v1847_v59 = vpop.f32.mrf.mxu1  ;;  %vm10635_vm2 = vcmp.eq.s32.totalorder %v10634_v37, 1 }
 0x221   : > { %v1662_v30 = vadd.f32 %v8697_v2, %v1661_v36  ;;  %v1848_v14 = vadd.f32 %v8702_v45, %v1847_v59  ;;  %v1691_v61 = vsel %vm10635_vm2, %v1657_v8, 0.0  ;;  %v1877_v36 = vsel %vm893_vm8, %v1843_v53, 0.0  ;;  %v10641_v53 = vld [vmem:[#allocation13_spill] sm:$0xff] }
 0x222   : > { %v1690_v59 = vsel %vm10637_vm14, %v1652_v5, 0.0  ;;  %v1693_v48 = vsel %vm629_vm5, %v1667_v20, 0.0  ;;  %v1879_v1 = vsel %vm895_vm10, %v1853_v56, 0.0  ;;  %vm10642_vm0 = vcmp.eq.s32.totalorder %v10641_v53, 1  ;;  %v10647_v53 = vld [vmem:[#allocation17_spill] sm:$0xff] }
 0x223   : > { %v1878_v43 = vsel %vm894_vm3, %v1848_v14, 0.0  ;;  %v8874_v56 = vadd.f32 %v1877_v36, %v1691_v61  ;;  %vm10648_vm2 = vcmp.eq.s32.totalorder %v10647_v53, 1  ;;  %v8886_v61 = vadd.f32 %v1879_v1, %v1693_v48 }
 0x224   : > { %v8774_v7 = vpop.f32.mrf.mxu0  ;;  %v8776_v34 = vpop.f32.mrf.mxu1  ;;  %vm10650_vm14 = vcmp.eq.s32.totalorder %v10649_v55, 1 }
 0x225   : > { %v1677_v3 = vadd.f32 %v8774_v7, %v8697_v2 }
 0x226   : > { %v8795_v16 = vpop.f32.mrf.mxu0  ;;  %v8797_v44 = vpop.f32.mrf.mxu1 }
 0x22a   : > { %v6102_v10 = vpop.f32.mrf.mxu0  ;;  %v6158_v35 = vpop.f32.mrf.mxu1 }
 0x22b   : > { %v1995_v47 = vadd.f32 %v6102_v10, %v8819_v26  ;;  %v2197_v25 = vadd.f32 %v6158_v35, %v8824_v50  ;;  %v1692_v35 = vsel %vm628_vm15, %v1662_v30, 0.0  ;;  %v8876_v30 = vadd.f32 %v1876_v22, %v1690_v59 }
 0x22c   : > { %v1989_v13 = vpop.f32.mrf.mxu0  ;;  %v2191_v0 = vpop.f32.mrf.mxu1  ;;  %v8888_v36 = vadd.f32 %v1878_v43, %v1692_v35 }
 0x22d   : > { %v2069_v24 = vsel %vm10640_vm1, %v1995_v47, 0.0  ;;  %v1990_v58 = vadd.f32 %v8819_v26, %v1989_v13  ;;  %v2192_v11 = vadd.f32 %v8824_v50, %v2191_v0  ;;  %v2271_v5 = vsel %vm10642_vm0, %v2197_v25, 0.0  ;;  %v10645_v25 = vld [vmem:[#allocation10_spill] sm:$0xff] }
 0x22e   : > { %v2085_v52 = vadd.f32 %v2069_v24, %v1883_v28  ;;  %v6105_v10 = vpop.f32.mrf.mxu0  ;;  %v6161_v8 = vpop.f32.mrf.mxu1  ;;  %vm10646_vm7 = vcmp.eq.s32.totalorder %v10645_v25, 1 }
 0x22f   : > { %v2068_v20 = vsel %vm10644_vm6, %v1990_v58, 0.0  ;;  %v2005_v47 = vadd.f32 %v6105_v10, %v8819_v26  ;;  %v2207_v13 = vadd.f32 %v6161_v8, %v8824_v50  ;;  %v2270_v58 = vsel %vm10646_vm7, %v2192_v11, 0.0  ;;  %v10651_v11 = vld [vmem:[#allocation14_spill] sm:$0xff] }
 0x230   : > { %v2287_v14 = vadd.f32 %v2271_v5, %v2085_v52  ;;  %v2084_v28 = vadd.f32 %v2068_v20, %v8768_v51  ;;  %v1999_v0 = vpop.f32.mrf.mxu0  ;;  %v2201_v24 = vpop.f32.mrf.mxu1  ;;  %vm10652_vm13 = vcmp.eq.s32.totalorder %v10651_v11, 1 }
 0x231   : > { %v2071_v10 = vsel %vm10648_vm2, %v2005_v47, 0.0  ;;  %v2000_v8 = vadd.f32 %v8819_v26, %v1999_v0  ;;  %v2202_v32 = vadd.f32 %v8824_v50, %v2201_v24  ;;  %v2273_v5 = vsel %vm10650_vm14, %v2207_v13, 0.0  ;;  %v10653_v24 = vld [vmem:[#allocation20_spill] sm:$0xff] }
 0x232   : > { %v2286_v59 = vadd.f32 %v2270_v58, %v2084_v28  ;;  %v2087_v51 = vadd.f32 %v2071_v10, %v8770_v40  ;;  %v6108_v22 = vpop.f32.mrf.mxu0  ;;  %v6164_v52 = vpop.f32.mrf.mxu1  ;;  %v8898_v48 = vmax.f32 %v2287_v14, 0.0  ;;  %vm10654_vm1 = vcmp.eq.s32.totalorder %v10653_v24, 1  ;;  %v10655_v58 = vld [vmem:[#allocation25_spill] sm:$0xff] }
 0x233   : > { %v2070_v20 = vsel %vm10652_vm13, %v2000_v8, 0.0  ;;  %v2015_v47 = vadd.f32 %v6108_v22, %v8819_v26  ;;  %v2217_v0 = vadd.f32 %v6164_v52, %v8824_v50  ;;  %v2272_v13 = vsel %vm10654_vm1, %v2202_v32, 0.0  ;;  %v4930_v32 = vld [vmem:[%s10307_s3 + $0x4f0] sm:$0xff] }
 0x234   : > { %v8900_v1 = vmax.f32 %v2286_v59, 0.0  ;;  %v2289_v35 = vadd.f32 %v2273_v5, %v2087_v51  ;;  %v2086_v40 = vadd.f32 %v2070_v20, %v8772_v46  ;;  %v2009_v43 = vpop.f32.mrf.mxu0  ;;  %v2211_v28 = vpop.f32.mrf.mxu1  ;;  %vm10656_vm0 = vcmp.eq.s32.totalorder %v10655_v58, 1  ;;  %v10657_v5 = vld [vmem:[#allocation31_spill] sm:$0xff] }
 0x235   : > { %v2073_v10 = vsel %vm10656_vm0, %v2015_v47, 0.0  ;;  %v2010_v8 = vadd.f32 %v8819_v26, %v2009_v43  ;;  %v2212_v22 = vadd.f32 %v8824_v50, %v2211_v28  ;;  %v1863_v14 = vadd.f32 %v8776_v34, %v8702_v45  ;;  %v10659_v47 = vld [vmem:[#allocation24_spill] sm:$0xff] }
 0x236   : > { %v2288_v59 = vadd.f32 %v2272_v13, %v2086_v40  ;;  %v2089_v46 = vadd.f32 %v2073_v10, %v8827_v6  ;;  %v6111_v51 = vpop.f32.mrf.mxu0  ;;  %v6167_v52 = vpop.f32.mrf.mxu1  ;;  %6268 = vmatprep.mubr.f32.mxu1 %v8900_v1  ;;  %vm10658_vm6 = vcmp.eq.s32.totalorder %v10657_v5, 1  ;;  %vm10660_vm7 = vcmp.eq.s32.totalorder %v10659_v47, 1 }
 0x237   : > { %v2275_v20 = vsel %vm10658_vm6, %v2217_v0, 0.0  ;;  %v2072_v7 = vsel %vm10660_vm7, %v2010_v8, 0.0  ;;  %v2025_v43 = vadd.f32 %v6111_v51, %v8819_v26  ;;  %v2227_v34 = vadd.f32 %v6167_v52, %v8824_v50  ;;  %6269 = vmatmul.mubr.f32.vlgmr.msra.gmra.mxu1 %v8898_v48  ;;  %v4929_v0 = vld [vmem:[%s10307_s3 + $0x4e8] sm:$0xff]  ;;  %v10661_v8 = vld [vmem:[#allocation28_spill] sm:$0xff]  ;;  %v10663_v52 = vld [vmem:[#allocation33_spill] sm:$0xff] }
 0x238   : > { %v8925_v6 = vmax.f32 %v2289_v35, 0.0  ;;  %v8927_v40 = vmax.f32 %v2288_v59, 0.0  ;;  %v2291_v28 = vadd.f32 %v2275_v20, %v2089_v46  ;;  %v2088_v13 = vadd.f32 %v2072_v7, %v8829_v12  ;;  %v2019_v10 = vpop.f32.mrf.mxu0  ;;  %v2221_v58 = vpop.f32.mrf.mxu1  ;;  %6349 = vmatpush3.msra.mxu1 %v8432_v62 }
 0x239   : > { %vm10662_vm2 = vcmp.eq.s32.totalorder %v10661_v8, 1  ;;  %vm10664_vm14 = vcmp.eq.s32.totalorder %v10663_v52, 1  ;;  %v2020_v59 = vadd.f32 %v8819_v26, %v2019_v10  ;;  %v2222_v46 = vadd.f32 %v8824_v50, %v2221_v58  ;;  %6350 = vmatprep.subr.mxu1 %v4930_v32  ;;  %v4928_v58 = vld [vmem:[%s10307_s3 + $0x4e0] sm:$0xff] }
 0x23a   : > { %v2274_v51 = vsel %vm10662_vm2, %v2212_v22, 0.0  ;;  %v2075_v35 = vsel %vm10664_vm14, %v2025_v43, 0.0  ;;  %v1695_v12 = vsel %vm631_vm12, %v1677_v3, 0.0  ;;  %v8944_v62 = vadd.f32 %v8697_v2, %v8795_v16  ;;  %v6114_v8 = vpop.f32.mrf.mxu0  ;;  %v6170_v22 = vpop.f32.mrf.mxu1  ;;  %6271 = vmatprep.mubr.f32.mxu1 %v8927_v40  ;;  %6351 = vmatpush3.msra.mxu1 %v4930_v32  ;;  %v10666_v3 = vld [vmem:[#allocation32_spill] sm:$0xff] }
 0x23b   : > { %v2290_v20 = vadd.f32 %v2274_v51, %v2088_v13  ;;  %v2091_v7 = vadd.f32 %v2075_v35, %v8831_v17  ;;  %vm10665_vm13 = vcmp.eq.s32.totalorder %v10571_v23, 1  ;;  %vm10667_vm1 = vcmp.eq.s32.totalorder %v10666_v3, 1  ;;  %6272 = vmatmul.mubr.f32.gmra.mxu1 %v8925_v6  ;;  %6352 = vmatprep.subr.mxu1 %v4929_v0 }
 0x23c   : > { %v2277_v43 = vsel %vm10665_vm13, %v2227_v34, 0.0  ;;  %v2074_v10 = vsel %vm10667_vm1, %v2020_v59, 0.0  ;;  %v2035_v2 = vadd.f32 %v6114_v8, %v8819_v26  ;;  %v2237_v16 = vadd.f32 %v6170_v22, %v8824_v50  ;;  %v2029_v35 = vpop.f32.mrf.mxu0  ;;  %v2231_v23 = vpop.f32.mrf.mxu1  ;;  %6353 = vmatpush3.msra.mxu1 %v4929_v0  ;;  %v4927_v34 = vld [vmem:[%s10307_s3 + $0x4d8] sm:$0xff]  ;;  %v10668_v8 = vld [vmem:[#allocation36_spill] sm:$0xff] }
 0x23d   : > { %v8958_v17 = vmax.f32 %v2291_v28, 0.0  ;;  %v8960_v32 = vmax.f32 %v2290_v20, 0.0  ;;  %v2293_v13 = vadd.f32 %v2277_v43, %v2091_v7  ;;  %v2090_v51 = vadd.f32 %v2074_v10, %v8834_v42  ;;  %v10670_v22 = vld [vmem:[#allocation41_spill] sm:$0xff]  ;;  %6354 = vmatprep.subr.mxu1 %v4928_v58 }
 0x23e   : > { %vm10669_vm0 = vcmp.eq.s32.totalorder %v10668_v8, 1  ;;  %vm10671_vm6 = vcmp.eq.s32.totalorder %v10670_v22, 1  ;;  %v2030_v28 = vadd.f32 %v8819_v26, %v2029_v35  ;;  %v2232_v20 = vadd.f32 %v8824_v50, %v2231_v23  ;;  %v6117_v5 = vpop.f32.mrf.mxu0  ;;  %v6173_v8 = vpop.f32.mrf.mxu1  ;;  %6355 = vmatpush3.msra.mxu1 %v4928_v58  ;;  %v10673_v23 = vld [vmem:[#allocation50_spill] sm:$0xff]  ;;  %v10675_v35 = vld [vmem:[#allocation40_spill] sm:$0xff] }
 0x23f   : > { %v2276_v59 = vsel %vm10669_vm0, %v2222_v46, 0.0  ;;  %v2077_v52 = vsel %vm10671_vm6, %v2035_v2, 0.0  ;;  %v1881_v42 = vsel %vm897_vm11, %v1863_v14, 0.0  ;;  %v1858_v0 = vadd.f32 %v8702_v45, %v8797_v44  ;;  %6274 = vmatprep.mubr.f32.mxu1 %v8960_v32  ;;  %v4926_v46 = vld [vmem:[%s10307_s3 + $0x4d0] sm:$0xff]  ;;  %6356 = vmatprep.subr.mxu1 %v4927_v34 }
 0x240   : > { %v2292_v43 = vadd.f32 %v2276_v59, %v2090_v51  ;;  %v2093_v10 = vadd.f32 %v2077_v52, %v8839_v31  ;;  %vm10674_vm7 = vcmp.eq.s32.totalorder %v10673_v23, 1  ;;  %vm10676_vm2 = vcmp.eq.s32.totalorder %v10675_v35, 1  ;;  %6275 = vmatmul.mubr.f32.gmra.mxu1 %v8958_v17  ;;  %v2039_v59 = vpop.f32.mrf.mxu0  ;;  %v2241_v23 = vpop.f32.mrf.mxu1 }
 0x241   : > { %v2279_v2 = vsel %vm10674_vm7, %v2237_v16, 0.0  ;;  %v2076_v14 = vsel %vm10676_vm2, %v2030_v28, 0.0  ;;  %v2045_v45 = vadd.f32 %v6117_v5, %v8819_v26  ;;  %v2247_v44 = vadd.f32 %v6173_v8, %v8824_v50  ;;  %6357 = vmatpush3.msra.mxu1 %v4927_v34  ;;  %v4925_v16 = vld [vmem:[%s10307_s3 + $0x4c8] sm:$0xff]  ;;  %v10677_v5 = vld [vmem:[#allocation44_spill] sm:$0xff] }
 0x242   : > { %v8988_v31 = vmax.f32 %v2293_v13, 0.0  ;;  %v8990_v52 = vmax.f32 %v2292_v43, 0.0  ;;  %v2295_v58 = vadd.f32 %v2279_v2, %v2093_v10  ;;  %v2092_v51 = vadd.f32 %v2076_v14, %v8841_v54  ;;  %v10679_v28 = vld [vmem:[#allocation56_spill] sm:$0xff]  ;;  %6358 = vmatprep.subr.mxu1 %v4926_v46  ;;  %v6120_v34 = vpop.f32.mrf.mxu0  ;;  %v6176_v14 = vpop.f32.mrf.mxu1 }
 0x243   : > { %vm10678_vm14 = vcmp.eq.s32.totalorder %v10677_v5, 1  ;;  %vm10680_vm13 = vcmp.eq.s32.totalorder %v10679_v28, 1  ;;  %v2040_v13 = vadd.f32 %v8819_v26, %v2039_v59  ;;  %v2242_v43 = vadd.f32 %v8824_v50, %v2241_v23  ;;  %6359 = vmatpush3.msra.mxu1 %v4926_v46  ;;  %v10681_v28 = vld [vmem:[#allocation66_spill] sm:$0xff]  ;;  %v10683_v59 = vld [vmem:[#allocation53_spill] sm:$0xff] }
 0x244   : > { %v2278_v8 = vsel %vm10678_vm14, %v2232_v20, 0.0  ;;  %v2079_v22 = vsel %vm10680_vm13, %v2045_v45, 0.0  ;;  %v1897_v10 = vadd.f32 %v1881_v42, %v1695_v12  ;;  %6277 = vmatprep.mubr.f32.mxu1 %v8990_v52  ;;  %v4924_v20 = vld [vmem:[%s10307_s3 + $0x4c0] sm:$0xff]  ;;  %vm10682_vm1 = vcmp.eq.s32.totalorder %v10681_v28, 1  ;;  %6360 = vmatprep.subr.mxu1 %v4925_v16  ;;  %v2251_v28 = vpop.f32.mrf.mxu1 }
 0x245   : > { %v2294_v54 = vadd.f32 %v2278_v8, %v2092_v51  ;;  %v2095_v2 = vadd.f32 %v2079_v22, %v8874_v56  ;;  %v2281_v45 = vsel %vm10682_vm1, %v2247_v44, 0.0  ;;  %vm10684_vm0 = vcmp.eq.s32.totalorder %v10683_v59, 1  ;;  %6278 = vmatmul.mubr.f32.gmra.mxu1 %v8988_v31  ;;  %v2049_v8 = vpop.f32.mrf.mxu0  ;;  %v4923_v44 = vld [vmem:[%s10307_s3 + $0x4b8] sm:$0xff] }
 0x246   : > { %v2078_v23 = vsel %vm10684_vm0, %v2040_v13, 0.0  ;;  %v2055_v12 = vadd.f32 %v6120_v34, %v8819_v26  ;;  %v2257_v42 = vadd.f32 %v6176_v14, %v8824_v50  ;;  %v9014_v56 = vmax.f32 %v2295_v58, 0.0  ;;  %6361 = vmatpush3.msra.mxu1 %v4925_v16  ;;  %v10685_v13 = vld [vmem:[#allocation63_spill] sm:$0xff]  ;;  %v10687_v14 = vld [vmem:[#allocation46_spill] sm:$0xff]  ;;  %v10691_v16 = vld [vmem:[#allocation49_spill] sm:$0xff] }
 0x247   : > { %v9016_v22 = vmax.f32 %v2294_v54, 0.0  ;;  %v2297_v46 = vadd.f32 %v2281_v45, %v2095_v2  ;;  %v2094_v51 = vadd.f32 %v2078_v23, %v8876_v30  ;;  %vm10686_vm6 = vcmp.eq.s32.totalorder %v10685_v13, 1  ;;  %6362 = vmatprep.subr.mxu1 %v4924_v20  ;;  %v10689_v30 = vld [vmem:[#allocation48_spill] sm:$0xff]  ;;  %v6123_v13 = vpop.f32.mrf.mxu0 }
 0x248   : > { %v2280_v34 = vsel %vm10686_vm6, %v2242_v43, 0.0  ;;  %vm10688_vm7 = vcmp.eq.s32.totalorder %v10687_v14, 1  ;;  %v2050_v58 = vadd.f32 %v8819_v26, %v2049_v8  ;;  %v2252_v54 = vadd.f32 %v8824_v50, %v2251_v28  ;;  %v6179_v43 = vpop.f32.mrf.mxu1  ;;  %6363 = vmatpush3.msra.mxu1 %v4924_v20  ;;  %v4922_v28 = vld [vmem:[%s10307_s3 + $0x4b0] sm:$0xff]  ;;  %v10695_v14 = vld [vmem:[#allocation67_spill] sm:$0xff] }
 0x249   : > { %v2081_v59 = vsel %vm10688_vm7, %v2055_v12, 0.0  ;;  %vm10690_vm2 = vcmp.eq.s32.totalorder %v10689_v30, 1  ;;  %vm10692_vm14 = vcmp.eq.s32.totalorder %v10691_v16, 1  ;;  %v2296_v23 = vadd.f32 %v2280_v34, %v2094_v51  ;;  %6280 = vmatprep.mubr.f32.mxu1 %v9016_v22  ;;  %v10693_v8 = vld [vmem:[#allocation52_spill] sm:$0xff]  ;;  %6364 = vmatprep.subr.mxu1 %v4923_v44  ;;  %v2059_v35 = vpop.f32.mrf.mxu0 }
 0x24a   : > { %v1694_v2 = vsel %vm10690_vm2, %v8944_v62, 0.0  ;;  %v1880_v45 = vsel %vm10692_vm14, %v1858_v0, 0.0  ;;  %v2097_v5 = vadd.f32 %v2081_v59, %v8886_v61  ;;  %v9038_v12 = vmax.f32 %v2297_v46, 0.0  ;;  %6281 = vmatmul.mubr.f32.gmra.mxu1 %v9014_v56  ;;  %v10697_v59 = vld [vmem:[#allocation15_spill] sm:$0xff] }
 0x24b   : > { %vm10694_vm13 = vcmp.eq.s32.totalorder %v10693_v8, 1  ;;  %vm10696_vm1 = vcmp.eq.s32.totalorder %v10695_v14, 1  ;;  %v2065_v51 = vadd.f32 %v6123_v13, %v8819_v26  ;;  %v9046_v61 = vmax.f32 %v2296_v23, 0.0  ;;  %v2261_v8 = vpop.f32.mrf.mxu1  ;;  %6365 = vmatpush3.msra.mxu1 %v4923_v44  ;;  %v4920_v44 = vld [vmem:[%s10307_s3 + $0x4a0] sm:$0xff] }
 0x24c   : > { %v2283_v62 = vsel %vm10694_vm13, %v2257_v42, 0.0  ;;  %v2080_v0 = vsel %vm10696_vm1, %v2050_v58, 0.0  ;;  %vm10698_vm0 = vcmp.eq.s32.totalorder %v10697_v59, 1  ;;  %v2267_v46 = vadd.f32 %v6179_v43, %v8824_v50  ;;  %v4921_v42 = vld [vmem:[%s10307_s3 + $0x4a8] sm:$0xff]  ;;  %v10699_v58 = vld [vmem:[#allocation58_spill] sm:$0xff]  ;;  %6366 = vmatprep.subr.mxu1 %v4922_v28  ;;  %v10701_v43 = vld [vmem:[#allocation57_spill] sm:$0xff] }
 0x24d   : > { %v2096_v20 = vadd.f32 %v2080_v0, %v8888_v36  ;;  %v2282_v34 = vsel %vm10698_vm0, %v2252_v54, 0.0  ;;  %v2299_v13 = vadd.f32 %v2283_v62, %v2097_v5  ;;  %vm10700_vm6 = vcmp.eq.s32.totalorder %v10699_v58, 1  ;;  %6283 = vmatprep.mubr.f32.mxu1 %v9046_v61  ;;  %6367 = vmatpush3.msra.mxu1 %v4922_v28  ;;  %v10705_v28 = vld [vmem:[#allocation54_spill] sm:$0xff] }
 0x24e   : > { %v2083_v14 = vsel %vm10700_vm6, %v2065_v51, 0.0  ;;  %v2060_v23 = vadd.f32 %v8819_v26, %v2059_v35  ;;  %v2262_v36 = vadd.f32 %v8824_v50, %v2261_v8  ;;  %v1896_v0 = vadd.f32 %v1880_v45, %v1694_v2  ;;  %6284 = vmatmul.mubr.f32.gmra.mxu1 %v9038_v12  ;;  %6368 = vmatprep.subr.mxu1 %v4921_v42  ;;  %v10703_v50 = vld [vmem:[#allocation55_spill] sm:$0xff]  ;;  %v4918_v51 = vld [vmem:[%s10307_s3 + $0x490] sm:$0xff] }
 0x24f   : > { %v2298_v54 = vadd.f32 %v2282_v34, %v2096_v20  ;;  %v2099_v59 = vadd.f32 %v2083_v14, %v1897_v10  ;;  %vm10702_vm7 = vcmp.eq.s32.totalorder %v10701_v43, 1  ;;  %vm10704_vm2 = vcmp.eq.s32.totalorder %v10703_v50, 1  ;;  %6369 = vmatpush3.msra.mxu1 %v4921_v42  ;;  %v4919_v10 = vld [vmem:[%s10307_s3 + $0x498] sm:$0xff] }
 0x250   : > { %v2082_v5 = vsel %vm10702_vm7, %v2060_v23, 0.0  ;;  %v2285_v35 = vsel %vm10704_vm2, %v2267_v46, 0.0  ;;  %v9073_v14 = vmax.f32 %v2299_v13, 0.0  ;;  %vm10706_vm14 = vcmp.eq.s32.totalorder %v10705_v28, 1  ;;  %6370 = vmatprep.subr.mxu1 %v4920_v44  ;;  %v4916_v46 = vld [vmem:[%s10307_s3 + $0x480] sm:$0xff]  ;;  %v4965_v42 = vld [vmem:[%s10307_s3 + $0x578] sm:$0xff] }
 0x251   : > { %v9066_v26 = vmax.f32 %v2298_v54, 0.0  ;;  %v2098_v2 = vadd.f32 %v2082_v5, %v1896_v0  ;;  %v2301_v45 = vadd.f32 %v2285_v35, %v2099_v59  ;;  %v2284_v8 = vsel %vm10706_vm14, %v2262_v36, 0.0  ;;  %6371 = vmatpush3.msra.mxu1 %v4920_v44  ;;  %v4917_v59 = vld [vmem:[%s10307_s3 + $0x488] sm:$0xff]  ;;  %v4964_v13 = vld [vmem:[%s10307_s3 + $0x570] sm:$0xff]  ;;  %v4962_v36 = vld [vmem:[%s10307_s3 + $0x560] sm:$0xff] }
 0x252   : > { %6372 = vmatprep.subr.mxu1 %v4919_v10  ;;  %v4963_v23 = vld [vmem:[%s10307_s3 + $0x568] sm:$0xff]  ;;  %v4961_v0 = vld [vmem:[%s10307_s3 + $0x558] sm:$0xff]  ;;  %v4960_v54 = vld [vmem:[%s10307_s3 + $0x550] sm:$0xff]  ;;  %vm10733_vm13 = vcmp.eq.s32.totalorder %v7586_v38, 1  ;;  %vm10734_vm1 = vcmp.eq.s32.totalorder %v10609_v9, 1  ;;  %vm10735_vm0 = vcmp.eq.s32.totalorder %v7644_v19, 1 }
 0x253   : > { %v2300_v62 = vadd.f32 %v2284_v8, %v2098_v2  ;;  %6286 = vmatprep.mubr.f32.mxu1 %v9066_v26  ;;  %6373 = vmatpush3.msra.mxu1 %v4919_v10  ;;  %v9087_v34 = vmax.f32 %v2301_v45, 0.0  ;;  %v4959_v44 = vld [vmem:[%s10307_s3 + $0x548] sm:$0xff]  ;;  %v4958_v5 = vld [vmem:[%s10307_s3 + $0x540] sm:$0xff]  ;;  %v4957_v35 = vld [vmem:[%s10307_s3 + $0x538] sm:$0xff]  ;;  %vm10736_vm6 = vcmp.eq.s32.totalorder %v10615_v18, 1  ;;  %vm10737_vm7 = vcmp.eq.s32.totalorder %v10621_v49, 1 }
 0x254   : > { %6287 = vmatmul.mubr.f32.gmra.mxu1 %v9073_v14  ;;  %6374 = vmatprep.subr.mxu1 %v4918_v51  ;;  %v4956_v2 = vld [vmem:[%s10307_s3 + $0x530] sm:$0xff]  ;;  %v4955_v10 = vld [vmem:[%s10307_s3 + $0x528] sm:$0xff]  ;;  %v4954_v45 = vld [vmem:[%s10307_s3 + $0x520] sm:$0xff]  ;;  %vm10738_vm2 = vcmp.eq.s32.totalorder %v10623_v39, 1 }
 0x255   : > { %v9082_v20 = vmax.f32 %v2300_v62, 0.0  ;;  %6375 = vmatpush3.msra.mxu1 %v4918_v51  ;;  %v4953_v8 = vld [vmem:[%s10307_s3 + $0x518] sm:$0xff]  ;;  %v4952_v62 = vld [vmem:[%s10307_s3 + $0x510] sm:$0xff]  ;;  %v4951_v51 = vld [vmem:[%s10307_s3 + $0x508] sm:$0xff] }
 0x256   : > { %6376 = vmatprep.subr.mxu1 %v4917_v59 }
 0x257   : > { %6289 = vmatprep.mubr.f32.mxu1 %v9082_v20  ;;  %6377 = vmatpush3.msra.mxu1 %v4917_v59  ;;  %v4950_v59 = vld [vmem:[%s10307_s3 + $0x500] sm:$0xff] }
 0x258   : > { %6290 = vmatmul.mubr.f32.gmra.mxu1 %v9087_v34  ;;  %6378 = vmatprep.subr.mxu1 %v4916_v46 }
 0x259   : > { %6380 = vmatprep.mubr.f32.mxu1 %v8900_v1  ;;  %6379 = vmatpush3.msra.mxu1 %v4916_v46  ;;  %v4999_v46 = vld [vmem:[%s10307_s3 + $0x5f8] sm:$0xff] }
 0x25a   : > { %6460 = vmatprep.subr.mxu1 %v4965_v42 }
 0x25c   : > { %6381 = vmatmul.mubr.f32.vlgmr.msra.gmra.mxu1 %v8898_v48 }
 0x25d   : > { %6383 = vmatprep.mubr.f32.mxu1 %v8927_v40  ;;  %6461 = vmatpush3.msra.mxu1 %v4965_v42  ;;  %v4998_v42 = vld [vmem:[%s10307_s3 + $0x5f0] sm:$0xff] }
 0x25e   : > { %6462 = vmatprep.subr.mxu1 %v4964_v13 }
 0x25f   : > { %6463 = vmatpush3.msra.mxu1 %v4964_v13  ;;  %v4997_v13 = vld [vmem:[%s10307_s3 + $0x5e8] sm:$0xff] }
 0x260   : > { %6384 = vmatmul.mubr.f32.gmra.mxu1 %v8925_v6  ;;  %6464 = vmatprep.subr.mxu1 %v4963_v23 }
 0x261   : > { %6386 = vmatprep.mubr.f32.mxu1 %v8960_v32  ;;  %6465 = vmatpush3.msra.mxu1 %v4963_v23  ;;  %v4996_v23 = vld [vmem:[%s10307_s3 + $0x5e0] sm:$0xff] }
 0x262   : > { %6466 = vmatprep.subr.mxu1 %v4962_v36 }
 0x263   : > { %6467 = vmatpush3.msra.mxu1 %v4962_v36  ;;  %v9174_v36 = vpop.f32.mrf.mxu0 }
 0x264   : > { %6387 = vmatmul.mubr.f32.gmra.mxu1 %v8958_v17  ;;  %6468 = vmatprep.subr.mxu1 %v4961_v0  ;;  %10707 = vst [vmem:[#allocation60_spill] sm:$0xff] %v9174_v36 }
 0x265   : > { %6389 = vmatprep.mubr.f32.mxu1 %v8990_v52  ;;  %6469 = vmatpush3.msra.mxu1 %v4961_v0  ;;  %v4995_v0 = vld [vmem:[%s10307_s3 + $0x5d8] sm:$0xff] }
 0x266   : > { %6470 = vmatprep.subr.mxu1 %v4960_v54 }
 0x267   : > { %6471 = vmatpush3.msra.mxu1 %v4960_v54  ;;  %v4994_v54 = vld [vmem:[%s10307_s3 + $0x5d0] sm:$0xff] }
 0x268   : > { %6390 = vmatmul.mubr.f32.gmra.mxu1 %v8988_v31  ;;  %6472 = vmatprep.subr.mxu1 %v4959_v44 }
 0x269   : > { %6392 = vmatprep.mubr.f32.mxu1 %v9016_v22  ;;  %6473 = vmatpush3.msra.mxu1 %v4959_v44  ;;  %v9184_v44 = vpop.f32.mrf.mxu0 }
 0x26a   : > { %6474 = vmatprep.subr.mxu1 %v4958_v5  ;;  %10708 = vst [vmem:[#allocation61_spill] sm:$0xff] %v9184_v44 }
 0x26b   : > { %6475 = vmatpush3.msra.mxu1 %v4958_v5  ;;  %v4993_v5 = vld [vmem:[%s10307_s3 + $0x5c8] sm:$0xff] }
 0x26c   : > { %6393 = vmatmul.mubr.f32.gmra.mxu1 %v9014_v56  ;;  %6476 = vmatprep.subr.mxu1 %v4957_v35 }
 0x26d   : > { %6395 = vmatprep.mubr.f32.mxu1 %v9046_v61  ;;  %6477 = vmatpush3.msra.mxu1 %v4957_v35  ;;  %v4992_v35 = vld [vmem:[%s10307_s3 + $0x5c0] sm:$0xff] }
 0x26e   : > { %6478 = vmatprep.subr.mxu1 %v4956_v2 }
 0x26f   : > { %6479 = vmatpush3.msra.mxu1 %v4956_v2  ;;  %v9194_v2 = vpop.f32.mrf.mxu0 }
 0x270   : > { %6396 = vmatmul.mubr.f32.gmra.mxu1 %v9038_v12  ;;  %6480 = vmatprep.subr.mxu1 %v4955_v10 }
 0x271   : > { %6398 = vmatprep.mubr.f32.mxu1 %v9066_v26  ;;  %6481 = vmatpush3.msra.mxu1 %v4955_v10  ;;  %v4991_v10 = vld [vmem:[%s10307_s3 + $0x5b8] sm:$0xff] }
 0x272   : > { %6482 = vmatprep.subr.mxu1 %v4954_v45  ;;  %v10763_v33 = vld [vmem:[#allocation61_spill] sm:$0xff] }
 0x273   : > { %6483 = vmatpush3.msra.mxu1 %v4954_v45  ;;  %v4990_v45 = vld [vmem:[%s10307_s3 + $0x5b0] sm:$0xff] }
 0x274   : > { %6399 = vmatmul.mubr.f32.gmra.mxu1 %v9073_v14  ;;  %6484 = vmatprep.subr.mxu1 %v4953_v8 }
 0x275   : > { %6401 = vmatprep.mubr.f32.mxu1 %v9082_v20  ;;  %6485 = vmatpush3.msra.mxu1 %v4953_v8  ;;  %v9204_v8 = vpop.f32.mrf.mxu0 }
 0x276   : > { %6486 = vmatprep.subr.mxu1 %v4952_v62  ;;  %10709 = vst [vmem:[#allocation68_spill] sm:$0xff] %v9204_v8 }
 0x277   : > { %6487 = vmatpush3.msra.mxu1 %v4952_v62  ;;  %v4989_v62 = vld [vmem:[%s10307_s3 + $0x5a8] sm:$0xff] }
 0x278   : > { %6402 = vmatmul.mubr.f32.gmra.mxu1 %v9087_v34  ;;  %6488 = vmatprep.subr.mxu1 %v4951_v51 }
 0x279   : > { %6489 = vmatpush3.msra.mxu1 %v4951_v51  ;;  %6492 = vmatprep.mubr.f32.mxu1 %v8900_v1  ;;  %v4988_v51 = vld [vmem:[%s10307_s3 + $0x5a0] sm:$0xff] }
 0x27a   : > { %6490 = vmatprep.subr.mxu1 %v4950_v59 }
 0x27b   : > { %6491 = vmatpush3.msra.mxu1 %v4950_v59  ;;  %v9214_v59 = vpop.f32.mrf.mxu0 }
 0x27c   : > { %6493 = vmatmul.mubr.f32.vlgmr.msra.gmra.mxu1 %v8898_v48  ;;  %6572 = vmatprep.subr.mxu1 %v4999_v46 }
 0x27d   : > { %6495 = vmatprep.mubr.f32.mxu1 %v8927_v40  ;;  %6573 = vmatpush3.msra.mxu1 %v4999_v46  ;;  %v4987_v46 = vld [vmem:[%s10307_s3 + $0x598] sm:$0xff]  ;;  %v10765_v63 = vld [vmem:[#allocation68_spill] sm:$0xff] }
 0x27e   : > { %6574 = vmatprep.subr.mxu1 %v4998_v42 }
 0x27f   : > { %6575 = vmatpush3.msra.mxu1 %v4998_v42  ;;  %v4986_v42 = vld [vmem:[%s10307_s3 + $0x590] sm:$0xff] }
 0x280   : > { %6496 = vmatmul.mubr.f32.gmra.mxu1 %v8925_v6  ;;  %6576 = vmatprep.subr.mxu1 %v4997_v13 }
 0x281   : > { %6498 = vmatprep.mubr.f32.mxu1 %v8960_v32  ;;  %6577 = vmatpush3.msra.mxu1 %v4997_v13  ;;  %v9224_v13 = vpop.f32.mrf.mxu0 }
 0x282   : > { %6578 = vmatprep.subr.mxu1 %v4996_v23  ;;  %10710 = vst [vmem:[#allocation69_spill] sm:$0xff] %v9224_v13 }
 0x283   : > { %6579 = vmatpush3.msra.mxu1 %v4996_v23  ;;  %v4985_v23 = vld [vmem:[%s10307_s3 + $0x588] sm:$0xff] }
 0x284   : > { %6499 = vmatmul.mubr.f32.gmra.mxu1 %v8958_v17  ;;  %6580 = vmatprep.subr.mxu1 %v4995_v0 }
 0x285   : > { %6501 = vmatprep.mubr.f32.mxu1 %v8990_v52  ;;  %6581 = vmatpush3.msra.mxu1 %v4995_v0  ;;  %v4984_v0 = vld [vmem:[%s10307_s3 + $0x580] sm:$0xff] }
 0x286   : > { %6582 = vmatprep.subr.mxu1 %v4994_v54 }
 0x287   : > { %6583 = vmatpush3.msra.mxu1 %v4994_v54  ;;  %v9234_v54 = vpop.f32.mrf.mxu0 }
 0x288   : > { %6502 = vmatmul.mubr.f32.gmra.mxu1 %v8988_v31  ;;  %6584 = vmatprep.subr.mxu1 %v4993_v5 }
 0x289   : > { %6504 = vmatprep.mubr.f32.mxu1 %v9016_v22  ;;  %6585 = vmatpush3.msra.mxu1 %v4993_v5  ;;  %v9238_v5 = vpop.f32.mrf.mxu0 }
 0x28a   : > { %6586 = vmatprep.subr.mxu1 %v4992_v35 }
 0x28b   : > { %6587 = vmatpush3.msra.mxu1 %v4992_v35  ;;  %v9242_v35 = vpop.f32.mrf.mxu0 }
 0x28c   : > { %6505 = vmatmul.mubr.f32.gmra.mxu1 %v9014_v56  ;;  %6588 = vmatprep.subr.mxu1 %v4991_v10 }
 0x28d   : > { %6507 = vmatprep.mubr.f32.mxu1 %v9046_v61  ;;  %6589 = vmatpush3.msra.mxu1 %v4991_v10  ;;  %v9246_v10 = vpop.f32.mrf.mxu0 }
 0x28e   : > { %6590 = vmatprep.subr.mxu1 %v4990_v45 }
 0x28f   : > { %6591 = vmatpush3.msra.mxu1 %v4990_v45  ;;  %v5030_v45 = vld [vmem:[%s10307_s3 + $0x860] sm:$0xff] }
 0x290   : > { %6508 = vmatmul.mubr.f32.gmra.mxu1 %v9038_v12  ;;  %6592 = vmatprep.subr.mxu1 %v4989_v62 }
 0x291   : > { %6510 = vmatprep.mubr.f32.mxu1 %v9066_v26  ;;  %6593 = vmatpush3.msra.mxu1 %v4989_v62  ;;  %v5048_v62 = vld [vmem:[%s10307_s3 + $0x8e0] sm:$0xff] }
 0x292   : > { %6594 = vmatprep.subr.mxu1 %v4988_v51 }
 0x293   : > { %6595 = vmatpush3.msra.mxu1 %v4988_v51 }
 0x294   : > { %6511 = vmatmul.mubr.f32.gmra.mxu1 %v9073_v14  ;;  %6596 = vmatprep.subr.mxu1 %v4987_v46 }
 0x295   : > { %6513 = vmatprep.mubr.f32.mxu1 %v9082_v20  ;;  %6597 = vmatpush3.msra.mxu1 %v4987_v46  ;;  %v5029_v46 = vld [vmem:[%s10307_s3 + $0x858] sm:$0xff] }
 0x296   : > { %6598 = vmatprep.subr.mxu1 %v4986_v42 }
 0x297   : > { %6599 = vmatpush3.msra.mxu1 %v4986_v42  ;;  %v5047_v42 = vld [vmem:[%s10307_s3 + $0x8d8] sm:$0xff] }
 0x298   : > { %6514 = vmatmul.mubr.f32.gmra.mxu1 %v9087_v34  ;;  %6600 = vmatprep.subr.mxu1 %v4985_v23 }
 0x299   : > { %6601 = vmatpush3.msra.mxu1 %v4985_v23  ;;  %6604 = vmatprep.mubr.f32.mxu1 %v8900_v1  ;;  %v9250_v1 = vpop.f32.mrf.mxu0  ;;  %v5028_v23 = vld [vmem:[%s10307_s3 + $0x850] sm:$0xff] }
 0x29a   : > { %6602 = vmatprep.subr.mxu1 %v4984_v0 }
 0x29b   : > { %6603 = vmatpush3.msra.mxu1 %v4984_v0  ;;  %v5046_v0 = vld [vmem:[%s10307_s3 + $0x8d0] sm:$0xff] }
 0x29c   : > { %6605 = vmatmul.mubr.f32.vlgmr.msra.gmra.mxu1 %v8898_v48  ;;  %v9254_v48 = vpop.f32.mrf.mxu0 }
 0x29d   : > { %6607 = vmatprep.mubr.f32.mxu1 %v8927_v40 }
 0x2a0   : > { %6608 = vmatmul.mubr.f32.gmra.mxu1 %v8925_v6  ;;  %v9258_v6 = vpop.f32.mrf.mxu0 }
 0x2a1   : > { %6610 = vmatprep.mubr.f32.mxu1 %v8960_v32 }
 0x2a2   : > { %v9262_v40 = vpop.f32.mrf.mxu0 }
 0x2a4   : > { %6611 = vmatmul.mubr.f32.gmra.mxu1 %v8958_v17  ;;  %v9266_v17 = vpop.f32.mrf.mxu0 }
 0x2a5   : > { %6613 = vmatprep.mubr.f32.mxu1 %v8990_v52 }
 0x2a6   : > { %v9268_v32 = vpop.f32.mrf.mxu0 }
 0x2a8   : > { %6614 = vmatmul.mubr.f32.gmra.mxu1 %v8988_v31  ;;  %v9270_v31 = vpop.f32.mrf.mxu0 }
 0x2a9   : > { %6616 = vmatprep.mubr.f32.mxu1 %v9016_v22  ;;  %10711 = vst [vmem:[#allocation70_spill] sm:$0xff] %v9270_v31  ;;  %v5033_v22 = vld [vmem:[%s10307_s3 + $0x878] sm:$0xff] }
 0x2aa   : > { %v9272_v52 = vpop.f32.mrf.mxu0  ;;  %6628 = vmatprep.subr.mxu0 %v5033_v22 }
 0x2ab   : > { %10712 = vst [vmem:[#allocation71_spill] sm:$0xff] %v9272_v52  ;;  %6629 = vmatpush3.msra.mxu0 %v5033_v22 }
 0x2ac   : > { %6617 = vmatmul.mubr.f32.gmra.mxu1 %v9014_v56  ;;  %v9274_v56 = vpop.f32.mrf.mxu0 }
 0x2ad   : > { %6619 = vmatprep.mubr.f32.mxu1 %v9046_v61  ;;  %v5032_v61 = vld [vmem:[%s10307_s3 + $0x870] sm:$0xff] }
 0x2ae   : > { %6630 = vmatprep.subr.mxu0 %v5032_v61 }
 0x2af   : > { %6631 = vmatpush3.msra.mxu0 %v5032_v61  ;;  %v5045_v61 = vld [vmem:[%s10307_s3 + $0x8c8] sm:$0xff] }
 0x2b0   : > { %6620 = vmatmul.mubr.f32.gmra.mxu1 %v9038_v12  ;;  %v5051_v12 = vld [vmem:[%s10307_s3 + $0x8f8] sm:$0xff] }
 0x2b1   : > { %6622 = vmatprep.mubr.f32.mxu1 %v9066_v26  ;;  %6684 = vmatprep.subr.mxu1 %v5051_v12  ;;  %v5050_v26 = vld [vmem:[%s10307_s3 + $0x8f0] sm:$0xff] }
 0x2b2   : > { %6685 = vmatpush3.msra.mxu1 %v5051_v12  ;;  %v5027_v12 = vld [vmem:[%s10307_s3 + $0x848] sm:$0xff] }
 0x2b3   : > { %6686 = vmatprep.subr.mxu1 %v5050_v26  ;;  %v10767_v60 = vld [vmem:[#allocation71_spill] sm:$0xff] }
 0x2b4   : > { %6623 = vmatmul.mubr.f32.gmra.mxu1 %v9073_v14  ;;  %v9288_v14 = vpop.f32.mrf.mxu0 }
 0x2b5   : > { %6625 = vmatprep.mubr.f32.mxu1 %v9082_v20  ;;  %10713 = vst [vmem:[#allocation72_spill] sm:$0xff] %v9288_v14  ;;  %6687 = vmatpush3.msra.mxu1 %v5050_v26  ;;  %v5031_v20 = vld [vmem:[%s10307_s3 + $0x868] sm:$0xff]  ;;  %v5026_v26 = vld [vmem:[%s10307_s3 + $0x840] sm:$0xff] }
 0x2b6   : > { %6632 = vmatprep.subr.mxu0 %v5031_v20  ;;  %v9302_v51 = vpop.f32.mrf.mxu0 }
 0x2b7   : > { %6633 = vmatpush3.msra.mxu0 %v5031_v20  ;;  %v5044_v20 = vld [vmem:[%s10307_s3 + $0x8c0] sm:$0xff] }
 0x2b8   : > { %6626 = vmatmul.mubr.f32.gmra.mxu1 %v9087_v34  ;;  %v5049_v34 = vld [vmem:[%s10307_s3 + $0x8e8] sm:$0xff]  ;;  %6634 = vmatprep.subr.mxu0 %v5030_v45  ;;  %v9316_v22 = vpop.f32.mrf.mxu0 }
 0x2b9   : > { %6688 = vmatprep.subr.mxu1 %v5049_v34  ;;  %6635 = vmatpush3.msra.mxu0 %v5030_v45  ;;  %10714 = vst [vmem:[#allocation73_spill] sm:$0xff] %v9316_v22  ;;  %v5025_v45 = vld [vmem:[%s10307_s3 + $0x838] sm:$0xff] }
 0x2ba   : > { %6689 = vmatpush3.msra.mxu1 %v5049_v34  ;;  %6636 = vmatprep.subr.mxu0 %v5029_v46  ;;  %v9330_v34 = vpop.f32.mrf.mxu0 }
 0x2bb   : > { %6690 = vmatprep.subr.mxu1 %v5048_v62  ;;  %6637 = vmatpush3.msra.mxu0 %v5029_v46  ;;  %v5024_v46 = vld [vmem:[%s10307_s3 + $0x830] sm:$0xff] }
 0x2bc   : > { %6691 = vmatpush3.msra.mxu1 %v5048_v62  ;;  %6638 = vmatprep.subr.mxu0 %v5028_v23  ;;  %v5043_v62 = vld [vmem:[%s10307_s3 + $0x8b8] sm:$0xff] }
 0x2bd   : > { %6692 = vmatprep.subr.mxu1 %v5047_v42  ;;  %6639 = vmatpush3.msra.mxu0 %v5028_v23  ;;  %v9344_v23 = vpop.f32.mrf.mxu0 }
 0x2be   : > { %6693 = vmatpush3.msra.mxu1 %v5047_v42  ;;  %6640 = vmatprep.subr.mxu0 %v5027_v12  ;;  %v5042_v42 = vld [vmem:[%s10307_s3 + $0x8b0] sm:$0xff] }
 0x2bf   : > { %6694 = vmatprep.subr.mxu1 %v5046_v0  ;;  %6641 = vmatpush3.msra.mxu0 %v5027_v12  ;;  %v5041_v12 = vld [vmem:[%s10307_s3 + $0x8a8] sm:$0xff] }
 0x2c0   : > { %6695 = vmatpush3.msra.mxu1 %v5046_v0  ;;  %6642 = vmatprep.subr.mxu0 %v5026_v26  ;;  %v5023_v0 = vld [vmem:[%s10307_s3 + $0x828] sm:$0xff] }
 0x2c1   : > { %6696 = vmatprep.subr.mxu1 %v5045_v61  ;;  %6643 = vmatpush3.msra.mxu0 %v5026_v26  ;;  %v5040_v26 = vld [vmem:[%s10307_s3 + $0x8a0] sm:$0xff] }
 0x2c2   : > { %6697 = vmatpush3.msra.mxu1 %v5045_v61  ;;  %6644 = vmatprep.subr.mxu0 %v5025_v45  ;;  %v5022_v61 = vld [vmem:[%s10307_s3 + $0x820] sm:$0xff] }
 0x2c3   : > { %6698 = vmatprep.subr.mxu1 %v5044_v20  ;;  %6645 = vmatpush3.msra.mxu0 %v5025_v45  ;;  %v5021_v45 = vld [vmem:[%s10307_s3 + $0x818] sm:$0xff] }
 0x2c4   : > { %6699 = vmatpush3.msra.mxu1 %v5044_v20  ;;  %6646 = vmatprep.subr.mxu0 %v5024_v46  ;;  %v9358_v20 = vpop.f32.mrf.mxu0 }
 0x2c5   : > { %6700 = vmatprep.subr.mxu1 %v5043_v62  ;;  %6647 = vmatpush3.msra.mxu0 %v5024_v46  ;;  %v5020_v46 = vld [vmem:[%s10307_s3 + $0x810] sm:$0xff] }
 0x2c6   : > { %6701 = vmatpush3.msra.mxu1 %v5043_v62  ;;  %6648 = vmatprep.subr.mxu0 %v5023_v0  ;;  %v5039_v62 = vld [vmem:[%s10307_s3 + $0x898] sm:$0xff] }
 0x2c7   : > { %6702 = vmatprep.subr.mxu1 %v5042_v42  ;;  %6649 = vmatpush3.msra.mxu0 %v5023_v0  ;;  %v9372_v0 = vpop.f32.mrf.mxu0 }
 0x2c8   : > { %6703 = vmatpush3.msra.mxu1 %v5042_v42  ;;  %6650 = vmatprep.subr.mxu0 %v5022_v61  ;;  %v5038_v42 = vld [vmem:[%s10307_s3 + $0x890] sm:$0xff] }
 0x2c9   : > { %6704 = vmatprep.subr.mxu1 %v5041_v12  ;;  %6651 = vmatpush3.msra.mxu0 %v5022_v61  ;;  %v5037_v61 = vld [vmem:[%s10307_s3 + $0x888] sm:$0xff] }
 0x2ca   : > { %6705 = vmatpush3.msra.mxu1 %v5041_v12  ;;  %6652 = vmatprep.subr.mxu0 %v5021_v45  ;;  %v5019_v12 = vld [vmem:[%s10307_s3 + $0x808] sm:$0xff] }
 0x2cb   : > { %6706 = vmatprep.subr.mxu1 %v5040_v26  ;;  %6653 = vmatpush3.msra.mxu0 %v5021_v45  ;;  %v5036_v45 = vld [vmem:[%s10307_s3 + $0x880] sm:$0xff] }
 0x2cc   : > { %6707 = vmatpush3.msra.mxu1 %v5040_v26  ;;  %6654 = vmatprep.subr.mxu0 %v5020_v46  ;;  %v5018_v26 = vld [vmem:[%s10307_s3 + $0x800] sm:$0xff] }
 0x2cd   : > { %6708 = vmatprep.subr.mxu1 %v5039_v62  ;;  %6655 = vmatpush3.msra.mxu0 %v5020_v46  ;;  %v9391_v46 = vld [vmem:[%s10307_s3 + $0x978] sm:$0xff] }
 0x2ce   : > { %6709 = vmatpush3.msra.mxu1 %v5039_v62  ;;  %6656 = vmatprep.subr.mxu0 %v5019_v12  ;;  %v9386_v62 = vpop.f32.mrf.mxu0  ;;  %10715 = vst [vmem:[#allocation74_spill] sm:$0xff] %v9391_v46 }
 0x2cf   : > { %6710 = vmatprep.subr.mxu1 %v5038_v42  ;;  %6657 = vmatpush3.msra.mxu0 %v5019_v12 }
 0x2d0   : > { %6711 = vmatpush3.msra.mxu1 %v5038_v42  ;;  %6658 = vmatprep.subr.mxu0 %v5018_v26  ;;  %v9396_v42 = vld [vmem:[%s10307_s3 + $0x9f8] sm:$0xff]  ;;  %v9400_v12 = vpop.f32.mrf.mxu0 }
 0x2d1   : > { %6712 = vmatprep.subr.mxu1 %v5037_v61  ;;  %6659 = vmatpush3.msra.mxu0 %v5018_v26  ;;  %10716 = vst [vmem:[#allocation75_spill] sm:$0xff] %v9396_v42 }
 0x2d2   : > { %6713 = vmatpush3.msra.mxu1 %v5037_v61  ;;  %6740 = vmatprep.subr.mxu0 %v9391_v46  ;;  %v9402_v61 = vpop.f32.mrf.mxu0 }
 0x2d3   : > { %6714 = vmatprep.subr.mxu1 %v5036_v45 }
 0x2d4   : > { %6715 = vmatpush3.msra.mxu1 %v5036_v45  ;;  %v9404_v26 = vpop.f32.mrf.mxu0 }
 0x2d5   : > { %6796 = vmatprep.subr.mxu1 %v9396_v42 }
 0x2d6   : > { %v9406_v45 = vpop.f32.mrf.mxu0 }
 0x2d8   : > { %v9410_v58 = vpop.f32.mrf.mxu0 }
 0x2da   : > { %v9414_v3 = vpop.f32.mrf.mxu0 }
 0x2db   : > { %10719 = vst [vmem:[#allocation78_spill] sm:$0xff] %v9414_v3 }
 0x2dc   : > { %v9418_v24 = vpop.f32.mrf.mxu0 }
 0x2dd   : > { %10721 = vst [vmem:[#allocation80_spill] sm:$0xff] %v9418_v24 }
 0x2de   : > { %v9422_v25 = vpop.f32.mrf.mxu0 }
 0x2df   : > { %10723 = vst [vmem:[#allocation82_spill] sm:$0xff] %v9422_v25 }
 0x2e0   : > { %v9424_v21 = vpop.f32.mrf.mxu0 }
 0x2e1   : > { %10724 = vst [vmem:[#allocation83_spill] sm:$0xff] %v9424_v21 }
 0x2e2   : > { %v9426_v13 = vpop.f32.mrf.mxu0 }
 0x2e3   : > { %10725 = vst [vmem:[#allocation84_spill] sm:$0xff] %v9426_v13  ;;  %v9448_v13 = vld [vmem:[%s10308_s4 + $0x8] ss:$0 sm:$0xff] }
 0x2e4   : > { %v9428_v52 = vpop.f32.mrf.mxu0 }
 0x2e5   : > { %10726 = vst [vmem:[#allocation85_spill] sm:$0xff] %v9428_v52 }
 0x2e6   : > { %v10775_v49 = vld [vmem:[#allocation82_spill] sm:$0xff] }
 0x2e8   : > { %v10776_v18 = vld [vmem:[#allocation83_spill] sm:$0xff] }
 0x2f7   : > { %v9408_v50 = vpop.f32.mrf.mxu1 }
 0x2f8   : > { %10717 = vst [vmem:[#allocation76_spill] sm:$0xff] %v9408_v50 }
 0x2f9   : > { %v9412_v28 = vpop.f32.mrf.mxu1 }
 0x2fa   : > { %10718 = vst [vmem:[#allocation77_spill] sm:$0xff] %v9412_v28 }
 0x2fb   : > { %v6273_v43 = vpop.f32.mrf.mxu1 }
 0x2fc   : > { %v2579_v21 = vadd.f32 %v6273_v43, %v9194_v2  ;;  %v9458_v43 = vld [vmem:[%s10308_s4 + $0x9] ss:$0 sm:$0xff] }
 0x2fd   : > { %v9416_v46 = vpop.f32.mrf.mxu1 }
 0x2fe   : > { %10720 = vst [vmem:[#allocation79_spill] sm:$0xff] %v9416_v46 }
 0x300   : > { %v6276_v42 = vpop.f32.mrf.mxu1 }
 0x301   : > { %v2589_v50 = vadd.f32 %v6276_v42, %v9214_v59  ;;  %v10764_v4 = vld [vmem:[#allocation77_spill] sm:$0xff] }
 0x302   : > { %v9420_v47 = vpop.f32.mrf.mxu1  ;;  %v2564_v41 = vadd.f32 %v10764_v4, %v10763_v33  ;;  %v9639_v33 = vld [vmem:[%s10308_s4 + $0xa] ss:$0 sm:$0xff] }
 0x303   : > { %10722 = vst [vmem:[#allocation81_spill] sm:$0xff] %v9420_v47  ;;  %v9434_v47 = vpop.f32.mrf.mxu0  ;;  %v2655_v59 = vadd.f32 %v9448_v13, %v2589_v50 }
 0x304   : > { %10727 = vst [vmem:[#allocation86_spill] sm:$0xff] %v9434_v47  ;;  %v2653_v47 = vadd.f32 %v9448_v13, %v2579_v21 }
 0x305   : > { %v6279_v55 = vpop.f32.mrf.mxu1  ;;  %v9440_v28 = vpop.f32.mrf.mxu0 }
 0x306   : > { %10729 = vst [vmem:[#allocation88_spill] sm:$0xff] %v9440_v28  ;;  %v2669_v21 = vsel %vm10733_vm13, %v2653_v47, 0.0  ;;  %v2671_v47 = vsel %vm10735_vm0, %v2655_v59, 0.0 }
 0x307   : > { %v2593_v11 = vpop.f32.mrf.mxu1  ;;  %v9450_v31 = vpop.f32.mrf.mxu0 }
 0x308   : > { %10731 = vst [vmem:[#allocation90_spill] sm:$0xff] %v9450_v31  ;;  %v2594_v42 = vadd.f32 %v2593_v11, %v9238_v5 }
 0x309   : > { %v9464_v16 = vpop.f32.mrf.mxu0 }
 0x30a   : > { %v6282_v53 = vpop.f32.mrf.mxu1  ;;  %10732 = vst [vmem:[#allocation91_spill] sm:$0xff] %v9464_v16 }
 0x30b   : > { %v9479_v38 = vpop.f32.mrf.mxu0  ;;  %v2609_v50 = vadd.f32 %v6282_v53, %v9242_v35 }
 0x30c   : > { %v2603_v57 = vpop.f32.mrf.mxu1 }
 0x30e   : > { %v6285_v22 = vpop.f32.mrf.mxu1 }
 0x30f   : > { %v2619_v53 = vadd.f32 %v6285_v22, %v9250_v1 }
 0x310   : > { %v2613_v14 = vpop.f32.mrf.mxu1 }
 0x314   : > { %v6288_v3 = vpop.f32.mrf.mxu1 }
 0x316   : > { %v9430_v46 = vpop.f32.mrf.mxu1 }
 0x318   : > { %v9432_v24 = vpop.f32.mrf.mxu1 }
 0x31a   : > { %v9436_v8 = vpop.f32.mrf.mxu1 }
 0x31c   : > { %v9438_v25 = vpop.f32.mrf.mxu1 }
 0x31d   : > { %10728 = vst [vmem:[#allocation87_spill] sm:$0xff] %v9438_v25 }
 0x31e   : > { %v9443_v44 = vpop.f32.mrf.mxu1 }
 0x31f   : > { %10730 = vst [vmem:[#allocation89_spill] sm:$0xff] %v9443_v44  ;;  %v2599_v44 = vadd.f32 %v6279_v55, %v9234_v54 }
 0x320   : > { %v6385_v52 = vpop.f32.mrf.mxu1 }
 0x321   : > { %v2943_v25 = vadd.f32 %v6385_v52, %v9274_v56  ;;  %v2657_v54 = vadd.f32 %v9448_v13, %v2599_v44  ;;  %v2604_v44 = vadd.f32 %v2603_v57, %v9246_v10  ;;  %v10739_v10 = vld [vmem:[#allocation26_spill] sm:$0xff] }
 0x322   : > { %v9460_v2 = vpop.f32.mrf.mxu1  ;;  %vm10740_vm14 = vcmp.eq.s32.totalorder %v10739_v10, 1  ;;  %v10771_v10 = vld [vmem:[#allocation69_spill] sm:$0xff] }
 0x323   : > { %v3017_v28 = vadd.f32 %v9458_v43, %v2943_v25  ;;  %v2673_v59 = vsel %vm10737_vm7, %v2657_v54, 0.0  ;;  %v2658_v22 = vadd.f32 %v9448_v13, %v2604_v44  ;;  %v10744_v44 = vld [vmem:[#allocation38_spill] sm:$0xff]  ;;  %vm10750_vm7 = vcmp.eq.s32.totalorder %v10569_v27, 1 }
 0x324   : > { %v6388_v36 = vpop.f32.mrf.mxu1  ;;  %v10762_v7 = vld [vmem:[#allocation87_spill] sm:$0xff] }
 0x325   : > { %v3033_v52 = vsel %vm10734_vm1, %v3017_v28, 0.0  ;;  %v2953_v56 = vadd.f32 %v6388_v36, %v9302_v51  ;;  %v2656_v36 = vadd.f32 %v9448_v13, %v2594_v42  ;;  %vm10745_vm1 = vcmp.eq.s32.totalorder %v10744_v44, 1 }
 0x326   : > { %v9473_v31 = vadd.f32 %v3033_v52, %v2669_v21  ;;  %v9475_v25 = vpop.f32.mrf.mxu1 }
 0x327   : > { %v3019_v55 = vadd.f32 %v9458_v43, %v2953_v56  ;;  %v9496_v56 = vpop.f32.mrf.mxu0 }
 0x328   : > { %v6391_v16 = vpop.f32.mrf.mxu1 }
 0x329   : > { %v3035_v28 = vsel %vm10736_vm6, %v3019_v55, 0.0  ;;  %v2963_v11 = vadd.f32 %v6391_v16, %v9330_v34  ;;  %v2659_v16 = vadd.f32 %v9448_v13, %v2609_v50  ;;  %v2614_v55 = vadd.f32 %v2613_v14, %v9254_v48  ;;  %v9517_v48 = vpop.f32.mrf.mxu0  ;;  %v10769_v14 = vld [vmem:[#allocation72_spill] sm:$0xff] }
 0x32a   : > { %v9488_v5 = vadd.f32 %v3035_v28, %v2671_v47  ;;  %v2957_v51 = vpop.f32.mrf.mxu1  ;;  %v10741_v47 = vld [vmem:[#allocation27_spill] sm:$0xff]  ;;  %vm10749_vm6 = vcmp.eq.s32.totalorder %v10634_v37, 1  ;;  %v10768_v37 = vld [vmem:[#allocation89_spill] sm:$0xff] }
 0x32b   : > { %v3021_v21 = vadd.f32 %v9458_v43, %v2963_v11  ;;  %v2958_v52 = vadd.f32 %v2957_v51, %v9344_v23  ;;  %v2672_v23 = vsel %vm10740_vm14, %v2656_v36, 0.0  ;;  %vm10742_vm13 = vcmp.eq.s32.totalorder %v10741_v47, 1 }
 0x32c   : > { %v6394_v35 = vpop.f32.mrf.mxu1  ;;  %v2661_v51 = vadd.f32 %v9448_v13, %v2619_v53  ;;  %vm10755_vm14 = vcmp.eq.s32.totalorder %v10689_v30, 1  ;;  %v10761_v30 = vld [vmem:[#allocation70_spill] sm:$0xff]  ;;  %v2938_v47 = vadd.f32 %v9460_v2, %v10769_v14  ;;  %v2650_v2 = vadd.f32 %v9448_v13, %v2564_v41  ;;  %v10777_v41 = vld [vmem:[#allocation3_spill] sm:$0xff] }
 0x32d   : > { %v3037_v34 = vsel %vm10738_vm2, %v3021_v21, 0.0  ;;  %v3020_v42 = vadd.f32 %v9458_v43, %v2958_v52  ;;  %v2973_v57 = vadd.f32 %v6394_v35, %v9358_v20  ;;  %v2629_v20 = vadd.f32 %v6288_v3, %v9258_v6 }
 0x32e   : > { %v9506_v54 = vadd.f32 %v3037_v34, %v2673_v59  ;;  %v2967_v1 = vpop.f32.mrf.mxu1  ;;  %v2675_v52 = vsel %vm625_vm4, %v2659_v16, 0.0  ;;  %v2624_v3 = vadd.f32 %v9430_v46, %v9262_v40  ;;  %v9541_v46 = vpop.f32.mrf.mxu0  ;;  %vm10751_vm2 = vcmp.eq.s32.totalorder %v10573_v29, 1  ;;  %v10766_v29 = vld [vmem:[#allocation79_spill] sm:$0xff] }
 0x32f   : > { %v3036_v50 = vsel %vm10742_vm13, %v3020_v42, 0.0  ;;  %v3023_v28 = vadd.f32 %v9458_v43, %v2973_v57  ;;  %v2968_v11 = vadd.f32 %v2967_v1, %v9372_v0  ;;  %v2660_v0 = vadd.f32 %v9448_v13, %v2614_v55  ;;  %v10746_v42 = vld [vmem:[#allocation34_spill] sm:$0xff] }
 0x330   : > { %v9515_v21 = vadd.f32 %v3036_v50, %v2672_v23  ;;  %v6397_v36 = vpop.f32.mrf.mxu1  ;;  %vm10747_vm0 = vcmp.eq.s32.totalorder %v10746_v42, 1  ;;  %v2663_v55 = vadd.f32 %v9448_v13, %v2629_v20  ;;  %v2662_v20 = vadd.f32 %v9448_v13, %v2624_v3  ;;  %v9564_v3 = vpop.f32.mrf.mxu0 }
 0x331   : > { %v3039_v59 = vsel %vm10745_vm1, %v3023_v28, 0.0  ;;  %v3022_v35 = vadd.f32 %v9458_v43, %v2968_v11  ;;  %v2983_v34 = vadd.f32 %v6397_v36, %v9386_v62  ;;  %v2674_v57 = vsel %vm10747_vm0, %v2658_v22, 0.0 }
 0x332   : > { %v9528_v6 = vadd.f32 %v3039_v59, %v2675_v52  ;;  %v2977_v53 = vpop.f32.mrf.mxu1  ;;  %v2677_v62 = vsel %vm10749_vm6, %v2661_v51, 0.0  ;;  %v2639_v22 = vadd.f32 %v9432_v24, %v9266_v17  ;;  %v2676_v51 = vsel %vm10750_vm7, %v2660_v0, 0.0 }
 0x333   : > { %v3038_v16 = vsel %vm890_vm9, %v3022_v35, 0.0  ;;  %v3025_v1 = vadd.f32 %v9458_v43, %v2983_v34  ;;  %v2978_v50 = vadd.f32 %v2977_v53, %v9400_v12  ;;  %v2634_v35 = vadd.f32 %v9436_v8, %v9268_v32 }
 0x334   : > { %v9539_v28 = vadd.f32 %v3038_v16, %v2674_v57  ;;  %v6400_v40 = vpop.f32.mrf.mxu1  ;;  %v2665_v57 = vadd.f32 %v9448_v13, %v2639_v22  ;;  %v2933_v15 = vadd.f32 %v10762_v7, %v10761_v30  ;;  %v2574_v27 = vadd.f32 %v10766_v29, %v10765_v63  ;;  %v10772_v7 = vld [vmem:[#allocation81_spill] sm:$0xff] }
 0x335   : > { %v3041_v11 = vsel %vm893_vm8, %v3025_v1, 0.0  ;;  %v3024_v36 = vadd.f32 %v9458_v43, %v2978_v50  ;;  %v2993_v12 = vadd.f32 %v6400_v40, %v9402_v61  ;;  %v2679_v61 = vsel %vm629_vm5, %v2663_v55, 0.0 }
 0x336   : > { %v9552_v52 = vadd.f32 %v3041_v11, %v2677_v62  ;;  %v2987_v59 = vpop.f32.mrf.mxu1  ;;  %v2664_v62 = vadd.f32 %v9448_v13, %v2634_v35  ;;  %v2928_v23 = vadd.f32 %v10768_v37, %v10767_v60  ;;  %v2584_v30 = vadd.f32 %v10772_v7, %v10771_v10  ;;  %v10773_v37 = vld [vmem:[#allocation80_spill] sm:$0xff] }
 0x337   : > { %v3040_v24 = vsel %vm10751_vm2, %v3024_v36, 0.0  ;;  %v3027_v17 = vadd.f32 %v9458_v43, %v2993_v12  ;;  %v2988_v34 = vadd.f32 %v2987_v59, %v9404_v26  ;;  %v2678_v26 = vsel %vm628_vm15, %v2662_v20, 0.0  ;;  %v9582_v12 = vpop.f32.mrf.mxu0 }
 0x338   : > { %v9562_v53 = vadd.f32 %v3040_v24, %v2676_v51  ;;  %v6403_v0 = vpop.f32.mrf.mxu1  ;;  %v2680_v24 = vsel %vm10755_vm14, %v2664_v62, 0.0  ;;  %v3015_v4 = vadd.f32 %v9458_v43, %v2933_v15  ;;  %v2652_v14 = vadd.f32 %v9448_v13, %v2574_v27 }
 0x339   : > { %v3043_v8 = vsel %vm895_vm10, %v3027_v17, 0.0  ;;  %v3026_v32 = vadd.f32 %v9458_v43, %v2988_v34  ;;  %v3003_v16 = vadd.f32 %v6403_v0, %v9406_v45  ;;  %v2681_v45 = vsel %vm631_vm12, %v2665_v57, 0.0  ;;  %v6550_v0 = vpop.f32.mrf.mxu0 }
 0x33a   : > { %v9573_v1 = vadd.f32 %v3043_v8, %v2679_v61  ;;  %v2997_v50 = vpop.f32.mrf.mxu1  ;;  %v3016_v7 = vadd.f32 %v9458_v43, %v2938_v47  ;;  %v2654_v15 = vadd.f32 %v9448_v13, %v2584_v30  ;;  %vm10778_vm1 = vcmp.eq.s32.totalorder %v10777_v41, 1  ;;  %v10794_v41 = vld [vmem:[#allocation85_spill] sm:$0xff] }
 0x33b   : > { %v3042_v55 = vsel %vm894_vm3, %v3026_v32, 0.0  ;;  %v3029_v40 = vadd.f32 %v9458_v43, %v3003_v16  ;;  %v2998_v22 = vadd.f32 %v2997_v50, %v9410_v58  ;;  %v10756_v58 = vld [vmem:[#allocation49_spill] sm:$0xff]  ;;  %v3542_v32 = vpop.f32.mrf.mxu0 }
 0x33c   : > { %10752 = vst [vmem:[#allocation92_spill] sm:$0xff] %v9573_v1  ;;  %v9580_v11 = vadd.f32 %v3042_v55, %v2678_v26  ;;  %v6494_v36 = vpop.f32.mrf.mxu1  ;;  %vm10757_vm13 = vcmp.eq.s32.totalorder %v10756_v58, 1 }
 0x33d   : > { %v3045_v51 = vsel %vm897_vm11, %v3029_v40, 0.0  ;;  %v3028_v20 = vadd.f32 %v9458_v43, %v2998_v22  ;;  %v9601_v50 = vpop.f32.mrf.mxu0 }
 0x33e   : > { %10753 = vst [vmem:[#allocation93_spill] sm:$0xff] %v9580_v11  ;;  %v9589_v59 = vadd.f32 %v3045_v51, %v2681_v45  ;;  %v3307_v35 = vpop.f32.mrf.mxu1 }
 0x33f   : > { %v3044_v17 = vsel %vm10757_vm13, %v3028_v20, 0.0  ;;  %v9607_v62 = vpop.f32.mrf.mxu0  ;;  %v3308_v60 = vadd.f32 %v3307_v35, %v10773_v37 }
 0x340   : > { %10754 = vst [vmem:[#allocation94_spill] sm:$0xff] %v9589_v59  ;;  %v9595_v34 = vadd.f32 %v3044_v17, %v2680_v24  ;;  %v6497_v61 = vpop.f32.mrf.mxu1  ;;  %v10759_v24 = vld [vmem:[#allocation60_spill] sm:$0xff]  ;;  %v10781_v59 = vld [vmem:[#allocation2_spill] sm:$0xff] }
 0x341   : > { %v9613_v51 = vpop.f32.mrf.mxu0  ;;  %v10760_v17 = vld [vmem:[#allocation76_spill] sm:$0xff]  ;;  %v3394_v9 = vadd.f32 %v9639_v33, %v3308_v60  ;;  %vm10782_vm6 = vcmp.eq.s32.totalorder %v10781_v59, 1  ;;  %v10788_v60 = vld [vmem:[#allocation9_spill] sm:$0xff]  ;;  %v10790_v59 = vld [vmem:[#allocation7_spill] sm:$0xff] }
 0x342   : > { %10758 = vst [vmem:[#allocation95_spill] sm:$0xff] %v9595_v34  ;;  %v3317_v8 = vpop.f32.mrf.mxu1  ;;  %v2569_v58 = vadd.f32 %v10760_v17, %v10759_v24  ;;  %v10770_v24 = vld [vmem:[#allocation78_spill] sm:$0xff]  ;;  %v2666_v47 = vsel %vm10782_vm6, %v2650_v2, 0.0  ;;  %vm10789_vm14 = vcmp.eq.s32.totalorder %v10788_v60, 1  ;;  %vm10791_vm13 = vcmp.eq.s32.totalorder %v10790_v59, 1 }
 0x343   : > { %v9629_v44 = vpop.f32.mrf.mxu0  ;;  %v3313_v17 = vadd.f32 %v6494_v36, %v10770_v24  ;;  %v3014_v36 = vadd.f32 %v9458_v43, %v2928_v23  ;;  %v3318_v35 = vadd.f32 %v3317_v8, %v10776_v18  ;;  %v10779_v23 = vld [vmem:[#allocation5_spill] sm:$0xff]  ;;  %v3032_v2 = vsel %vm10789_vm14, %v3016_v7, 0.0 }
 0x344   : > { %v9597_v57 = vpop.f32.mrf.mxu1  ;;  %v2651_v63 = vadd.f32 %v9448_v13, %v2569_v58  ;;  %v3323_v58 = vadd.f32 %v6497_v61, %v10775_v49  ;;  %vm10780_vm0 = vcmp.eq.s32.totalorder %v10779_v23, 1  ;;  %v10785_v61 = vld [vmem:[#allocation4_spill] sm:$0xff]  ;;  %v10787_v18 = vld [vmem:[#allocation73_spill] sm:$0xff] }
 0x345   : > { %v9651_v24 = vpop.f32.mrf.mxu0  ;;  %v3395_v39 = vadd.f32 %v9639_v33, %v3313_v17  ;;  %v3031_v19 = vsel %vm10780_vm0, %v3015_v4, 0.0  ;;  %v10783_v17 = vld [vmem:[#allocation8_spill] sm:$0xff]  ;;  %vm10786_vm2 = vcmp.eq.s32.totalorder %v10785_v61, 1  ;;  %v2948_v8 = vadd.f32 %v9475_v25, %v10787_v18  ;;  %v10792_v61 = vld [vmem:[#allocation18_spill] sm:$0xff] }
 0x346   : > { %v3327_v16 = vpop.f32.mrf.mxu1  ;;  %v2667_v27 = vsel %vm10778_vm1, %v2651_v63, 0.0  ;;  %vm10784_vm7 = vcmp.eq.s32.totalorder %v10783_v17, 1  ;;  %v3030_v13 = vsel %vm10786_vm2, %v3014_v36, 0.0  ;;  %v9676_v63 = vld [vmem:[%s10308_s4 + $0xb] ss:$0 sm:$0xff]  ;;  %v3397_v17 = vadd.f32 %v9639_v33, %v3323_v58 }
 0x347   : > { %v2668_v49 = vsel %vm10784_vm7, %v2652_v14, 0.0  ;;  %v9678_v4 = vpop.f32.mrf.mxu0  ;;  %v3411_v14 = vsel %vm10791_vm13, %v3395_v39, 0.0  ;;  %vm10793_vm1 = vcmp.eq.s32.totalorder %v10792_v61, 1  ;;  %v3047_v18 = vadd.f32 %v3031_v19, %v2667_v27 }
 0x348   : > { %v9599_v26 = vpop.f32.mrf.mxu1  ;;  %v2670_v25 = vsel %vm10793_vm1, %v2654_v15, 0.0  ;;  %v3396_v23 = vadd.f32 %v9639_v33, %v3318_v35  ;;  %v3328_v34 = vadd.f32 %v3327_v16, %v10794_v41  ;;  %v3046_v11 = vadd.f32 %v3030_v13, %v2666_v47  ;;  %v10798_v35 = vld [vmem:[#allocation17_spill] sm:$0xff] }
 0x349   : > { %v3048_v39 = vadd.f32 %v3032_v2, %v2668_v49  ;;  %v3018_v58 = vadd.f32 %v9458_v43, %v2948_v8  ;;  %v9695_v27 = vpop.f32.mrf.mxu0  ;;  %vm10799_vm6 = vcmp.eq.s32.totalorder %v10798_v35, 1  ;;  %v10800_v41 = vld [vmem:[#allocation13_spill] sm:$0xff]  ;;  %v10802_v49 = vld [vmem:[#allocation14_spill] sm:$0xff] }
 0x34a   : > { %v9603_v55 = vpop.f32.mrf.mxu1  ;;  %v3413_v16 = vsel %vm10799_vm6, %v3397_v17, 0.0  ;;  %vm10801_vm7 = vcmp.eq.s32.totalorder %v10800_v41, 1  ;;  %vm10803_vm2 = vcmp.eq.s32.totalorder %v10802_v49, 1  ;;  %v3398_v13 = vadd.f32 %v9639_v33, %v3328_v34 }
 0x34b   : > { %v3412_v43 = vsel %vm10803_vm2, %v3396_v23, 0.0 }
 0x34c   : > { %v9605_v40 = vpop.f32.mrf.mxu1 }
 0x34e   : > { %v9609_v22 = vpop.f32.mrf.mxu1 }
 0x350   : > { %v9611_v45 = vpop.f32.mrf.mxu1 }
 0x352   : > { %v9615_v20 = vpop.f32.mrf.mxu1 }
 0x354   : > { %v9627_v42 = vpop.f32.mrf.mxu1 }
 0x356   : > { %v9641_v29 = vpop.f32.mrf.mxu1 }
 0x358   : > { %v9649_v10 = vpop.f32.mrf.mxu1 }
 0x359   : > { %10774 = vst [vmem:[#allocation60_spill] sm:$0xff] %v9649_v10  ;;  %v10795_v10 = vld [vmem:[#allocation6_spill] sm:$0xff] }
 0x35a   : > { %v9658_v37 = vpop.f32.mrf.mxu1  ;;  %vm10796_vm0 = vcmp.eq.s32.totalorder %v10795_v10, 1 }
 0x35b   : > { %v3410_v60 = vsel %vm10796_vm0, %v3394_v9, 0.0 }
 0x35c   : > { %v6606_v30 = vpop.f32.mrf.mxu1 }
 0x35d   : > { %v3693_v36 = vadd.f32 %v6606_v30, %v6550_v0  ;;  %v3427_v0 = vadd.f32 %v3411_v14, %v3047_v18  ;;  %v10797_v30 = vld [vmem:[#allocation84_spill] sm:$0xff] }
 0x35e   : > { %v3687_v1 = vpop.f32.mrf.mxu1  ;;  %v3333_v15 = vadd.f32 %v9597_v57, %v10797_v30  ;;  %v10804_v57 = vld [vmem:[#allocation88_spill] sm:$0xff]  ;;  %v9716_v30 = vpop.f32.mrf.mxu0 }
 0x35f   : > { %v3775_v7 = vadd.f32 %v9676_v63, %v3693_v36  ;;  %v3688_v59 = vadd.f32 %v3687_v1, %v3542_v32  ;;  %v3426_v32 = vadd.f32 %v3410_v60, %v3046_v11  ;;  %v3338_v8 = vadd.f32 %v9603_v55, %v10804_v57  ;;  %v10805_v36 = vld [vmem:[#allocation10_spill] sm:$0xff] }
 0x360   : > { %v6609_v19 = vpop.f32.mrf.mxu1  ;;  %vm10806_vm14 = vcmp.eq.s32.totalorder %v10805_v36, 1  ;;  %v3399_v23 = vadd.f32 %v9639_v33, %v3333_v15  ;;  %v3428_v55 = vadd.f32 %v3412_v43, %v3048_v39  ;;  %v10814_v39 = vld [vmem:[#allocation20_spill] sm:$0xff] }
 0x361   : > { %v3791_v47 = vsel %vm10801_vm7, %v3775_v7, 0.0  ;;  %v3774_v9 = vadd.f32 %v9676_v63, %v3688_v59  ;;  %v3703_v1 = vadd.f32 %v6609_v19, %v9601_v50  ;;  %v10807_v7 = vld [vmem:[#allocation19_spill] sm:$0xff]  ;;  %v3429_v50 = vadd.f32 %v3413_v16, %v9473_v31 }
 0x362   : > { %v3697_v2 = vpop.f32.mrf.mxu1  ;;  %v3807_v14 = vadd.f32 %v3791_v47, %v3427_v0  ;;  %vm10808_vm13 = vcmp.eq.s32.totalorder %v10807_v7, 1  ;;  %v10809_v0 = vld [vmem:[#allocation23_spill] sm:$0xff]  ;;  %v3400_v15 = vadd.f32 %v9639_v33, %v3338_v8  ;;  %vm10815_vm6 = vcmp.eq.s32.totalorder %v10814_v39, 1  ;;  %v5086_v8 = vld [vmem:[%s10307_s3 + $0x9f0] sm:$0xff] }
 0x363   : > { %v3790_v17 = vsel %vm10806_vm14, %v3774_v9, 0.0  ;;  %v3777_v18 = vadd.f32 %v9676_v63, %v3703_v1  ;;  %v3698_v59 = vadd.f32 %v3697_v2, %v9607_v62  ;;  %v3034_v11 = vsel %vm10808_vm13, %v3018_v58, 0.0  ;;  %v10811_v62 = vld [vmem:[#allocation24_spill] sm:$0xff]  ;;  %v10813_v58 = vld [vmem:[#allocation86_spill] sm:$0xff] }
 0x364   : > { %v3806_v34 = vadd.f32 %v3790_v17, %v3426_v32  ;;  %v6612_v60 = vpop.f32.mrf.mxu1  ;;  %vm10810_vm1 = vcmp.eq.s32.totalorder %v10809_v0, 1  ;;  %vm10812_vm0 = vcmp.eq.s32.totalorder %v10811_v62, 1  ;;  %v3343_v31 = vadd.f32 %v9599_v26, %v10813_v58  ;;  %v5068_v26 = vld [vmem:[%s10307_s3 + $0x970] sm:$0xff]  ;;  %v10819_v58 = vld [vmem:[#allocation74_spill] sm:$0xff] }
 0x365   : > { %v3793_v19 = vsel %vm10810_vm1, %v3777_v18, 0.0  ;;  %v3776_v47 = vadd.f32 %v9676_v63, %v3698_v59  ;;  %v3713_v9 = vadd.f32 %v6612_v60, %v9613_v51  ;;  %v3414_v1 = vsel %vm10812_vm0, %v3398_v13, 0.0 }
 0x366   : > { %v9727_v16 = vmax.f32 %v3806_v34, 0.0  ;;  %v3707_v32 = vpop.f32.mrf.mxu1  ;;  %v9729_v57 = vmax.f32 %v3807_v14, 0.0  ;;  %v3050_v17 = vadd.f32 %v3034_v11, %v2670_v25  ;;  %v3809_v18 = vadd.f32 %v3793_v19, %v3429_v50  ;;  %v9743_v14 = vpop.f32.mrf.mxu0  ;;  %v10816_v34 = vld [vmem:[#allocation25_spill] sm:$0xff]  ;;  %v10818_v25 = vld [vmem:[#allocation91_spill] sm:$0xff] }
 0x367   : > { %v3792_v43 = vsel %vm10815_vm6, %v3776_v47, 0.0  ;;  %v3779_v2 = vadd.f32 %v9676_v63, %v3713_v9  ;;  %v3708_v51 = vadd.f32 %v3707_v32, %v9629_v44  ;;  %vm10817_vm7 = vcmp.eq.s32.totalorder %v10816_v34, 1  ;;  %v10821_v32 = vld [vmem:[#allocation32_spill] sm:$0xff] }
 0x368   : > { %v3808_v13 = vadd.f32 %v3792_v43, %v3428_v55  ;;  %v6615_v59 = vpop.f32.mrf.mxu1  ;;  %6660 = vmatprep.mubr.f32.mxu0 %v9727_v16  ;;  %6716 = vmatprep.mubr.f32.mxu1 %v9727_v16  ;;  %v3415_v44 = vsel %vm10817_vm7, %v3399_v23, 0.0  ;;  %v3348_v11 = vadd.f32 %v9609_v22, %v10818_v25  ;;  %v3430_v55 = vadd.f32 %v3414_v1, %v3050_v17  ;;  %v10820_v23 = vld [vmem:[#allocation75_spill] sm:$0xff]  ;;  %v10827_v17 = vld [vmem:[#allocation90_spill] sm:$0xff] }
 0x369   : > { %v3778_v50 = vadd.f32 %v9676_v63, %v3708_v51  ;;  %v3723_v60 = vadd.f32 %v6615_v59, %v9651_v24  ;;  %6661 = vmatmul.mubr.f32.vlgmr.msra.gmra.mxu0 %v9729_v57  ;;  %6717 = vmatmul.mubr.f32.vlgmr.msra.gmra.mxu1 %v9729_v57  ;;  %v3401_v19 = vadd.f32 %v9639_v33, %v3343_v31  ;;  %vm10822_vm2 = vcmp.eq.s32.totalorder %v10821_v32, 1  ;;  %v10823_v43 = vld [vmem:[#allocation31_spill] sm:$0xff]  ;;  %v10825_v51 = vld [vmem:[#allocation28_spill] sm:$0xff] }
 0x36a   : > { %v9754_v47 = vmax.f32 %v3808_v13, 0.0  ;;  %v3717_v9 = vpop.f32.mrf.mxu1  ;;  %6741 = vmatpush3.msra.mxu0 %v10819_v58  ;;  %6797 = vmatpush3.msra.mxu1 %v10820_v23  ;;  %v3416_v22 = vsel %vm10822_vm2, %v3400_v15, 0.0  ;;  %vm10824_vm14 = vcmp.eq.s32.totalorder %v10823_v43, 1  ;;  %vm10826_vm13 = vcmp.eq.s32.totalorder %v10825_v51, 1  ;;  %v5067_v15 = vld [vmem:[%s10307_s3 + $0x968] sm:$0xff]  ;;  %v10832_v32 = vld [vmem:[#allocation40_spill] sm:$0xff] }
 0x36b   : > { %v3795_v24 = vsel %vm10824_vm14, %v3779_v2, 0.0  ;;  %v3794_v59 = vsel %vm10826_vm13, %v3778_v50, 0.0  ;;  %v3718_v1 = vadd.f32 %v3717_v9, %v9678_v4  ;;  %6742 = vmatprep.subr.mxu0 %v5068_v26  ;;  %6798 = vmatprep.subr.mxu1 %v5086_v8  ;;  %v3431_v31 = vadd.f32 %v3415_v44, %v9488_v5  ;;  %v5085_v4 = vld [vmem:[%s10307_s3 + $0x9e8] sm:$0xff]  ;;  %v3592_v5 = vpop.f32.mrf.mxu0  ;;  %v10828_v44 = vld [vmem:[#allocation33_spill] sm:$0xff] }
 0x36c   : > { %v3353_v13 = vadd.f32 %v9605_v40, %v10827_v17  ;;  %v9768_v25 = vmax.f32 %v3809_v18, 0.0  ;;  %v3810_v58 = vadd.f32 %v3794_v59, %v3430_v55  ;;  %v6618_v23 = vpop.f32.mrf.mxu1  ;;  %6663 = vmatprep.mubr.f32.mxu0 %v9754_v47  ;;  %6719 = vmatprep.mubr.f32.mxu1 %v9754_v47  ;;  %v3402_v2 = vadd.f32 %v9639_v33, %v3348_v11  ;;  %v5066_v11 = vld [vmem:[%s10307_s3 + $0x960] sm:$0xff] }
 0x36d   : > { %v3781_v40 = vadd.f32 %v9676_v63, %v3723_v60  ;;  %v3780_v18 = vadd.f32 %v9676_v63, %v3718_v1  ;;  %6743 = vmatpush3.msra.mxu0 %v5068_v26  ;;  %6799 = vmatpush3.msra.mxu1 %v5086_v8  ;;  %vm10829_vm1 = vcmp.eq.s32.totalorder %v10828_v44, 1  ;;  %v3432_v55 = vadd.f32 %v3416_v22, %v9515_v21  ;;  %v5084_v26 = vld [vmem:[%s10307_s3 + $0x9e0] sm:$0xff]  ;;  %v10830_v21 = vld [vmem:[#allocation36_spill] sm:$0xff] }
 0x36e   : > { %v3417_v50 = vsel %vm10829_vm1, %v3401_v19, 0.0  ;;  %v3811_v9 = vadd.f32 %v3795_v24, %v3431_v31  ;;  %v9784_v59 = vmax.f32 %v3810_v58, 0.0  ;;  %6664 = vmatmul.mubr.f32.gmra.mxu0 %v9768_v25  ;;  %6720 = vmatmul.mubr.f32.gmra.mxu1 %v9768_v25  ;;  %v3727_v17 = vpop.f32.mrf.mxu1  ;;  %v3358_v8 = vadd.f32 %v9615_v20, %v9496_v56  ;;  %v9800_v31 = vpop.f32.mrf.mxu0  ;;  %v10834_v20 = vld [vmem:[#allocation39_spill] sm:$0xff] }
 0x36f   : > { %vm10831_vm0 = vcmp.eq.s32.totalorder %v10830_v21, 1  ;;  %v3733_v19 = vadd.f32 %v6618_v23, %v9695_v27  ;;  %6744 = vmatprep.subr.mxu0 %v5067_v15  ;;  %6800 = vmatprep.subr.mxu1 %v5085_v4  ;;  %v3728_v22 = vadd.f32 %v3727_v17, %v9716_v30  ;;  %v3403_v58 = vadd.f32 %v9639_v33, %v3353_v13  ;;  %v5065_v13 = vld [vmem:[%s10307_s3 + $0x958] sm:$0xff] }
 0x370   : > { %v3796_v60 = vsel %vm10831_vm0, %v3780_v18, 0.0  ;;  %6745 = vmatpush3.msra.mxu0 %v5067_v15  ;;  %6801 = vmatpush3.msra.mxu1 %v5085_v4  ;;  %v6621_v1 = vpop.f32.mrf.mxu1  ;;  %vm10833_vm6 = vcmp.eq.s32.totalorder %v10832_v32, 1  ;;  %vm10835_vm7 = vcmp.eq.s32.totalorder %v10834_v20, 1  ;;  %v3433_v30 = vadd.f32 %v3417_v50, %v9506_v54  ;;  %v5083_v4 = vld [vmem:[%s10307_s3 + $0x9d8] sm:$0xff] }
 0x371   : > { %v3812_v24 = vadd.f32 %v3796_v60, %v3432_v55  ;;  %v3418_v56 = vsel %vm10833_vm6, %v3402_v2, 0.0  ;;  %v3797_v18 = vsel %vm10835_vm7, %v3781_v40, 0.0  ;;  %v3782_v27 = vadd.f32 %v9676_v63, %v3728_v22  ;;  %6746 = vmatprep.subr.mxu0 %v5066_v11  ;;  %6802 = vmatprep.subr.mxu1 %v5084_v26  ;;  %v5082_v60 = vld [vmem:[%s10307_s3 + $0x9d0] sm:$0xff] }
 0x372   : > { %v3363_v23 = vadd.f32 %v9611_v45, %v9479_v38  ;;  %v9811_v15 = vmax.f32 %v3811_v9, 0.0  ;;  %6666 = vmatprep.mubr.f32.mxu0 %v9784_v59  ;;  %6722 = vmatprep.mubr.f32.mxu1 %v9784_v59  ;;  %v3737_v2 = vpop.f32.mrf.mxu1  ;;  %v3404_v54 = vadd.f32 %v9639_v33, %v3358_v8  ;;  %v3783_v40 = vadd.f32 %v9676_v63, %v3733_v19  ;;  %v10836_v38 = vld [vmem:[#allocation44_spill] sm:$0xff] }
 0x373   : > { %vm10837_vm2 = vcmp.eq.s32.totalorder %v10836_v38, 1  ;;  %6747 = vmatpush3.msra.mxu0 %v5066_v11  ;;  %6803 = vmatpush3.msra.mxu1 %v5084_v26  ;;  %v3738_v50 = vadd.f32 %v3737_v2, %v3592_v5  ;;  %v3434_v55 = vadd.f32 %v3418_v56, %v9539_v28  ;;  %v3813_v9 = vadd.f32 %v3797_v18, %v3433_v30  ;;  %v5064_v8 = vld [vmem:[%s10307_s3 + $0x950] sm:$0xff]  ;;  %v3602_v26 = vpop.f32.mrf.mxu0  ;;  %v10838_v5 = vld [vmem:[#allocation41_spill] sm:$0xff]  ;;  %v10842_v38 = vld [vmem:[#allocation50_spill] sm:$0xff] }
 0x374   : > { %v3798_v45 = vsel %vm10837_vm2, %v3782_v27, 0.0  ;;  %v9826_v17 = vmax.f32 %v3812_v24, 0.0  ;;  %6667 = vmatmul.mubr.f32.gmra.mxu0 %v9811_v15  ;;  %6723 = vmatmul.mubr.f32.gmra.mxu1 %v9811_v15  ;;  %v6624_v11 = vpop.f32.mrf.mxu1  ;;  %vm10839_vm14 = vcmp.eq.s32.totalorder %v10838_v5, 1  ;;  %v3368_v19 = vadd.f32 %v9641_v29, %v9541_v46  ;;  %v10840_v30 = vld [vmem:[#allocation53_spill] sm:$0xff] }
 0x375   : > { %v3419_v28 = vsel %vm10839_vm14, %v3403_v58, 0.0  ;;  %v3743_v22 = vadd.f32 %v6621_v1, %v9743_v14  ;;  %6748 = vmatprep.subr.mxu0 %v5065_v13  ;;  %6804 = vmatprep.subr.mxu1 %v5083_v4  ;;  %v3784_v24 = vadd.f32 %v9676_v63, %v3738_v50  ;;  %v3814_v56 = vadd.f32 %v3798_v45, %v3434_v55  ;;  %v5063_v1 = vld [vmem:[%s10307_s3 + $0x948] sm:$0xff] }
 0x376   : > { %6749 = vmatpush3.msra.mxu0 %v5065_v13  ;;  %6805 = vmatpush3.msra.mxu1 %v5083_v4  ;;  %v3747_v18 = vpop.f32.mrf.mxu1  ;;  %v3405_v27 = vadd.f32 %v9639_v33, %v3363_v23  ;;  %vm10841_vm13 = vcmp.eq.s32.totalorder %v10840_v30, 1  ;;  %vm10843_vm1 = vcmp.eq.s32.totalorder %v10842_v38, 1  ;;  %v3435_v29 = vadd.f32 %v3419_v28, %v9528_v6  ;;  %v5081_v23 = vld [vmem:[%s10307_s3 + $0x9c8] sm:$0xff]  ;;  %v6571_v13 = vpop.f32.mrf.mxu0 }
 0x377   : > { %v3420_v2 = vsel %vm10841_vm13, %v3404_v54, 0.0  ;;  %v3799_v58 = vsel %vm10843_vm1, %v3783_v40, 0.0  ;;  %6750 = vmatprep.subr.mxu0 %v5064_v8  ;;  %6806 = vmatprep.subr.mxu1 %v5082_v60  ;;  %v3748_v46 = vadd.f32 %v3747_v18, %v3602_v26  ;;  %v9848_v14 = vmax.f32 %v3813_v9, 0.0  ;;  %v10844_v45 = vld [vmem:[#allocation63_spill] sm:$0xff] }
 0x378   : > { %6669 = vmatprep.mubr.f32.mxu0 %v9826_v17  ;;  %6725 = vmatprep.mubr.f32.mxu1 %v9826_v17  ;;  %v6627_v4 = vpop.f32.mrf.mxu1  ;;  %v3373_v54 = vadd.f32 %v9627_v42, %v9517_v48  ;;  %v3406_v6 = vadd.f32 %v9639_v33, %v3368_v19  ;;  %v3785_v40 = vadd.f32 %v9676_v63, %v3743_v22  ;;  %vm10845_vm0 = vcmp.eq.s32.totalorder %v10844_v45, 1  ;;  %v5062_v48 = vld [vmem:[%s10307_s3 + $0x940] sm:$0xff]  ;;  %v10885_v45 = vld [vmem:[#allocation9_spill] sm:$0xff] }
 0x379   : > { %v3800_v50 = vsel %vm10845_vm0, %v3784_v24, 0.0  ;;  %6751 = vmatpush3.msra.mxu0 %v5064_v8  ;;  %6807 = vmatpush3.msra.mxu1 %v5082_v60  ;;  %v3436_v55 = vadd.f32 %v3420_v2, %v9562_v53  ;;  %v3815_v9 = vadd.f32 %v3799_v58, %v3435_v29  ;;  %v9865_v26 = vmax.f32 %v3814_v56, 0.0  ;;  %v5080_v42 = vld [vmem:[%s10307_s3 + $0x9c0] sm:$0xff]  ;;  %v10846_v8 = vld [vmem:[#allocation56_spill] sm:$0xff]  ;;  %v3612_v56 = vpop.f32.mrf.mxu0  ;;  %v10848_v2 = vld [vmem:[#allocation67_spill] sm:$0xff] }
 0x37a   : > { %6670 = vmatmul.mubr.f32.gmra.mxu0 %v9848_v14  ;;  %6726 = vmatmul.mubr.f32.gmra.mxu1 %v9848_v14  ;;  %v3757_v28 = vpop.f32.mrf.mxu1  ;;  %vm10847_vm6 = vcmp.eq.s32.totalorder %v10846_v8, 1  ;;  %v3378_v53 = vadd.f32 %v9658_v37, %v9582_v12  ;;  %v3753_v19 = vadd.f32 %v6624_v11, %v9800_v31  ;;  %v3786_v22 = vadd.f32 %v9676_v63, %v3748_v46  ;;  %v10850_v29 = vld [vmem:[#allocation66_spill] sm:$0xff]  ;;  %v5061_v11 = vld [vmem:[%s10307_s3 + $0x938] sm:$0xff] }
 0x37b   : > { %v3421_v60 = vsel %vm10847_vm6, %v3405_v27, 0.0  ;;  %6752 = vmatprep.subr.mxu0 %v5063_v1  ;;  %6808 = vmatprep.subr.mxu1 %v5081_v23  ;;  %v3816_v24 = vadd.f32 %v3800_v50, %v3436_v55  ;;  %v3407_v18 = vadd.f32 %v9639_v33, %v3373_v54  ;;  %vm10849_vm7 = vcmp.eq.s32.totalorder %v10848_v2, 1  ;;  %v5079_v46 = vld [vmem:[%s10307_s3 + $0x9b8] sm:$0xff] }
 0x37c   : > { %6753 = vmatpush3.msra.mxu0 %v5063_v1  ;;  %6809 = vmatpush3.msra.mxu1 %v5081_v23  ;;  %v3422_v58 = vsel %vm10849_vm7, %v3406_v6, 0.0  ;;  %vm10851_vm2 = vcmp.eq.s32.totalorder %v10850_v29, 1  ;;  %v3758_v12 = vadd.f32 %v3757_v28, %v3612_v56  ;;  %v3437_v37 = vadd.f32 %v3421_v60, %v9552_v52  ;;  %v10852_v1 = vld [vmem:[#allocation60_spill] sm:$0xff]  ;;  %v10853_v6 = vld [vmem:[#allocation15_spill] sm:$0xff]  ;;  %v10855_v50 = vld [vmem:[#allocation93_spill] sm:$0xff] }
 0x37d   : > { %v3801_v27 = vsel %vm10851_vm2, %v3785_v40, 0.0  ;;  %6754 = vmatprep.subr.mxu0 %v5062_v48  ;;  %6810 = vmatprep.subr.mxu1 %v5080_v42  ;;  %v9887_v31 = vmax.f32 %v3815_v9, 0.0  ;;  %v3383_v23 = vadd.f32 %v10852_v1, %v9564_v3  ;;  %v3408_v54 = vadd.f32 %v9639_v33, %v3378_v53  ;;  %v5060_v3 = vld [vmem:[%s10307_s3 + $0x930] sm:$0xff]  ;;  %v10856_v53 = vld [vmem:[#allocation46_spill] sm:$0xff]  ;;  %v10858_v56 = vld [vmem:[#allocation57_spill] sm:$0xff] }
 0x37e   : > { %6672 = vmatprep.mubr.f32.mxu0 %v9865_v26  ;;  %6728 = vmatprep.mubr.f32.mxu1 %v9865_v26  ;;  %v3787_v52 = vadd.f32 %v9676_v63, %v3753_v19  ;;  %vm10854_vm14 = vcmp.eq.s32.totalorder %v10853_v6, 1  ;;  %v3438_v55 = vadd.f32 %v3422_v58, %v10855_v50  ;;  %v3817_v9 = vadd.f32 %v3801_v27, %v3437_v37  ;;  %v5078_v60 = vld [vmem:[%s10307_s3 + $0x9b0] sm:$0xff]  ;;  %v5058_v50 = vld [vmem:[%s10307_s3 + $0x920] sm:$0xff] }
 0x37f   : > { %v3802_v40 = vsel %vm10854_vm14, %v3786_v22, 0.0  ;;  %6755 = vmatpush3.msra.mxu0 %v5062_v48  ;;  %6811 = vmatpush3.msra.mxu1 %v5080_v42  ;;  %v9904_v28 = vmax.f32 %v3816_v24, 0.0  ;;  %vm10857_vm13 = vcmp.eq.s32.totalorder %v10856_v53, 1  ;;  %v3763_v42 = vadd.f32 %v6627_v4, %v6571_v13  ;;  %v10860_v27 = vld [vmem:[#allocation52_spill] sm:$0xff]  ;;  %v5077_v4 = vld [vmem:[%s10307_s3 + $0x9a8] sm:$0xff] }
 0x380   : > { %6673 = vmatmul.mubr.f32.gmra.mxu0 %v9887_v31  ;;  %6729 = vmatmul.mubr.f32.gmra.mxu1 %v9887_v31  ;;  %v3423_v48 = vsel %vm10857_vm13, %v3407_v18, 0.0  ;;  %v3788_v19 = vadd.f32 %v9676_v63, %v3758_v12  ;;  %v3818_v22 = vadd.f32 %v3802_v40, %v3438_v55  ;;  %v3409_v24 = vadd.f32 %v9639_v33, %v3383_v23  ;;  %v10862_v1 = vld [vmem:[#allocation92_spill] sm:$0xff]  ;;  %v5059_v33 = vld [vmem:[%s10307_s3 + $0x928] sm:$0xff]  ;;  %v10866_v55 = vld [vmem:[#allocation58_spill] sm:$0xff] }
 0x381   : > { %6756 = vmatprep.subr.mxu0 %v5061_v11  ;;  %6812 = vmatprep.subr.mxu1 %v5079_v46  ;;  %vm10859_vm1 = vcmp.eq.s32.totalorder %v10858_v56, 1  ;;  %vm10861_vm0 = vcmp.eq.s32.totalorder %v10860_v27, 1  ;;  %v3439_v18 = vadd.f32 %v3423_v48, %v10862_v1  ;;  %v9923_v13 = vmax.f32 %v3817_v9, 0.0  ;;  %v10865_v23 = vld [vmem:[#allocation95_spill] sm:$0xff]  ;;  %v10877_v27 = vld [vmem:[#allocation4_spill] sm:$0xff] }
 0x382   : > { %6757 = vmatpush3.msra.mxu0 %v5061_v11  ;;  %6813 = vmatpush3.msra.mxu1 %v5079_v46  ;;  %v3424_v58 = vsel %vm10859_vm1, %v3408_v54, 0.0  ;;  %v3803_v37 = vsel %vm10861_vm0, %v3787_v52, 0.0  ;;  %v3789_v12 = vadd.f32 %v9676_v63, %v3763_v42  ;;  %v10863_v11 = vld [vmem:[#allocation54_spill] sm:$0xff]  ;;  %v9937_v40 = vmax.f32 %v3818_v22, 0.0  ;;  %v10881_v53 = vld [vmem:[#allocation12_spill] sm:$0xff] }
 0x383   : > { %6758 = vmatprep.subr.mxu0 %v5060_v3  ;;  %6814 = vmatprep.subr.mxu1 %v5078_v60  ;;  %vm10864_vm6 = vcmp.eq.s32.totalorder %v10863_v11, 1  ;;  %v3440_v54 = vadd.f32 %v3424_v58, %v10865_v23  ;;  %v3819_v52 = vadd.f32 %v3803_v37, %v3439_v18  ;;  %v5076_v63 = vld [vmem:[%s10307_s3 + $0x9a0] sm:$0xff]  ;;  %vm10867_vm7 = vcmp.eq.s32.totalorder %v10866_v55, 1  ;;  %v5075_v58 = vld [vmem:[%s10307_s3 + $0x998] sm:$0xff]  ;;  %v5056_v18 = vld [vmem:[%s10307_s3 + $0x910] sm:$0xff] }
 0x384   : > { %6675 = vmatprep.mubr.f32.mxu0 %v9904_v28  ;;  %6731 = vmatprep.mubr.f32.mxu1 %v9904_v28  ;;  %v3804_v46 = vsel %vm10864_vm6, %v3788_v19, 0.0  ;;  %v3425_v9 = vsel %vm10867_vm7, %v3409_v24, 0.0  ;;  %v10870_v42 = vld [vmem:[#allocation94_spill] sm:$0xff]  ;;  %v5057_v24 = vld [vmem:[%s10307_s3 + $0x918] sm:$0xff]  ;;  %vm10878_vm0 = vcmp.eq.s32.totalorder %v10877_v27, 1  ;;  %vm10882_vm7 = vcmp.eq.s32.totalorder %v10881_v53, 1 }
 0x385   : > { %6759 = vmatpush3.msra.mxu0 %v5060_v3  ;;  %6815 = vmatpush3.msra.mxu1 %v5078_v60  ;;  %v3820_v3 = vadd.f32 %v3804_v46, %v3440_v54  ;;  %v10868_v60 = vld [vmem:[#allocation55_spill] sm:$0xff]  ;;  %v3441_v19 = vadd.f32 %v3425_v9, %v10870_v42  ;;  %v9952_v22 = vmax.f32 %v3819_v52, 0.0  ;;  %v5054_v23 = vld [vmem:[%s10307_s3 + $0x900] sm:$0xff] }
 0x386   : > { %6676 = vmatmul.mubr.f32.gmra.mxu0 %v9923_v13  ;;  %6732 = vmatmul.mubr.f32.gmra.mxu1 %v9923_v13  ;;  %vm10869_vm2 = vcmp.eq.s32.totalorder %v10868_v60, 1  ;;  %v5073_v46 = vld [vmem:[%s10307_s3 + $0x988] sm:$0xff]  ;;  %v5072_v54 = vld [vmem:[%s10307_s3 + $0x980] sm:$0xff] }
 0x387   : > { %6760 = vmatprep.subr.mxu0 %v5059_v33  ;;  %6816 = vmatprep.subr.mxu1 %v5077_v4  ;;  %v3805_v48 = vsel %vm10869_vm2, %v3789_v12, 0.0  ;;  %v3836_v1 = vmax.f32 %v3820_v3, 0.0  ;;  %v5055_v12 = vld [vmem:[%s10307_s3 + $0x908] sm:$0xff] }
 0x388   : > { %6761 = vmatpush3.msra.mxu0 %v5059_v33  ;;  %6817 = vmatpush3.msra.mxu1 %v5077_v4  ;;  %v3821_v37 = vadd.f32 %v3805_v48, %v3441_v19  ;;  %v5074_v33 = vld [vmem:[%s10307_s3 + $0x990] sm:$0xff]  ;;  %v10013_v19 = vld [vmem:[%s10308_s4 + $0xc] ss:$0 sm:$0xff] }
 0x389   : > { %6762 = vmatprep.subr.mxu0 %v5058_v50  ;;  %6818 = vmatprep.subr.mxu1 %v5076_v63 }
 0x38a   : > { %6678 = vmatprep.mubr.f32.mxu0 %v9937_v40  ;;  %6734 = vmatprep.mubr.f32.mxu1 %v9937_v40  ;;  %v3837_v4 = vmax.f32 %v3821_v37, 0.0 }
 0x38b   : > { %6763 = vmatpush3.msra.mxu0 %v5058_v50  ;;  %6819 = vmatpush3.msra.mxu1 %v5076_v63 }
 0x38c   : > { %6679 = vmatmul.mubr.f32.gmra.mxu0 %v9952_v22  ;;  %6735 = vmatmul.mubr.f32.gmra.mxu1 %v9952_v22 }
 0x38d   : > { %6764 = vmatprep.subr.mxu0 %v5057_v24  ;;  %6820 = vmatprep.subr.mxu1 %v5075_v58 }
 0x38e   : > { %6765 = vmatpush3.msra.mxu0 %v5057_v24  ;;  %6821 = vmatpush3.msra.mxu1 %v5075_v58 }
 0x38f   : > { %6766 = vmatprep.subr.mxu0 %v5056_v18  ;;  %6822 = vmatprep.subr.mxu1 %v5074_v33 }
 0x390   : > { %6681 = vmatprep.mubr.f32.mxu0 %v3836_v1  ;;  %6737 = vmatprep.mubr.f32.mxu1 %v3836_v1 }
 0x391   : > { %6767 = vmatpush3.msra.mxu0 %v5056_v18  ;;  %6823 = vmatpush3.msra.mxu1 %v5074_v33 }
 0x392   : > { %6682 = vmatmul.mubr.f32.gmra.mxu0 %v3837_v4  ;;  %6738 = vmatmul.mubr.f32.gmra.mxu1 %v3837_v4 }
 0x393   : > { %6768 = vmatprep.subr.mxu0 %v5055_v12  ;;  %6824 = vmatprep.subr.mxu1 %v5073_v46 }
 0x394   : > { %6769 = vmatpush3.msra.mxu0 %v5055_v12  ;;  %6772 = vmatprep.mubr.f32.mxu0 %v9727_v16 }
 0x395   : > { %6825 = vmatpush3.msra.mxu1 %v5073_v46  ;;  %6828 = vmatprep.mubr.f32.mxu1 %v9727_v16  ;;  %v10873_v46 = vld [vmem:[#allocation5_spill] sm:$0xff] }
 0x396   : > { %6770 = vmatprep.subr.mxu0 %v5054_v23  ;;  %6826 = vmatprep.subr.mxu1 %v5072_v54  ;;  %vm10874_vm13 = vcmp.eq.s32.totalorder %v10873_v46, 1 }
 0x397   : > { %6771 = vmatpush3.msra.mxu0 %v5054_v23  ;;  %6827 = vmatpush3.msra.mxu1 %v5072_v54 }
 0x398   : > { %6773 = vmatmul.mubr.f32.vlgmr.msra.gmra.mxu0 %v9729_v57  ;;  %6829 = vmatmul.mubr.f32.vlgmr.msra.gmra.mxu1 %v9729_v57 }
 0x399   : > { %6775 = vmatprep.mubr.f32.mxu0 %v9754_v47  ;;  %6831 = vmatprep.mubr.f32.mxu1 %v9754_v47 }
 0x39c   : > { %6776 = vmatmul.mubr.f32.gmra.mxu0 %v9768_v25  ;;  %6832 = vmatmul.mubr.f32.gmra.mxu1 %v9768_v25 }
 0x39d   : > { %6778 = vmatprep.mubr.f32.mxu0 %v9784_v59  ;;  %6834 = vmatprep.mubr.f32.mxu1 %v9784_v59 }
 0x3a0   : > { %6779 = vmatmul.mubr.f32.gmra.mxu0 %v9811_v15  ;;  %6835 = vmatmul.mubr.f32.gmra.mxu1 %v9811_v15 }
 0x3a1   : > { %6781 = vmatprep.mubr.f32.mxu0 %v9826_v17  ;;  %6837 = vmatprep.mubr.f32.mxu1 %v9826_v17 }
 0x3a4   : > { %6782 = vmatmul.mubr.f32.gmra.mxu0 %v9848_v14  ;;  %6838 = vmatmul.mubr.f32.gmra.mxu1 %v9848_v14 }
 0x3a5   : > { %6784 = vmatprep.mubr.f32.mxu0 %v9865_v26  ;;  %6840 = vmatprep.mubr.f32.mxu1 %v9865_v26 }
 0x3a8   : > { %6785 = vmatmul.mubr.f32.gmra.mxu0 %v9887_v31  ;;  %6841 = vmatmul.mubr.f32.gmra.mxu1 %v9887_v31 }
 0x3a9   : > { %6787 = vmatprep.mubr.f32.mxu0 %v9904_v28  ;;  %6843 = vmatprep.mubr.f32.mxu1 %v9904_v28 }
 0x3ac   : > { %6788 = vmatmul.mubr.f32.gmra.mxu0 %v9923_v13  ;;  %6844 = vmatmul.mubr.f32.gmra.mxu1 %v9923_v13 }
 0x3ad   : > { %6790 = vmatprep.mubr.f32.mxu0 %v9937_v40  ;;  %6846 = vmatprep.mubr.f32.mxu1 %v9937_v40 }
 0x3b0   : > { %6791 = vmatmul.mubr.f32.gmra.mxu0 %v9952_v22  ;;  %6847 = vmatmul.mubr.f32.gmra.mxu1 %v9952_v22  ;;  %v10018_v22 = vld [vmem:[%s10308_s4 + $0xd] ss:$0 sm:$0xff] }
 0x3b1   : > { %6793 = vmatprep.mubr.f32.mxu0 %v3836_v1  ;;  %6849 = vmatprep.mubr.f32.mxu1 %v3836_v1 }
 0x3b4   : > { %6794 = vmatmul.mubr.f32.gmra.mxu0 %v3837_v4  ;;  %6850 = vmatmul.mubr.f32.gmra.mxu1 %v3837_v4  ;;  %v10871_v4 = vld [vmem:[#allocation3_spill] sm:$0xff] }
 0x3b5   : > { %vm10872_vm14 = vcmp.eq.s32.totalorder %v10871_v4, 1 }
 0x429   : > { %v6662_v16 = vpop.f32.mrf.mxu0  ;;  %v6718_v57 = vpop.f32.mrf.mxu1 }
 0x42a   : > { %v3935_v37 = vadd.f32 %v6662_v16, %v10013_v19  ;;  %v4121_v1 = vadd.f32 %v6718_v57, %v10018_v22 }
 0x42b   : > { %v3929_v47 = vpop.f32.mrf.mxu0  ;;  %v4115_v25 = vpop.f32.mrf.mxu1 }
 0x42c   : > { %v4009_v12 = vsel %vm10872_vm14, %v3935_v37, 0.0  ;;  %v4195_v23 = vsel %vm10874_vm13, %v4121_v1, 0.0  ;;  %v3930_v54 = vadd.f32 %v10013_v19, %v3929_v47  ;;  %v4116_v11 = vadd.f32 %v10018_v22, %v4115_v25 }
 0x42d   : > { %vm10886_vm14 = vcmp.eq.s32.totalorder %v10885_v45, 1 }
 0x42e   : > { %v6665_v59 = vpop.f32.mrf.mxu0  ;;  %v6721_v15 = vpop.f32.mrf.mxu1 }
 0x42f   : > { %v3945_v56 = vadd.f32 %v6665_v59, %v10013_v19  ;;  %v4131_v60 = vadd.f32 %v6721_v15, %v10018_v22 }
 0x430   : > { %v3939_v17 = vpop.f32.mrf.mxu0  ;;  %v4125_v14 = vpop.f32.mrf.mxu1 }
 0x431   : > { %v3940_v16 = vadd.f32 %v10013_v19, %v3939_v17  ;;  %v4126_v57 = vadd.f32 %v10018_v22, %v4125_v14  ;;  %v10040_v17 = vadd.f32 %v4195_v23, %v4009_v12  ;;  %v10875_v14 = vld [vmem:[#allocation2_spill] sm:$0xff]  ;;  %v10887_v12 = vld [vmem:[#allocation21_spill] sm:$0xff] }
 0x432   : > { %vm10876_vm1 = vcmp.eq.s32.totalorder %v10875_v14, 1  ;;  %vm10888_vm13 = vcmp.eq.s32.totalorder %v10887_v12, 1  ;;  %v10889_v14 = vld [vmem:[#allocation22_spill] sm:$0xff] }
 0x433   : > { %v4008_v2 = vsel %vm10876_vm1, %v3930_v54, 0.0  ;;  %v4196_v30 = vsel %vm10886_vm14, %v4126_v57, 0.0  ;;  %vm10890_vm1 = vcmp.eq.s32.totalorder %v10889_v14, 1  ;;  %v10897_v12 = vld [vmem:[#allocation26_spill] sm:$0xff]  ;;  %v10899_v14 = vld [vmem:[#allocation27_spill] sm:$0xff] }
 0x434   : > { %v6668_v26 = vpop.f32.mrf.mxu0  ;;  %v6724_v31 = vpop.f32.mrf.mxu1  ;;  %vm10898_vm14 = vcmp.eq.s32.totalorder %v10897_v12, 1 }
 0x435   : > { %v3955_v4 = vadd.f32 %v6668_v26, %v10013_v19  ;;  %v4141_v37 = vadd.f32 %v6724_v31, %v10018_v22  ;;  %v4194_v26 = vsel %vm10878_vm0, %v4116_v11, 0.0  ;;  %v10879_v31 = vld [vmem:[#allocation11_spill] sm:$0xff]  ;;  %vm10891_vm0 = vcmp.eq.s32.totalorder %v10792_v61, 1 }
 0x436   : > { %v3949_v28 = vpop.f32.mrf.mxu0  ;;  %v4135_v13 = vpop.f32.mrf.mxu1  ;;  %vm10880_vm6 = vcmp.eq.s32.totalorder %v10879_v31, 1 }
 0x437   : > { %v3950_v1 = vadd.f32 %v10013_v19, %v3949_v28  ;;  %v4136_v47 = vadd.f32 %v10018_v22, %v4135_v13  ;;  %v4011_v28 = vsel %vm10880_vm6, %v3945_v56, 0.0  ;;  %v4197_v13 = vsel %vm10882_vm7, %v4131_v60, 0.0  ;;  %v10893_v60 = vld [vmem:[#allocation29_spill] sm:$0xff] }
 0x438   : > { %v4013_v23 = vsel %vm10888_vm13, %v3955_v4, 0.0  ;;  %v4199_v54 = vsel %vm10890_vm1, %v4141_v37, 0.0  ;;  %vm10892_vm6 = vcmp.eq.s32.totalorder %v10807_v7, 1  ;;  %vm10894_vm7 = vcmp.eq.s32.totalorder %v10893_v60, 1 }
 0x439   : > { %v4012_v53 = vsel %vm10891_vm0, %v3950_v1, 0.0  ;;  %v4198_v56 = vsel %vm10892_vm6, %v4136_v47, 0.0  ;;  %v4210_v7 = vadd.f32 %v4194_v26, %v4008_v2  ;;  %v10076_v1 = vadd.f32 %v4197_v13, %v4011_v28  ;;  %v10101_v28 = vld [vmem:[%s10308_s4 + $0xe] ss:$0 sm:$0xff]  ;;  %v10106_v13 = vld [vmem:[%s10308_s4 + $0xf] ss:$0 sm:$0xff] }
 0x43a   : > { %v6671_v52 = vpop.f32.mrf.mxu0  ;;  %v6727_v40 = vpop.f32.mrf.mxu1  ;;  %vm10900_vm13 = vcmp.eq.s32.totalorder %v10899_v14, 1  ;;  %v10092_v26 = vadd.f32 %v4199_v54, %v4013_v23  ;;  %v10904_v23 = vld [vmem:[#allocation34_spill] sm:$0xff] }
 0x43b   : > { %v3965_v25 = vadd.f32 %v6671_v52, %v10013_v19  ;;  %v4151_v59 = vadd.f32 %v6727_v40, %v10018_v22  ;;  %v10883_v52 = vld [vmem:[#allocation8_spill] sm:$0xff]  ;;  %vm10905_vm0 = vcmp.eq.s32.totalorder %v10904_v23, 1  ;;  %v10910_v14 = vld [vmem:[#allocation42_spill] sm:$0xff] }
 0x43c   : > { %v3959_v50 = vpop.f32.mrf.mxu0  ;;  %v4145_v63 = vpop.f32.mrf.mxu1  ;;  %vm10884_vm2 = vcmp.eq.s32.totalorder %v10883_v52, 1 }
 0x43d   : > { %v4010_v40 = vsel %vm10884_vm2, %v3940_v16, 0.0  ;;  %v3960_v27 = vadd.f32 %v10013_v19, %v3959_v50  ;;  %v4146_v11 = vadd.f32 %v10018_v22, %v4145_v63  ;;  %v4015_v45 = vsel %vm10894_vm7, %v3965_v25, 0.0  ;;  %v10895_v16 = vld [vmem:[#allocation30_spill] sm:$0xff] }
 0x43e   : > { %vm10896_vm2 = vcmp.eq.s32.totalorder %v10895_v16, 1 }
 0x43f   : > { %v4201_v57 = vsel %vm10896_vm2, %v4151_v59, 0.0  ;;  %vm10918_vm2 = vcmp.eq.s32.totalorder %v10795_v10, 1 }
 0x440   : > { %v6674_v9 = vpop.f32.mrf.mxu0  ;;  %v6730_v3 = vpop.f32.mrf.mxu1 }
 0x441   : > { %v3975_v50 = vadd.f32 %v6674_v9, %v10013_v19  ;;  %v4161_v63 = vadd.f32 %v6730_v3, %v10018_v22  ;;  %v4014_v9 = vsel %vm10898_vm14, %v3960_v27, 0.0  ;;  %v4200_v3 = vsel %vm10900_vm13, %v4146_v11, 0.0 }
 0x442   : > { %v3969_v48 = vpop.f32.mrf.mxu0  ;;  %v4155_v42 = vpop.f32.mrf.mxu1  ;;  %vm10922_vm14 = vcmp.eq.s32.totalorder %v10798_v35, 1  ;;  %vm10927_vm13 = vcmp.eq.s32.totalorder %v10816_v34, 1 }
 0x443   : > { %v3970_v61 = vadd.f32 %v10013_v19, %v3969_v48  ;;  %v4156_v37 = vadd.f32 %v10018_v22, %v4155_v42  ;;  %v10090_v42 = vadd.f32 %v4196_v30, %v4010_v40  ;;  %v4017_v30 = vsel %vm625_vm4, %v3975_v50, 0.0 }
 0x444   : > { %vm10911_vm4 = vcmp.eq.s32.totalorder %v10910_v14, 1 }
 0x445   : > { %v4016_v54 = vsel %vm10905_vm0, %v3970_v61, 0.0  ;;  %v4202_v11 = vsel %vm890_vm9, %v4156_v37, 0.0  ;;  %vm10917_vm9 = vcmp.eq.s32.totalorder %v10800_v41, 1  ;;  %vm10929_vm0 = vcmp.eq.s32.totalorder %v10811_v62, 1 }
 0x446   : > { %v6677_v24 = vpop.f32.mrf.mxu0  ;;  %v6733_v58 = vpop.f32.mrf.mxu1 }
 0x447   : > { %v3985_v47 = vadd.f32 %v6677_v24, %v10013_v19  ;;  %v4171_v25 = vadd.f32 %v6733_v58, %v10018_v22  ;;  %v10094_v24 = vadd.f32 %v4198_v56, %v4012_v53  ;;  %v10096_v58 = vadd.f32 %v4201_v57, %v4015_v45  ;;  %v10907_v56 = vld [vmem:[#allocation45_spill] sm:$0xff] }
 0x448   : > { %v3979_v18 = vpop.f32.mrf.mxu0  ;;  %v4165_v33 = vpop.f32.mrf.mxu1  ;;  %v10116_v53 = vadd.f32 %v4200_v3, %v4014_v9  ;;  %vm10908_vm6 = vcmp.eq.s32.totalorder %v10907_v56, 1 }
 0x449   : > { %v3980_v48 = vadd.f32 %v10013_v19, %v3979_v18  ;;  %v4166_v2 = vadd.f32 %v10018_v22, %v4165_v33  ;;  %v10902_v33 = vld [vmem:[#allocation38_spill] sm:$0xff]  ;;  %v4019_v60 = vsel %vm10908_vm6, %v3985_v47, 0.0  ;;  %v4205_v16 = vsel %vm893_vm8, %v4171_v25, 0.0  ;;  %v10912_v18 = vld [vmem:[#allocation43_spill] sm:$0xff] }
 0x44a   : > { %vm10903_vm1 = vcmp.eq.s32.totalorder %v10902_v33, 1  ;;  %vm10913_vm7 = vcmp.eq.s32.totalorder %v10912_v18, 1  ;;  %v10131_v47 = vadd.f32 %v4202_v11, %v4016_v54  ;;  %v10135_v27 = vadd.f32 %v4205_v16, %v4019_v60 }
 0x44b   : > { %v4203_v40 = vsel %vm10903_vm1, %v4161_v63, 0.0  ;;  %v4018_v63 = vsel %vm10911_vm4, %v3980_v48, 0.0  ;;  %v4204_v61 = vsel %vm10913_vm7, %v4166_v2, 0.0  ;;  %v10914_v48 = vld [vmem:[#allocation7_spill] sm:$0xff]  ;;  %vm10928_vm1 = vcmp.eq.s32.totalorder %v10823_v43, 1 }
 0x44c   : > { %v6680_v55 = vpop.f32.mrf.mxu0  ;;  %v6736_v6 = vpop.f32.mrf.mxu1  ;;  %v10129_v3 = vadd.f32 %v4203_v40, %v4017_v30  ;;  %vm10915_vm8 = vcmp.eq.s32.totalorder %v10914_v48, 1  ;;  %vm10930_vm6 = vcmp.eq.s32.totalorder %v10825_v51, 1  ;;  %vm10931_vm4 = vcmp.eq.s32.totalorder %v10828_v44, 1  ;;  %v10933_v44 = vld [vmem:[#allocation32_spill] sm:$0xff] }
 0x44d   : > { %v3995_v57 = vadd.f32 %v6680_v55, %v10013_v19  ;;  %v4181_v25 = vadd.f32 %v6736_v6, %v10018_v22  ;;  %vm10932_vm7 = vcmp.eq.s32.totalorder %v10834_v20, 1 }
 0x44e   : > { %v3989_v46 = vpop.f32.mrf.mxu0  ;;  %v10038_v15 = vpop.f32.mrf.mxu1 }
 0x44f   : > { %v3990_v55 = vadd.f32 %v10013_v19, %v3989_v46  ;;  %v4021_v40 = vsel %vm629_vm5, %v3995_v57, 0.0  ;;  %v4176_v6 = vadd.f32 %v10018_v22, %v10038_v15  ;;  %v4207_v57 = vsel %vm895_vm10, %v4181_v25, 0.0 }
 0x450   : > { %vm10921_vm5 = vcmp.eq.s32.totalorder %v10805_v36, 1  ;;  %vm10925_vm10 = vcmp.eq.s32.totalorder %v10802_v49, 1 }
 0x451   : > { %v4020_v15 = vsel %vm628_vm15, %v3990_v55, 0.0  ;;  %vm10924_vm15 = vcmp.eq.s32.totalorder %v10809_v0, 1 }
 0x452   : > { %v10068_v4 = vpop.f32.mrf.mxu0  ;;  %v10070_v31 = vpop.f32.mrf.mxu1 }
 0x454   : > { %v10080_v59 = vpop.f32.mrf.mxu0  ;;  %v10082_v52 = vpop.f32.mrf.mxu1 }
 0x458   : > { %v6774_v50 = vpop.f32.mrf.mxu0  ;;  %v6830_v12 = vpop.f32.mrf.mxu1 }
 0x459   : > { %v4323_v37 = vadd.f32 %v6774_v50, %v10101_v28  ;;  %v4525_v9 = vadd.f32 %v6830_v12, %v10106_v13  ;;  %v10141_v50 = vadd.f32 %v4204_v61, %v4018_v63 }
 0x45a   : > { %v4317_v33 = vpop.f32.mrf.mxu0  ;;  %v4519_v23 = vpop.f32.mrf.mxu1 }
 0x45b   : > { %v4397_v56 = vsel %vm10915_vm8, %v4323_v37, 0.0  ;;  %v4318_v2 = vadd.f32 %v10101_v28, %v4317_v33  ;;  %v4520_v45 = vadd.f32 %v10106_v13, %v4519_v23  ;;  %v4599_v60 = vsel %vm10917_vm9, %v4525_v9, 0.0 }
 0x45c   : > { %v4413_v46 = vadd.f32 %v4397_v56, %v10040_v17  ;;  %v6777_v54 = vpop.f32.mrf.mxu0  ;;  %v6833_v11 = vpop.f32.mrf.mxu1  ;;  %vm10934_vm8 = vcmp.eq.s32.totalorder %v10933_v44, 1  ;;  %vm10936_vm9 = vcmp.eq.s32.totalorder %v10830_v21, 1 }
 0x45d   : > { %v4396_v16 = vsel %vm10918_vm2, %v4318_v2, 0.0  ;;  %v4333_v12 = vadd.f32 %v6777_v54, %v10101_v28  ;;  %v4535_v14 = vadd.f32 %v6833_v11, %v10106_v13  ;;  %v4598_v10 = vsel %vm10921_vm5, %v4520_v45, 0.0 }
 0x45e   : > { %v4615_v61 = vadd.f32 %v4599_v60, %v4413_v46  ;;  %v4412_v17 = vadd.f32 %v4396_v16, %v4210_v7  ;;  %v4327_v37 = vpop.f32.mrf.mxu0  ;;  %v4529_v33 = vpop.f32.mrf.mxu1  ;;  %v4206_v7 = vsel %vm894_vm3, %v4176_v6, 0.0  ;;  %v10179_v54 = vadd.f32 %v4207_v57, %v4021_v40 }
 0x45f   : > { %v4399_v41 = vsel %vm10922_vm14, %v4333_v12, 0.0  ;;  %v4328_v9 = vadd.f32 %v10101_v28, %v4327_v37  ;;  %v4530_v25 = vadd.f32 %v10106_v13, %v4529_v33  ;;  %v4601_v36 = vsel %vm10924_vm15, %v4535_v14, 0.0 }
 0x460   : > { %v4631_v23 = vmax.f32 %v4615_v61, 0.0  ;;  %v4614_v48 = vadd.f32 %v4598_v10, %v4412_v17  ;;  %v4415_v56 = vadd.f32 %v4399_v41, %v10076_v1  ;;  %v6780_v2 = vpop.f32.mrf.mxu0  ;;  %v6836_v30 = vpop.f32.mrf.mxu1  ;;  %vm10926_vm3 = vcmp.eq.s32.totalorder %v10814_v39, 1 }
 0x461   : > { %v4398_v35 = vsel %vm10925_vm10, %v4328_v9, 0.0  ;;  %v4343_v45 = vadd.f32 %v6780_v2, %v10101_v28  ;;  %v4545_v46 = vadd.f32 %v6836_v30, %v10106_v13  ;;  %v4600_v0 = vsel %vm10926_vm3, %v4530_v25, 0.0 }
 0x462   : > { %4647 = vst [vmem:[%s10162_s16 + $0x8] sm:$0xff] %v4631_v23  ;;  %v4630_v6 = vmax.f32 %v4614_v48, 0.0  ;;  %v4617_v11 = vadd.f32 %v4601_v36, %v4415_v56  ;;  %v4414_v1 = vadd.f32 %v4398_v35, %v10090_v42  ;;  %v4337_v60 = vpop.f32.mrf.mxu0  ;;  %v4539_v16 = vpop.f32.mrf.mxu1  ;;  %v10189_v40 = vadd.f32 %v4206_v7, %v4020_v15 }
 0x463   : > { %v4401_v49 = vsel %vm10927_vm13, %v4343_v45, 0.0  ;;  %v4338_v12 = vadd.f32 %v10101_v28, %v4337_v60  ;;  %v4540_v14 = vadd.f32 %v10106_v13, %v4539_v16  ;;  %v4603_v39 = vsel %vm10928_vm1, %v4545_v46, 0.0 }
 0x464   : > { %4646 = vst [vmem:[%s10162_s16] sm:$0xff] %v4630_v6  ;;  %v4633_v63 = vmax.f32 %v4617_v11, 0.0  ;;  %v4616_v57 = vadd.f32 %v4600_v0, %v4414_v1  ;;  %v4417_v42 = vadd.f32 %v4401_v49, %v10092_v26  ;;  %v6783_v18 = vpop.f32.mrf.mxu0  ;;  %v6839_v61 = vpop.f32.mrf.mxu1  ;;  %v4005_v15 = vadd.f32 %v10068_v4, %v10013_v19 }
 0x465   : > { %v4400_v34 = vsel %vm10929_vm0, %v4338_v12, 0.0  ;;  %v4353_v17 = vadd.f32 %v6783_v18, %v10101_v28  ;;  %v4555_v37 = vadd.f32 %v6839_v61, %v10106_v13  ;;  %v4602_v43 = vsel %vm10930_vm6, %v4540_v14, 0.0 }
 0x466   : > { %4649 = vst [vmem:[%s10162_s16 + $0x18] sm:$0xff] %v4633_v63  ;;  %v4632_v33 = vmax.f32 %v4616_v57, 0.0  ;;  %v4619_v10 = vadd.f32 %v4603_v39, %v4417_v42  ;;  %v4416_v26 = vadd.f32 %v4400_v34, %v10094_v24  ;;  %v4347_v41 = vpop.f32.mrf.mxu0  ;;  %v4549_v9 = vpop.f32.mrf.mxu1  ;;  %v4191_v4 = vadd.f32 %v10070_v31, %v10018_v22 }
 0x467   : > { %v4403_v62 = vsel %vm10931_vm4, %v4353_v17, 0.0  ;;  %v4348_v25 = vadd.f32 %v10101_v28, %v4347_v41  ;;  %v4550_v55 = vadd.f32 %v10106_v13, %v4549_v9  ;;  %v4605_v51 = vsel %vm10932_vm7, %v4555_v37, 0.0 }
 0x468   : > { %4648 = vst [vmem:[%s10162_s16 + $0x10] sm:$0xff] %v4632_v33  ;;  %v4635_v7 = vmax.f32 %v4619_v10, 0.0  ;;  %v4618_v23 = vadd.f32 %v4602_v43, %v4416_v26  ;;  %v4419_v24 = vadd.f32 %v4403_v62, %v10096_v58  ;;  %v6786_v48 = vpop.f32.mrf.mxu0  ;;  %v6842_v56 = vpop.f32.mrf.mxu1  ;;  %v10221_v31 = vsel %vm631_vm12, %v4005_v15, 0.0 }
 0x469   : > { %v4402_v2 = vsel %vm10934_vm8, %v4348_v25, 0.0  ;;  %v4363_v30 = vadd.f32 %v6786_v48, %v10101_v28  ;;  %v4565_v36 = vadd.f32 %v6842_v56, %v10106_v13  ;;  %v4604_v11 = vsel %vm10936_vm9, %v4550_v55, 0.0  ;;  %v10951_v56 = vld [vmem:[#allocation46_spill] sm:$0xff] }
 0x46a   : > { %4651 = vst [vmem:[%s10162_s16 + $0x28] sm:$0xff] %v4635_v7  ;;  %v4634_v45 = vmax.f32 %v4618_v23, 0.0  ;;  %v4621_v58 = vadd.f32 %v4605_v51, %v4419_v24  ;;  %v4418_v46 = vadd.f32 %v4402_v2, %v10116_v53  ;;  %v4357_v6 = vpop.f32.mrf.mxu0  ;;  %v4559_v20 = vpop.f32.mrf.mxu1  ;;  %vm10937_vm2 = vcmp.eq.s32.totalorder %v10838_v5, 1 }
 0x46b   : > { %v4405_v1 = vsel %vm10937_vm2, %v4363_v30, 0.0  ;;  %v4358_v60 = vadd.f32 %v10101_v28, %v4357_v6  ;;  %v4560_v16 = vadd.f32 %v10106_v13, %v4559_v20  ;;  %v4209_v49 = vsel %vm897_vm11, %v4191_v4, 0.0  ;;  %v10947_v4 = vld [vmem:[#allocation48_spill] sm:$0xff]  ;;  %v10953_v30 = vld [vmem:[#allocation49_spill] sm:$0xff] }
 0x46c   : > { %4650 = vst [vmem:[%s10162_s16 + $0x20] sm:$0xff] %v4634_v45  ;;  %v4637_v12 = vmax.f32 %v4621_v58, 0.0  ;;  %v4620_v14 = vadd.f32 %v4604_v11, %v4418_v46  ;;  %v4421_v53 = vadd.f32 %v4405_v1, %v10129_v3  ;;  %v6789_v63 = vpop.f32.mrf.mxu0  ;;  %v6845_v57 = vpop.f32.mrf.mxu1  ;;  %vm10939_vm12 = vcmp.eq.s32.totalorder %v10842_v38, 1  ;;  %v10941_v38 = vld [vmem:[#allocation44_spill] sm:$0xff]  ;;  %v10957_v11 = vld [vmem:[#allocation67_spill] sm:$0xff] }
 0x46d   : > { %v4607_v21 = vsel %vm10939_vm12, %v4565_v36, 0.0  ;;  %vm10940_vm5 = vcmp.eq.s32.totalorder %v10832_v32, 1  ;;  %v4373_v42 = vadd.f32 %v6789_v63, %v10101_v28  ;;  %v4575_v18 = vadd.f32 %v6845_v57, %v10106_v13  ;;  %v10955_v6 = vld [vmem:[#allocation52_spill] sm:$0xff]  ;;  %v10959_v57 = vld [vmem:[#allocation15_spill] sm:$0xff] }
 0x46e   : > { %v4404_v5 = vsel %vm10940_vm5, %v4358_v60, 0.0  ;;  %v4000_v61 = vadd.f32 %v10013_v19, %v10080_v59  ;;  %4653 = vst [vmem:[%s10162_s16 + $0x38] sm:$0xff] %v4637_v12  ;;  %v4636_v39 = vmax.f32 %v4620_v14, 0.0  ;;  %v4623_v34 = vadd.f32 %v4607_v21, %v4421_v53  ;;  %v4367_v17 = vpop.f32.mrf.mxu0  ;;  %v4569_v37 = vpop.f32.mrf.mxu1 }
 0x46f   : > { %v4420_v3 = vadd.f32 %v4404_v5, %v10131_v47  ;;  %vm10942_vm11 = vcmp.eq.s32.totalorder %v10941_v38, 1  ;;  %vm10943_vm14 = vcmp.eq.s32.totalorder %v10846_v8, 1  ;;  %v4368_v33 = vadd.f32 %v10101_v28, %v4367_v17  ;;  %v10945_v8 = vld [vmem:[#allocation53_spill] sm:$0xff]  ;;  %v10961_v5 = vld [vmem:[#allocation58_spill] sm:$0xff] }
 0x470   : > { %v4606_v15 = vsel %vm10942_vm11, %v4560_v16, 0.0  ;;  %v4407_v32 = vsel %vm10943_vm14, %v4373_v42, 0.0  ;;  %v4570_v10 = vadd.f32 %v10106_v13, %v4569_v37  ;;  %v4186_v19 = vadd.f32 %v10018_v22, %v10082_v52  ;;  %4652 = vst [vmem:[%s10162_s16 + $0x30] sm:$0xff] %v4636_v39  ;;  %v6792_v41 = vpop.f32.mrf.mxu0  ;;  %v6848_v9 = vpop.f32.mrf.mxu1  ;;  %v10965_v17 = vld [vmem:[#allocation57_spill] sm:$0xff] }
 0x471   : > { %v4639_v59 = vmax.f32 %v4623_v34, 0.0  ;;  %v4622_v26 = vadd.f32 %v4606_v15, %v4420_v3  ;;  %v4423_v47 = vadd.f32 %v4407_v32, %v10135_v27  ;;  %vm10944_vm15 = vcmp.eq.s32.totalorder %v10850_v29, 1  ;;  %v10949_v29 = vld [vmem:[#allocation63_spill] sm:$0xff] }
 0x472   : > { %v4609_v43 = vsel %vm10944_vm15, %v4575_v18, 0.0  ;;  %vm10946_vm10 = vcmp.eq.s32.totalorder %v10945_v8, 1  ;;  %v4383_v25 = vadd.f32 %v6792_v41, %v10101_v28  ;;  %v4585_v55 = vadd.f32 %v6848_v9, %v10106_v13  ;;  %v4377_v23 = vpop.f32.mrf.mxu0  ;;  %v4579_v24 = vpop.f32.mrf.mxu1  ;;  %v10963_v34 = vld [vmem:[#allocation55_spill] sm:$0xff] }
 0x473   : > { %v4406_v62 = vsel %vm10946_vm10, %v4368_v33, 0.0  ;;  %vm10948_vm3 = vcmp.eq.s32.totalorder %v10947_v4, 1  ;;  %4655 = vst [vmem:[%s10162_s16 + $0x48] sm:$0xff] %v4639_v59  ;;  %v4638_v52 = vmax.f32 %v4622_v26, 0.0  ;;  %v4625_v7 = vadd.f32 %v4609_v43, %v4423_v47 }
 0x474   : > { %v4022_v22 = vsel %vm10948_vm3, %v4000_v61, 0.0  ;;  %v4422_v27 = vadd.f32 %v4406_v62, %v10141_v50  ;;  %vm10950_vm13 = vcmp.eq.s32.totalorder %v10949_v29, 1  ;;  %vm10952_vm1 = vcmp.eq.s32.totalorder %v10951_v56, 1  ;;  %v6795_v58 = vpop.f32.mrf.mxu0  ;;  %v6851_v46 = vpop.f32.mrf.mxu1 }
 0x475   : > { %v4608_v48 = vsel %vm10950_vm13, %v4570_v10, 0.0  ;;  %v4409_v51 = vsel %vm10952_vm1, %v4383_v25, 0.0  ;;  %v4378_v44 = vadd.f32 %v10101_v28, %v4377_v23  ;;  %v4580_v2 = vadd.f32 %v10106_v13, %v4579_v24  ;;  %4654 = vst [vmem:[%s10162_s16 + $0x40] sm:$0xff] %v4638_v52 }
 0x476   : > { %vm10954_vm0 = vcmp.eq.s32.totalorder %v10953_v30, 1  ;;  %v4641_v35 = vmax.f32 %v4625_v7, 0.0  ;;  %v4624_v45 = vadd.f32 %v4608_v48, %v4422_v27  ;;  %v4425_v50 = vadd.f32 %v4409_v51, %v10179_v54  ;;  %v4387_v53 = vpop.f32.mrf.mxu0  ;;  %v4589_v63 = vpop.f32.mrf.mxu1 }
 0x477   : > { %v4208_v36 = vsel %vm10954_vm0, %v4186_v19, 0.0  ;;  %vm10956_vm6 = vcmp.eq.s32.totalorder %v10955_v6, 1  ;;  %vm10958_vm4 = vcmp.eq.s32.totalorder %v10957_v11, 1  ;;  %v4393_v60 = vadd.f32 %v6795_v58, %v10101_v28 }
 0x478   : > { %v4611_v20 = vsel %vm10956_vm6, %v4585_v55, 0.0  ;;  %v4408_v1 = vsel %vm10958_vm4, %v4378_v44, 0.0  ;;  %v4595_v16 = vadd.f32 %v6851_v46, %v10106_v13  ;;  %v4225_v0 = vadd.f32 %v4209_v49, %v10221_v31  ;;  %4657 = vst [vmem:[%s10162_s16 + $0x58] sm:$0xff] %v4641_v35 }
 0x479   : > { %v4640_v12 = vmax.f32 %v4624_v45, 0.0  ;;  %v4627_v14 = vadd.f32 %v4611_v20, %v4425_v50  ;;  %v4424_v54 = vadd.f32 %v4408_v1, %v10189_v40  ;;  %vm10960_vm7 = vcmp.eq.s32.totalorder %v10959_v57, 1 }
 0x47a   : > { %v4610_v21 = vsel %vm10960_vm7, %v4580_v2, 0.0  ;;  %vm10962_vm8 = vcmp.eq.s32.totalorder %v10961_v5, 1  ;;  %v4388_v18 = vadd.f32 %v10101_v28, %v4387_v53  ;;  %v4590_v61 = vadd.f32 %v10106_v13, %v4589_v63  ;;  %v10967_v28 = vld [vmem:[#allocation54_spill] sm:$0xff] }
 0x47b   : > { %v4411_v42 = vsel %vm10962_vm8, %v4393_v60, 0.0  ;;  %v4224_v31 = vadd.f32 %v4208_v36, %v4022_v22  ;;  %4656 = vst [vmem:[%s10162_s16 + $0x50] sm:$0xff] %v4640_v12  ;;  %v4643_v49 = vmax.f32 %v4627_v14, 0.0  ;;  %v4626_v39 = vadd.f32 %v4610_v21, %v4424_v54 }
 0x47c   : > { %v4427_v40 = vadd.f32 %v4411_v42, %v4225_v0  ;;  %vm10964_vm9 = vcmp.eq.s32.totalorder %v10963_v34, 1  ;;  %vm10966_vm2 = vcmp.eq.s32.totalorder %v10965_v17, 1  ;;  %vm10968_vm12 = vcmp.eq.s32.totalorder %v10967_v28, 1 }
 0x47d   : > { %v4613_v3 = vsel %vm10964_vm9, %v4595_v16, 0.0  ;;  %v4410_v37 = vsel %vm10966_vm2, %v4388_v18, 0.0  ;;  %4659 = vst [vmem:[%s10162_s16 + $0x68] sm:$0xff] %v4643_v49  ;;  %v4642_v38 = vmax.f32 %v4626_v39, 0.0  ;;  %v4612_v13 = vsel %vm10968_vm12, %v4590_v61, 0.0 }
 0x47e   : > { %v4629_v15 = vadd.f32 %v4613_v3, %v4427_v40  ;;  %v4426_v32 = vadd.f32 %v4410_v37, %v4224_v31 }
 0x47f   : > { %4658 = vst [vmem:[%s10162_s16 + $0x60] sm:$0xff] %v4642_v38 }
 0x480   : > { %v4645_v33 = vmax.f32 %v4629_v15, 0.0  ;;  %v4628_v10 = vadd.f32 %v4612_v13, %v4426_v32 }
 0x482   : > { %4661 = vst [vmem:[%s10162_s16 + $0x78] sm:$0xff] %v4645_v33  ;;  %v4644_v19 = vmax.f32 %v4628_v10, 0.0 }
 0x484   : > { %4660 = vst [vmem:[%s10162_s16 + $0x70] sm:$0xff] %v4644_v19 }
 0x485 PF: > { %s15_s18 = sadd.s32 1, %s6869_s18  }
 0x486   : > { %p12_p4 = scmp.ge.s32.totalorder %s15_s18, 4  }
 0x488   :  { %14 = sbr.rel (!%p12_p4) target bundleno = 1 (0x1), region = 110 }

</bundles_post_ra>
